<compile_context>
chip_gen: v7x
topology: tpu7x:2x2x1
jax: 0.10.0
libtpu: 0.0.40
codegen_flags: <defaults>
</compile_context>

<pallas_src>
import functools

import jax
import jax.numpy as jnp
from jax.experimental import pallas as pl
from jax.experimental.pallas import tpu as pltpu


def _round_up(x, m):
    return (x + m - 1) // m * m


# ---------------------------------------------------------------------------
# Kernel 1: ConvTranspose3d(k=2, s=2) as one lane-dense matmul
#   x2d : (Ci, N*D*H*W)     batch folded into the lane axis
#   w8  : (Co*8, Ci)        rows ordered (co, kd, kh, kw)
#   b8  : (Co*8, 1)
#   out : (Co*8, N*D*H*W)
# ---------------------------------------------------------------------------

def _up_matmul_kernel(x_ref, w_ref, b_ref, o_ref):
    o_ref[...] = (jnp.dot(w_ref[...], x_ref[...],
                          preferred_element_type=jnp.float32) + b_ref[...])


def up_matmul(x2d, w8, b8, *, tile_m):
    ci, m_tot = x2d.shape
    co8 = w8.shape[0]
    return pl.pallas_call(
        _up_matmul_kernel,
        out_shape=jax.ShapeDtypeStruct((co8, m_tot), jnp.float32),
        grid=(m_tot // tile_m,),
        in_specs=[
            pl.BlockSpec((ci, tile_m), lambda i: (0, i)),
            pl.BlockSpec((co8, ci), lambda i: (0, 0)),
            pl.BlockSpec((co8, 1), lambda i: (0, 0)),
        ],
        out_specs=pl.BlockSpec((co8, tile_m), lambda i: (0, i)),
        compiler_params=pltpu.CompilerParams(
            dimension_semantics=("parallel",)),
    )(x2d, w8, b8)


# ---------------------------------------------------------------------------
# Kernel 2: Conv3d 3x3x3 pad=1 over ring-padded flat sources.
#   * rolling 3-block halo window per source, held in VMEM across the tile axis
#   * optional fused BN+ReLU of the previous layer while filling the window
#   * tap-stacked im2col slab -> single MXU matmul per tile
#   * fused per-(n, channel) batch statistics (sum / sumsq)
# ---------------------------------------------------------------------------

def _conv_kernel(*refs, num_srcs, prescale, tap_starts, tile_m, num_tiles):
    S = num_srcs
    TM = tile_m
    idx = 0
    new_refs, first_refs = [], []
    for _ in range(S):
        new_refs.append(refs[idx]); first_refs.append(refs[idx + 1]); idx += 2
    scale_refs = [None] * S
    shift_refs = [None] * S
    for s in range(S):
        if prescale[s]:
            scale_refs[s] = refs[idx]; shift_refs[s] = refs[idx + 1]; idx += 2
    w_ref = refs[idx]
    mask_out_ref, mask_new_ref, mask_first_ref = refs[idx + 1:idx + 4]
    idx += 4
    o_ref, sum_ref, sq_ref = refs[idx:idx + 3]
    idx += 3
    win_refs = list(refs[idx:idx + S])
    slab_ref = refs[idx + S]

    i = pl.program_id(1)

    def load_block(s, src_ref, m_ref):
        x = src_ref[...]
        if prescale[s]:
            # fused BatchNorm-apply + ReLU of the previous layer, re-masked so
            # ring / tail positions stay zero (ring padding for this conv).
            x = jnp.maximum(x * scale_refs[s][...] + shift_refs[s][...], 0.0)
            x = x * m_ref[...]
        return x

    @pl.when(i == 0)
    def _prime():
        sum_ref[...] = jnp.zeros_like(sum_ref)
        sq_ref[...] = jnp.zeros_like(sq_ref)
        for s in range(S):
            c_s = win_refs[s].shape[0]
            win_refs[s][:, 0:TM] = jnp.zeros((c_s, TM), jnp.float32)
            win_refs[s][:, TM:2 * TM] = load_block(s, first_refs[s],
                                                   mask_first_ref)

    @pl.when(i > 0)
    def _shift():
        for s in range(S):
            win_refs[s][:, 0:2 * TM] = win_refs[s][:, TM:3 * TM]

    @pl.when(i + 1 < num_tiles)
    def _append():
        for s in range(S):
            win_refs[s][:, 2 * TM:3 * TM] = load_block(s, new_refs[s],
                                                       mask_new_ref)

    @pl.when(i + 1 >= num_tiles)
    def _append_zeros():
        for s in range(S):
            c_s = win_refs[s].shape[0]
            win_refs[s][:, 2 * TM:3 * TM] = jnp.zeros((c_s, TM), jnp.float32)

    # implicit im2col: pack the 27 lane-shifted views of the window into one
    # slab (rows ordered tap-major, then concat channel) ...
    row = 0
    for start in tap_starts:
        for s in range(S):
            c_s = win_refs[s].shape[0]
            slab_ref[row:row + c_s, :] = win_refs[s][:, start:start + TM]
            row += c_s

    # ... and contract with the stacked weight in a single MXU matmul.
    out = jnp.dot(w_ref[...], slab_ref[...], preferred_element_type=jnp.float32)
    masked = out * mask_out_ref[...]          # zero ring / tail for the stats
    o_ref[...] = masked
    sum_ref[...] += jnp.sum(masked, axis=-1, keepdims=True)
    sq_ref[...] += jnp.sum(masked * masked, axis=-1, keepdims=True)


def conv3x3x3(srcs, weight, mask, prescales, *, tile_m, num_tiles, co,
              tap_starts):
    """srcs:      list of (N, C_s, num_tiles*tile_m) ring-padded flat sources
       weight:    (co, 27*sum(C_s)) stacked as (tap(kd,kh,kw), concat-channel)
       mask:      (1, num_tiles*tile_m); 1 at interior voxels, 0 at ring/tail
       prescales: per source None or (scale, shift) each (C_s, 1) for a fused
                  BN+ReLU of the previous layer while the window is filled.
       Returns (out, sum_n, sumsq_n) with per-n channel stats (N, co, 1)."""
    S = len(srcs)
    N = srcs[0].shape[0]
    c_list = [s_.shape[1] for s_ in srcs]
    kdim = 27 * sum(c_list)
    assert weight.shape == (co, kdim)
    prescale = tuple(p is not None for p in prescales)
    last = num_tiles - 1

    in_specs, args = [], []
    for s in range(S):
        c_s = c_list[s]
        # "new" stream: the single block entering the rolling window this step
        in_specs.append(pl.BlockSpec(
            (None, c_s, tile_m),
            lambda n, i: (n, 0, jnp.minimum(i + 1, last))))
        args.append(srcs[s])
        # "first" stream: block 0, constant index -> DMA'd once per n
        in_specs.append(pl.BlockSpec((None, c_s, tile_m),
                                     lambda n, i: (n, 0, 0)))
        args.append(srcs[s])
    for s in range(S):
        if prescale[s]:
            sc, sh = prescales[s]
            in_specs.append(pl.BlockSpec((c_list[s], 1), lambda n, i: (0, 0)))
            args.append(sc)
            in_specs.append(pl.BlockSpec((c_list[s], 1), lambda n, i: (0, 0)))
            args.append(sh)
    in_specs.append(pl.BlockSpec((co, kdim), lambda n, i: (0, 0)))
    args.append(weight)
    in_specs.append(pl.BlockSpec((1, tile_m), lambda n, i: (0, i)))       # out
    in_specs.append(pl.BlockSpec(
        (1, tile_m), lambda n, i: (0, jnp.minimum(i + 1, last))))         # new
    in_specs.append(pl.BlockSpec((1, tile_m), lambda n, i: (0, 0)))       # first
    args += [mask, mask, mask]

    out_shape = (
        jax.ShapeDtypeStruct((N, co, num_tiles * tile_m), jnp.float32),
        jax.ShapeDtypeStruct((N, co, 1), jnp.float32),
        jax.ShapeDtypeStruct((N, co, 1), jnp.float32),
    )
    out_specs = (
        pl.BlockSpec((None, co, tile_m), lambda n, i: (n, 0, i)),
        pl.BlockSpec((None, co, 1), lambda n, i: (n, 0, 0)),
        pl.BlockSpec((None, co, 1), lambda n, i: (n, 0, 0)),
    )
    scratch = [pltpu.VMEM((c_list[s], 3 * tile_m), jnp.float32)
               for s in range(S)]
    scratch.append(pltpu.VMEM((kdim, tile_m), jnp.float32))

    kernel = functools.partial(_conv_kernel, num_srcs=S, prescale=prescale,
                               tap_starts=tap_starts, tile_m=tile_m,
                               num_tiles=num_tiles)
    return pl.pallas_call(
        kernel,
        out_shape=out_shape,
        grid=(N, num_tiles),
        in_specs=in_specs,
        out_specs=out_specs,
        scratch_shapes=scratch,
        compiler_params=pltpu.CompilerParams(
            dimension_semantics=("parallel", "arbitrary")),
    )(*args)


# ---------------------------------------------------------------------------
# Kernel 3: final BatchNorm-apply (scale*x + shift) + ReLU, lane-dense.
# (Ring positions are stripped by the wrapper slice, so no mask is needed.)
# ---------------------------------------------------------------------------

def _bn_relu_kernel(x_ref, scale_ref, shift_ref, o_ref):
    o_ref[...] = jnp.maximum(x_ref[...] * scale_ref[...] + shift_ref[...], 0.0)


def bn_relu_apply(x, scale, shift, *, tile_m):
    N, C, M = x.shape
    return pl.pallas_call(
        _bn_relu_kernel,
        out_shape=jax.ShapeDtypeStruct((N, C, M), jnp.float32),
        grid=(N, M // tile_m),
        in_specs=[
            pl.BlockSpec((None, C, tile_m), lambda n, i: (n, 0, i)),
            pl.BlockSpec((C, 1), lambda n, i: (0, 0)),
            pl.BlockSpec((C, 1), lambda n, i: (0, 0)),
        ],
        out_specs=pl.BlockSpec((None, C, tile_m), lambda n, i: (n, 0, i)),
        compiler_params=pltpu.CompilerParams(
            dimension_semantics=("parallel", "parallel")),
    )(x, scale, shift)


# ---------------------------------------------------------------------------
# DecoderBlock forward (NCDHW in, NCDHW out)
# ---------------------------------------------------------------------------

def decoder_block_forward(params, inputs, skip, *, eps=1e-5):
    N, Ci, D, H, W = inputs.shape
    Co = params["up_w"].shape[1]
    D2, H2, W2 = 2 * D, 2 * H, 2 * W
    Dp, Hp, Wp = D2 + 2, H2 + 2, W2 + 2
    Lp = Dp * Hp * Wp
    off_base = Hp * Wp + Wp + 1                  # max |tap lane offset|

    tile_m = max(512, _round_up(off_base, 128))
    assert off_base <= tile_m
    num_tiles = -(-Lp // tile_m)
    l_round = num_tiles * tile_m

    # static tap lane offsets inside the 3-block rolling window (kd,kh,kw order)
    tap_starts = [tile_m + (kd - 1) * Hp * Wp + (kh - 1) * Wp + (kw - 1)
                  for kd in range(3) for kh in range(3) for kw in range(3)]

    f32 = jnp.float32
    x = inputs.astype(f32)
    s = skip.astype(f32)

    # ---- up: ConvTranspose3d(k=2,s=2) = lane-dense matmul over (Ci, N*DHW) ---
    m_up = N * D * H * W
    up_tile = next((t for t in (2048, 1024, 512, 256, 128) if m_up % t == 0),
                   m_up)
    w8 = jnp.transpose(params["up_w"].astype(f32), (1, 2, 3, 4, 0)
                       ).reshape(Co * 8, Ci)
    b8 = jnp.repeat(params["up_b"].astype(f32), 8).reshape(Co * 8, 1)
    x2d = jnp.transpose(x, (1, 0, 2, 3, 4)).reshape(Ci, m_up)
    y8 = up_matmul(x2d, w8, b8, tile_m=up_tile)
    # pixel shuffle: (Co,2,2,2, N,D,H,W) -> (N, Co, 2D, 2H, 2W)
    # TODO(synk): this transpose and the ring pads below are still XLA glue; a
    # dedicated Pallas layout kernel could emit the padded flat layout directly.
    up = y8.reshape(Co, 2, 2, 2, N, D, H, W)
    up = jnp.transpose(up, (4, 0, 5, 1, 6, 2, 7, 3)).reshape(N, Co, D2, H2, W2)

    # ---- ring-pad + flatten the conv sources (no halo blocks any more) ------
    def to_src(a):                       # (N, C, D2, H2, W2) -> (N, C, l_round)
        a = jnp.pad(a, ((0, 0), (0, 0), (1, 1), (1, 1), (1, 1)))
        a = a.reshape(N, a.shape[1], Lp)
        return jnp.pad(a, ((0, 0), (0, 0), (0, l_round - Lp)))

    up_src = to_src(up)
    skip_src = to_src(s)

    mask = jnp.pad(jnp.ones((D2, H2, W2), f32), ((1, 1), (1, 1), (1, 1)))
    mask = jnp.pad(mask.reshape(1, Lp), ((0, 0), (0, l_round - Lp)))

    def stack_w(w):      # torch (Co, Cin, 3,3,3) -> (Co, 27*Cin), K=(tap, cin)
        co_, cin = w.shape[0], w.shape[1]
        return jnp.transpose(w.astype(f32), (0, 2, 3, 4, 1)).reshape(
            co_, 27 * cin)

    count = float(N * D2 * H2 * W2)

    def bn_affine(sum_n, sq_n, gamma, beta):
        # TODO(synk): E[x^2]-E[x]^2 in f32 can cancel for large |mean|/std; a
        # per-channel shift before the sumsq accumulation would harden this.
        m = jnp.sum(sum_n, axis=0)[:, 0] / count
        q = jnp.sum(sq_n, axis=0)[:, 0] / count
        var = q - m * m                 # biased (training-mode) batch variance
        scale = gamma.astype(f32) * jax.lax.rsqrt(var + eps)
        shift = beta.astype(f32) - m * scale
        return scale.reshape(-1, 1), shift.reshape(-1, 1)

    # ---- conv1 on [up, skip] (no concat materialized) + fused batch stats ----
    # conv biases c1_b / c2_b are dropped: exactly cancelled by batch-stat BN.
    w1 = stack_w(params["c1_w"])
    h1, s1, q1 = conv3x3x3([up_src, skip_src], w1, mask, [None, None],
                           tile_m=tile_m, num_tiles=num_tiles, co=Co,
                           tap_starts=tap_starts)
    sc1, sh1 = bn_affine(s1, q1, params["bn1_g"], params["bn1_b"])

    # ---- conv2: BN1+ReLU fused into the window assembly + fused stats --------
    w2 = stack_w(params["c2_w"])
    h2, s2, q2 = conv3x3x3([h1], w2, mask, [(sc1, sh1)],
                           tile_m=tile_m, num_tiles=num_tiles, co=Co,
                           tap_starts=tap_starts)
    sc2, sh2 = bn_affine(s2, q2, params["bn2_g"], params["bn2_b"])

    # ---- final BN2 + ReLU (lane-dense), then strip the ring padding ----------
    out_flat = bn_relu_apply(h2, sc2, sh2, tile_m=tile_m)
    out = out_flat[:, :, :Lp].reshape(N, Co, Dp, Hp, Wp)
    return out[:, :, 1:1 + D2, 1:1 + H2, 1:1 + W2]


# ---------------------------------------------------------------------------
# Pure-JAX reference (different code path) for sanity checking
# ---------------------------------------------------------------------------

def reference_forward(params, inputs_ncdhw, skip_ncdhw):
    x = jnp.transpose(inputs_ncdhw, (0, 2, 3, 4, 1)).astype(jnp.float32)
    s = jnp.transpose(skip_ncdhw, (0, 2, 3, 4, 1)).astype(jnp.float32)

    wt = params["up_w"]
    N, D, H, W, Ci = x.shape
    Co = wt.shape[1]
    y8 = jnp.einsum("ndhwi,ioabc->ndhwoabc", x, wt)
    y = jnp.transpose(y8, (0, 1, 5, 2, 6, 3, 7, 4)).reshape(
        N, 2 * D, 2 * H, 2 * W, Co)
    y = y + params["up_b"]

    xc = jnp.concatenate([y, s], axis=-1)

    def conv_ref(z, w, b):
        wd = jnp.transpose(w, (2, 3, 4, 1, 0))
        out = jax.lax.conv_general_dilated(
            z, wd, window_strides=(1, 1, 1),
            padding=((1, 1), (1, 1), (1, 1)),
            dimension_numbers=("NDHWC", "DHWIO", "NDHWC"))
        return out + b

    def bn_relu_ref(z, g, be):
        m = jnp.mean(z, axis=(0, 1, 2, 3), keepdims=True)
        v = jnp.mean((z - m) ** 2, axis=(0, 1, 2, 3), keepdims=True)
        return jnp.maximum((z - m) * jax.lax.rsqrt(v + 1e-5) * g + be, 0.0)

    h = bn_relu_ref(conv_ref(xc, params["c1_w"], params["c1_b"]),
                    params["bn1_g"], params["bn1_b"])
    h = bn_relu_ref(conv_ref(h, params["c2_w"], params["c2_b"]),
                    params["bn2_g"], params["bn2_b"])
    return jnp.transpose(h, (0, 4, 1, 2, 3))


# ---------------------------------------------------------------------------
# Main
# ---------------------------------------------------------------------------

if __name__ == "__main__":
    key = jax.random.PRNGKey(0)
    in_c, out_c = 8, 4
    N, D, H, W = 2, 4, 4, 4          # inputs spatial; skip has 2x spatial

    ks = jax.random.split(key, 12)
    params = {
        "up_w": 0.1 * jax.random.normal(ks[0], (in_c, out_c, 2, 2, 2), jnp.float32),
        "up_b": 0.1 * jax.random.normal(ks[1], (out_c,), jnp.float32),
        "c1_w": 0.1 * jax.random.normal(ks[2], (out_c, 2 * out_c, 3, 3, 3), jnp.float32),
        "c1_b": 0.1 * jax.random.normal(ks[3], (out_c,), jnp.float32),
        "bn1_g": 1.0 + 0.1 * jax.random.normal(ks[4], (out_c,), jnp.float32),
        "bn1_b": 0.1 * jax.random.normal(ks[5], (out_c,), jnp.float32),
        "c2_w": 0.1 * jax.random.normal(ks[6], (out_c, out_c, 3, 3, 3), jnp.float32),
        "c2_b": 0.1 * jax.random.normal(ks[7], (out_c,), jnp.float32),
        "bn2_g": 1.0 + 0.1 * jax.random.normal(ks[8], (out_c,), jnp.float32),
        "bn2_b": 0.1 * jax.random.normal(ks[9], (out_c,), jnp.float32),
    }

    inputs = jax.random.normal(ks[10], (N, in_c, D, H, W), jnp.float32)      # NCDHW
    skip = jax.random.normal(ks[11], (N, out_c, 2 * D, 2 * H, 2 * W), jnp.float32)

    out = jax.block_until_ready(jax.jit(decoder_block_forward)(params, inputs, skip))
    assert out.shape == (N, out_c, 2 * D, 2 * H, 2 * W), out.shape

    ref = jax.block_until_ready(jax.jit(reference_forward)(params, inputs, skip))
    err = float(jnp.max(jnp.abs(out - ref)))
    assert jnp.allclose(out, ref, atol=2e-3, rtol=2e-3), err

    print("KERNEL_OK")
</pallas_src>

<mosaic_0001>
module attributes {stable_mosaic.version = 11 : i64} {
  func.func @_up_matmul_kernel(%arg0: i32, %arg1: memref<8x128xf32, #tpu.memory_space<vmem>>, %arg2: memref<32x8xf32, #tpu.memory_space<vmem>>, %arg3: memref<32x1xf32, #tpu.memory_space<vmem>>, %arg4: memref<32x128xf32, #tpu.memory_space<vmem>>) attributes {dimension_semantics = [#tpu.dimension_semantics<parallel>], iteration_bounds = array<i64: 1>, scalar_prefetch = 0 : i64, scratch_operands = 0 : i64, tpu.core_type = #tpu.core_type<tc>, window_params = [{transform_indices = @transform_0, window_bounds = array<i64: 8, 128>}, {pipeline_mode = #tpu.pipeline_mode<synchronous>, transform_indices = @transform_1, window_bounds = array<i64: 32, 8>}, {pipeline_mode = #tpu.pipeline_mode<synchronous>, transform_indices = @transform_2, window_bounds = array<i64: 32, 1>}, {transform_indices = @transform_3, window_bounds = array<i64: 32, 128>}]} {
    %c0 = arith.constant 0 : index
    %c0_0 = arith.constant 0 : index
    %0 = vector.load %arg2[%c0, %c0_0] : memref<32x8xf32, #tpu.memory_space<vmem>>, vector<32x8xf32>
    %c0_1 = arith.constant 0 : index
    %c0_2 = arith.constant 0 : index
    %1 = vector.load %arg1[%c0_1, %c0_2] : memref<8x128xf32, #tpu.memory_space<vmem>>, vector<8x128xf32>
    %cst = arith.constant dense<0.000000e+00> : vector<32x128xf32>
    %2 = tpu.matmul %0, %1, %cst {dimension_numbers = #tpu.dot_dimension_numbers<[1], [0], [0], [1], [0, 0, 1, 1], [], []>} : vector<32x8xf32>, vector<8x128xf32>, vector<32x128xf32> -> vector<32x128xf32>
    %c0_3 = arith.constant 0 : index
    %c0_4 = arith.constant 0 : index
    %3 = vector.load %arg3[%c0_3, %c0_4] : memref<32x1xf32, #tpu.memory_space<vmem>>, vector<32x1xf32>
    %4 = vector.broadcast %3 : vector<32x1xf32> to vector<32x128xf32>
    %5 = arith.addf %2, %4 : vector<32x128xf32>
    %c0_5 = arith.constant 0 : index
    %c0_6 = arith.constant 0 : index
    %6 = vector.load %arg4[%c0_5, %c0_6] : memref<32x128xf32, #tpu.memory_space<vmem>>, vector<32x128xf32>
    tpu.vector_store %arg4[%c0_5, %c0_6], %5 {strides = array<i32>} : memref<32x128xf32, #tpu.memory_space<vmem>>, vector<32x128xf32>,
    return
  }
  func.func @transform_0(%arg0: i32) -> (i32, i32) {
    %c0_i32 = arith.constant 0 : i32
    %c0_i32_0 = arith.constant 0 : i32
    return %c0_i32, %arg0 : i32, i32
  }
  func.func @transform_1(%arg0: i32) -> (i32, i32) {
    %c0_i32 = arith.constant 0 : i32
    %c0_i32_0 = arith.constant 0 : i32
    %c0_i32_1 = arith.constant 0 : i32
    return %c0_i32, %c0_i32_0 : i32, i32
  }
  func.func @transform_2(%arg0: i32) -> (i32, i32) {
    %c0_i32 = arith.constant 0 : i32
    %c0_i32_0 = arith.constant 0 : i32
    %c0_i32_1 = arith.constant 0 : i32
    return %c0_i32, %c0_i32_0 : i32, i32
  }
  func.func @transform_3(%arg0: i32) -> (i32, i32) {
    %c0_i32 = arith.constant 0 : i32
    %c0_i32_0 = arith.constant 0 : i32
    return %c0_i32, %arg0 : i32, i32
  }
}

module attributes {stable_mosaic.version = 11 : i64} {
  func.func @_conv_kernel(%arg0: i32, %arg1: i32, %arg2: memref<1x4x512xf32, #tpu.memory_space<vmem>>, %arg3: memref<1x4x512xf32, #tpu.memory_space<vmem>>, %arg4: memref<1x4x512xf32, #tpu.memory_space<vmem>>, %arg5: memref<1x4x512xf32, #tpu.memory_space<vmem>>, %arg6: memref<4x216xf32, #tpu.memory_space<vmem>>, %arg7: memref<1x512xf32, #tpu.memory_space<vmem>>, %arg8: memref<1x512xf32, #tpu.memory_space<vmem>>, %arg9: memref<1x512xf32, #tpu.memory_space<vmem>>, %arg10: memref<1x4x512xf32, #tpu.memory_space<vmem>>, %arg11: memref<1x4x1xf32, #tpu.memory_space<vmem>>, %arg12: memref<1x4x1xf32, #tpu.memory_space<vmem>>, %arg13: memref<4x1536xf32, #tpu.memory_space<vmem>>, %arg14: memref<4x1536xf32, #tpu.memory_space<vmem>>, %arg15: memref<216x512xf32, #tpu.memory_space<vmem>>) attributes {dimension_semantics = [#tpu.dimension_semantics<parallel>, #tpu.dimension_semantics<arbitrary>], iteration_bounds = array<i64: 2, 2>, scalar_prefetch = 0 : i64, scratch_operands = 3 : i64, tpu.core_type = #tpu.core_type<tc>, window_params = [{transform_indices = @transform_0, window_bounds = array<i64: 1, 4, 512>}, {transform_indices = @transform_1, window_bounds = array<i64: 1, 4, 512>}, {transform_indices = @transform_2, window_bounds = array<i64: 1, 4, 512>}, {transform_indices = @transform_3, window_bounds = array<i64: 1, 4, 512>}, {pipeline_mode = #tpu.pipeline_mode<synchronous>, transform_indices = @transform_4, window_bounds = array<i64: 4, 216>}, {transform_indices = @transform_5, window_bounds = array<i64: 1, 512>}, {transform_indices = @transform_6, window_bounds = array<i64: 1, 512>}, {transform_indices = @transform_7, window_bounds = array<i64: 1, 512>}, {transform_indices = @transform_8, window_bounds = array<i64: 1, 4, 512>}, {transform_indices = @transform_9, window_bounds = array<i64: 1, 4, 1>}, {transform_indices = @transform_10, window_bounds = array<i64: 1, 4, 1>}]} {
    %c0_i32 = arith.constant 0 : i32
    %0 = arith.cmpi eq, %arg1, %c0_i32 : i32
    %1 = arith.extui %0 : i1 to i32
    %c0_i32_0 = arith.constant 0 : i32
    %2 = arith.cmpi ne, %1, %c0_i32_0 : i32
    scf.if %2 {
      %cst_165 = arith.constant 0.000000e+00 : f32
      %148 = vector.broadcast %cst_165 : f32 to vector<4x1xf32>
      %c0_166 = arith.constant 0 : index
      %c0_167 = arith.constant 0 : index
      %c0_168 = arith.constant 0 : index
      %149 = vector.load %arg11[%c0_166, %c0_167, %c0_168] : memref<1x4x1xf32, #tpu.memory_space<vmem>>, vector<1x4x1xf32>
      %150 = vector.shape_cast %149 : vector<1x4x1xf32> to vector<4x1xf32>
      %151 = vector.shape_cast %148 : vector<4x1xf32> to vector<1x4x1xf32>
      tpu.vector_store %arg11[%c0_166, %c0_167, %c0_168], %151 {strides = array<i32>} : memref<1x4x1xf32, #tpu.memory_space<vmem>>, vector<1x4x1xf32>,
      %cst_169 = arith.constant 0.000000e+00 : f32
      %152 = vector.broadcast %cst_169 : f32 to vector<4x1xf32>
      %c0_170 = arith.constant 0 : index
      %c0_171 = arith.constant 0 : index
      %c0_172 = arith.constant 0 : index
      %153 = vector.load %arg12[%c0_170, %c0_171, %c0_172] : memref<1x4x1xf32, #tpu.memory_space<vmem>>, vector<1x4x1xf32>
      %154 = vector.shape_cast %153 : vector<1x4x1xf32> to vector<4x1xf32>
      %155 = vector.shape_cast %152 : vector<4x1xf32> to vector<1x4x1xf32>
      tpu.vector_store %arg12[%c0_170, %c0_171, %c0_172], %155 {strides = array<i32>} : memref<1x4x1xf32, #tpu.memory_space<vmem>>, vector<1x4x1xf32>,
      %cst_173 = arith.constant 0.000000e+00 : f32
      %156 = vector.broadcast %cst_173 : f32 to vector<4x512xf32>
      %c0_174 = arith.constant 0 : index
      %c0_175 = arith.constant 0 : index
      %157 = vector.load %arg13[%c0_174, %c0_175] : memref<4x1536xf32, #tpu.memory_space<vmem>>, vector<4x512xf32>
      tpu.vector_store %arg13[%c0_174, %c0_175], %156 {strides = array<i32>} : memref<4x1536xf32, #tpu.memory_space<vmem>>, vector<4x512xf32>,
      %c0_176 = arith.constant 0 : index
      %c0_177 = arith.constant 0 : index
      %c0_178 = arith.constant 0 : index
      %158 = vector.load %arg3[%c0_176, %c0_177, %c0_178] : memref<1x4x512xf32, #tpu.memory_space<vmem>>, vector<1x4x512xf32>
      %159 = vector.shape_cast %158 : vector<1x4x512xf32> to vector<4x512xf32>
      %c0_179 = arith.constant 0 : index
      %c512_180 = arith.constant 512 : index
      %160 = vector.load %arg13[%c0_179, %c512_180] : memref<4x1536xf32, #tpu.memory_space<vmem>>, vector<4x512xf32>
      tpu.vector_store %arg13[%c0_179, %c512_180], %159 {strides = array<i32>} : memref<4x1536xf32, #tpu.memory_space<vmem>>, vector<4x512xf32>,
      %cst_181 = arith.constant 0.000000e+00 : f32
      %161 = vector.broadcast %cst_181 : f32 to vector<4x512xf32>
      %c0_182 = arith.constant 0 : index
      %c0_183 = arith.constant 0 : index
      %162 = vector.load %arg14[%c0_182, %c0_183] : memref<4x1536xf32, #tpu.memory_space<vmem>>, vector<4x512xf32>
      tpu.vector_store %arg14[%c0_182, %c0_183], %161 {strides = array<i32>} : memref<4x1536xf32, #tpu.memory_space<vmem>>, vector<4x512xf32>,
      %c0_184 = arith.constant 0 : index
      %c0_185 = arith.constant 0 : index
      %c0_186 = arith.constant 0 : index
      %163 = vector.load %arg5[%c0_184, %c0_185, %c0_186] : memref<1x4x512xf32, #tpu.memory_space<vmem>>, vector<1x4x512xf32>
      %164 = vector.shape_cast %163 : vector<1x4x512xf32> to vector<4x512xf32>
      %c0_187 = arith.constant 0 : index
      %c512_188 = arith.constant 512 : index
      %165 = vector.load %arg14[%c0_187, %c512_188] : memref<4x1536xf32, #tpu.memory_space<vmem>>, vector<4x512xf32>
      tpu.vector_store %arg14[%c0_187, %c512_188], %164 {strides = array<i32>} : memref<4x1536xf32, #tpu.memory_space<vmem>>, vector<4x512xf32>,
    } else {
    }
    %c0_i32_1 = arith.constant 0 : i32
    %3 = arith.cmpi sgt, %arg1, %c0_i32_1 : i32
    %4 = arith.extui %3 : i1 to i32
    %c0_i32_2 = arith.constant 0 : i32
    %5 = arith.cmpi ne, %4, %c0_i32_2 : i32
    scf.if %5 {
      %c0_165 = arith.constant 0 : index
      %c512_166 = arith.constant 512 : index
      %148 = vector.load %arg13[%c0_165, %c512_166] : memref<4x1536xf32, #tpu.memory_space<vmem>>, vector<4x1024xf32>
      %c0_167 = arith.constant 0 : index
      %c0_168 = arith.constant 0 : index
      %149 = vector.load %arg13[%c0_167, %c0_168] : memref<4x1536xf32, #tpu.memory_space<vmem>>, vector<4x1024xf32>
      tpu.vector_store %arg13[%c0_167, %c0_168], %148 {strides = array<i32>} : memref<4x1536xf32, #tpu.memory_space<vmem>>, vector<4x1024xf32>,
      %c0_169 = arith.constant 0 : index
      %c512_170 = arith.constant 512 : index
      %150 = vector.load %arg14[%c0_169, %c512_170] : memref<4x1536xf32, #tpu.memory_space<vmem>>, vector<4x1024xf32>
      %c0_171 = arith.constant 0 : index
      %c0_172 = arith.constant 0 : index
      %151 = vector.load %arg14[%c0_171, %c0_172] : memref<4x1536xf32, #tpu.memory_space<vmem>>, vector<4x1024xf32>
      tpu.vector_store %arg14[%c0_171, %c0_172], %150 {strides = array<i32>} : memref<4x1536xf32, #tpu.memory_space<vmem>>, vector<4x1024xf32>,
    } else {
    }
    %c1_i32 = arith.constant 1 : i32
    %6 = arith.addi %arg1, %c1_i32 : i32
    %c2_i32 = arith.constant 2 : i32
    %7 = arith.cmpi slt, %6, %c2_i32 : i32
    %8 = arith.extui %7 : i1 to i32
    %c0_i32_3 = arith.constant 0 : i32
    %9 = arith.cmpi ne, %8, %c0_i32_3 : i32
    scf.if %9 {
      %c0_165 = arith.constant 0 : index
      %c0_166 = arith.constant 0 : index
      %c0_167 = arith.constant 0 : index
      %148 = vector.load %arg2[%c0_165, %c0_166, %c0_167] : memref<1x4x512xf32, #tpu.memory_space<vmem>>, vector<1x4x512xf32>
      %149 = vector.shape_cast %148 : vector<1x4x512xf32> to vector<4x512xf32>
      %c0_168 = arith.constant 0 : index
      %c1024 = arith.constant 1024 : index
      %150 = vector.load %arg13[%c0_168, %c1024] : memref<4x1536xf32, #tpu.memory_space<vmem>>, vector<4x512xf32>
      tpu.vector_store %arg13[%c0_168, %c1024], %149 {strides = array<i32>} : memref<4x1536xf32, #tpu.memory_space<vmem>>, vector<4x512xf32>,
      %c0_169 = arith.constant 0 : index
      %c0_170 = arith.constant 0 : index
      %c0_171 = arith.constant 0 : index
      %151 = vector.load %arg4[%c0_169, %c0_170, %c0_171] : memref<1x4x512xf32, #tpu.memory_space<vmem>>, vector<1x4x512xf32>
      %152 = vector.shape_cast %151 : vector<1x4x512xf32> to vector<4x512xf32>
      %c0_172 = arith.constant 0 : index
      %c1024_173 = arith.constant 1024 : index
      %153 = vector.load %arg14[%c0_172, %c1024_173] : memref<4x1536xf32, #tpu.memory_space<vmem>>, vector<4x512xf32>
      tpu.vector_store %arg14[%c0_172, %c1024_173], %152 {strides = array<i32>} : memref<4x1536xf32, #tpu.memory_space<vmem>>, vector<4x512xf32>,
    } else {
    }
    %c1_i32_4 = arith.constant 1 : i32
    %10 = arith.addi %arg1, %c1_i32_4 : i32
    %c2_i32_5 = arith.constant 2 : i32
    %11 = arith.cmpi sge, %10, %c2_i32_5 : i32
    %12 = arith.extui %11 : i1 to i32
    %c0_i32_6 = arith.constant 0 : i32
    %13 = arith.cmpi ne, %12, %c0_i32_6 : i32
    scf.if %13 {
      %cst_165 = arith.constant 0.000000e+00 : f32
      %148 = vector.broadcast %cst_165 : f32 to vector<4x512xf32>
      %c0_166 = arith.constant 0 : index
      %c1024 = arith.constant 1024 : index
      %149 = vector.load %arg13[%c0_166, %c1024] : memref<4x1536xf32, #tpu.memory_space<vmem>>, vector<4x512xf32>
      tpu.vector_store %arg13[%c0_166, %c1024], %148 {strides = array<i32>} : memref<4x1536xf32, #tpu.memory_space<vmem>>, vector<4x512xf32>,
      %cst_167 = arith.constant 0.000000e+00 : f32
      %150 = vector.broadcast %cst_167 : f32 to vector<4x512xf32>
      %c0_168 = arith.constant 0 : index
      %c1024_169 = arith.constant 1024 : index
      %151 = vector.load %arg14[%c0_168, %c1024_169] : memref<4x1536xf32, #tpu.memory_space<vmem>>, vector<4x512xf32>
      tpu.vector_store %arg14[%c0_168, %c1024_169], %150 {strides = array<i32>} : memref<4x1536xf32, #tpu.memory_space<vmem>>, vector<4x512xf32>,
    } else {
    }
    %c0 = arith.constant 0 : index
    %c401 = arith.constant 401 : index
    %14 = vector.load %arg13[%c0, %c401] : memref<4x1536xf32, #tpu.memory_space<vmem>>, vector<4x512xf32>
    %c0_7 = arith.constant 0 : index
    %c0_8 = arith.constant 0 : index
    %15 = vector.load %arg15[%c0_7, %c0_8] : memref<216x512xf32, #tpu.memory_space<vmem>>, vector<4x512xf32>
    tpu.vector_store %arg15[%c0_7, %c0_8], %14 {strides = array<i32>} : memref<216x512xf32, #tpu.memory_space<vmem>>, vector<4x512xf32>,
    %c0_9 = arith.constant 0 : index
    %c401_10 = arith.constant 401 : index
    %16 = vector.load %arg14[%c0_9, %c401_10] : memref<4x1536xf32, #tpu.memory_space<vmem>>, vector<4x512xf32>
    %c4 = arith.constant 4 : index
    %c0_11 = arith.constant 0 : index
    %17 = vector.load %arg15[%c4, %c0_11] : memref<216x512xf32, #tpu.memory_space<vmem>>, vector<4x512xf32>
    tpu.vector_store %arg15[%c4, %c0_11], %16 {strides = array<i32>} : memref<216x512xf32, #tpu.memory_space<vmem>>, vector<4x512xf32>,
    %c0_12 = arith.constant 0 : index
    %c402 = arith.constant 402 : index
    %18 = vector.load %arg13[%c0_12, %c402] : memref<4x1536xf32, #tpu.memory_space<vmem>>, vector<4x512xf32>
    %c8 = arith.constant 8 : index
    %c0_13 = arith.constant 0 : index
    %19 = vector.load %arg15[%c8, %c0_13] : memref<216x512xf32, #tpu.memory_space<vmem>>, vector<4x512xf32>
    tpu.vector_store %arg15[%c8, %c0_13], %18 {strides = array<i32>} : memref<216x512xf32, #tpu.memory_space<vmem>>, vector<4x512xf32>,
    %c0_14 = arith.constant 0 : index
    %c402_15 = arith.constant 402 : index
    %20 = vector.load %arg14[%c0_14, %c402_15] : memref<4x1536xf32, #tpu.memory_space<vmem>>, vector<4x512xf32>
    %c12 = arith.constant 12 : index
    %c0_16 = arith.constant 0 : index
    %21 = vector.load %arg15[%c12, %c0_16] : memref<216x512xf32, #tpu.memory_space<vmem>>, vector<4x512xf32>
    tpu.vector_store %arg15[%c12, %c0_16], %20 {strides = array<i32>} : memref<216x512xf32, #tpu.memory_space<vmem>>, vector<4x512xf32>,
    %c0_17 = arith.constant 0 : index
    %c403 = arith.constant 403 : index
    %22 = vector.load %arg13[%c0_17, %c403] : memref<4x1536xf32, #tpu.memory_space<vmem>>, vector<4x512xf32>
    %c16 = arith.constant 16 : index
    %c0_18 = arith.constant 0 : index
    %23 = vector.load %arg15[%c16, %c0_18] : memref<216x512xf32, #tpu.memory_space<vmem>>, vector<4x512xf32>
    tpu.vector_store %arg15[%c16, %c0_18], %22 {strides = array<i32>} : memref<216x512xf32, #tpu.memory_space<vmem>>, vector<4x512xf32>,
    %c0_19 = arith.constant 0 : index
    %c403_20 = arith.constant 403 : index
    %24 = vector.load %arg14[%c0_19, %c403_20] : memref<4x1536xf32, #tpu.memory_space<vmem>>, vector<4x512xf32>
    %c20 = arith.constant 20 : index
    %c0_21 = arith.constant 0 : index
    %25 = vector.load %arg15[%c20, %c0_21] : memref<216x512xf32, #tpu.memory_space<vmem>>, vector<4x512xf32>
    tpu.vector_store %arg15[%c20, %c0_21], %24 {strides = array<i32>} : memref<216x512xf32, #tpu.memory_space<vmem>>, vector<4x512xf32>,
    %c0_22 = arith.constant 0 : index
    %c411 = arith.constant 411 : index
    %26 = vector.load %arg13[%c0_22, %c411] : memref<4x1536xf32, #tpu.memory_space<vmem>>, vector<4x512xf32>
    %c24 = arith.constant 24 : index
    %c0_23 = arith.constant 0 : index
    %27 = vector.load %arg15[%c24, %c0_23] : memref<216x512xf32, #tpu.memory_space<vmem>>, vector<4x512xf32>
    tpu.vector_store %arg15[%c24, %c0_23], %26 {strides = array<i32>} : memref<216x512xf32, #tpu.memory_space<vmem>>, vector<4x512xf32>,
    %c0_24 = arith.constant 0 : index
    %c411_25 = arith.constant 411 : index
    %28 = vector.load %arg14[%c0_24, %c411_25] : memref<4x1536xf32, #tpu.memory_space<vmem>>, vector<4x512xf32>
    %c28 = arith.constant 28 : index
    %c0_26 = arith.constant 0 : index
    %29 = vector.load %arg15[%c28, %c0_26] : memref<216x512xf32, #tpu.memory_space<vmem>>, vector<4x512xf32>
    tpu.vector_store %arg15[%c28, %c0_26], %28 {strides = array<i32>} : memref<216x512xf32, #tpu.memory_space<vmem>>, vector<4x512xf32>,
    %c0_27 = arith.constant 0 : index
    %c412 = arith.constant 412 : index
    %30 = vector.load %arg13[%c0_27, %c412] : memref<4x1536xf32, #tpu.memory_space<vmem>>, vector<4x512xf32>
    %c32 = arith.constant 32 : index
    %c0_28 = arith.constant 0 : index
    %31 = vector.load %arg15[%c32, %c0_28] : memref<216x512xf32, #tpu.memory_space<vmem>>, vector<4x512xf32>
    tpu.vector_store %arg15[%c32, %c0_28], %30 {strides = array<i32>} : memref<216x512xf32, #tpu.memory_space<vmem>>, vector<4x512xf32>,
    %c0_29 = arith.constant 0 : index
    %c412_30 = arith.constant 412 : index
    %32 = vector.load %arg14[%c0_29, %c412_30] : memref<4x1536xf32, #tpu.memory_space<vmem>>, vector<4x512xf32>
    %c36 = arith.constant 36 : index
    %c0_31 = arith.constant 0 : index
    %33 = vector.load %arg15[%c36, %c0_31] : memref<216x512xf32, #tpu.memory_space<vmem>>, vector<4x512xf32>
    tpu.vector_store %arg15[%c36, %c0_31], %32 {strides = array<i32>} : memref<216x512xf32, #tpu.memory_space<vmem>>, vector<4x512xf32>,
    %c0_32 = arith.constant 0 : index
    %c413 = arith.constant 413 : index
    %34 = vector.load %arg13[%c0_32, %c413] : memref<4x1536xf32, #tpu.memory_space<vmem>>, vector<4x512xf32>
    %c40 = arith.constant 40 : index
    %c0_33 = arith.constant 0 : index
    %35 = vector.load %arg15[%c40, %c0_33] : memref<216x512xf32, #tpu.memory_space<vmem>>, vector<4x512xf32>
    tpu.vector_store %arg15[%c40, %c0_33], %34 {strides = array<i32>} : memref<216x512xf32, #tpu.memory_space<vmem>>, vector<4x512xf32>,
    %c0_34 = arith.constant 0 : index
    %c413_35 = arith.constant 413 : index
    %36 = vector.load %arg14[%c0_34, %c413_35] : memref<4x1536xf32, #tpu.memory_space<vmem>>, vector<4x512xf32>
    %c44 = arith.constant 44 : index
    %c0_36 = arith.constant 0 : index
    %37 = vector.load %arg15[%c44, %c0_36] : memref<216x512xf32, #tpu.memory_space<vmem>>, vector<4x512xf32>
    tpu.vector_store %arg15[%c44, %c0_36], %36 {strides = array<i32>} : memref<216x512xf32, #tpu.memory_space<vmem>>, vector<4x512xf32>,
    %c0_37 = arith.constant 0 : index
    %c421 = arith.constant 421 : index
    %38 = vector.load %arg13[%c0_37, %c421] : memref<4x1536xf32, #tpu.memory_space<vmem>>, vector<4x512xf32>
    %c48 = arith.constant 48 : index
    %c0_38 = arith.constant 0 : index
    %39 = vector.load %arg15[%c48, %c0_38] : memref<216x512xf32, #tpu.memory_space<vmem>>, vector<4x512xf32>
    tpu.vector_store %arg15[%c48, %c0_38], %38 {strides = array<i32>} : memref<216x512xf32, #tpu.memory_space<vmem>>, vector<4x512xf32>,
    %c0_39 = arith.constant 0 : index
    %c421_40 = arith.constant 421 : index
    %40 = vector.load %arg14[%c0_39, %c421_40] : memref<4x1536xf32, #tpu.memory_space<vmem>>, vector<4x512xf32>
    %c52 = arith.constant 52 : index
    %c0_41 = arith.constant 0 : index
    %41 = vector.load %arg15[%c52, %c0_41] : memref<216x512xf32, #tpu.memory_space<vmem>>, vector<4x512xf32>
    tpu.vector_store %arg15[%c52, %c0_41], %40 {strides = array<i32>} : memref<216x512xf32, #tpu.memory_space<vmem>>, vector<4x512xf32>,
    %c0_42 = arith.constant 0 : index
    %c422 = arith.constant 422 : index
    %42 = vector.load %arg13[%c0_42, %c422] : memref<4x1536xf32, #tpu.memory_space<vmem>>, vector<4x512xf32>
    %c56 = arith.constant 56 : index
    %c0_43 = arith.constant 0 : index
    %43 = vector.load %arg15[%c56, %c0_43] : memref<216x512xf32, #tpu.memory_space<vmem>>, vector<4x512xf32>
    tpu.vector_store %arg15[%c56, %c0_43], %42 {strides = array<i32>} : memref<216x512xf32, #tpu.memory_space<vmem>>, vector<4x512xf32>,
    %c0_44 = arith.constant 0 : index
    %c422_45 = arith.constant 422 : index
    %44 = vector.load %arg14[%c0_44, %c422_45] : memref<4x1536xf32, #tpu.memory_space<vmem>>, vector<4x512xf32>
    %c60 = arith.constant 60 : index
    %c0_46 = arith.constant 0 : index
    %45 = vector.load %arg15[%c60, %c0_46] : memref<216x512xf32, #tpu.memory_space<vmem>>, vector<4x512xf32>
    tpu.vector_store %arg15[%c60, %c0_46], %44 {strides = array<i32>} : memref<216x512xf32, #tpu.memory_space<vmem>>, vector<4x512xf32>,
    %c0_47 = arith.constant 0 : index
    %c423 = arith.constant 423 : index
    %46 = vector.load %arg13[%c0_47, %c423] : memref<4x1536xf32, #tpu.memory_space<vmem>>, vector<4x512xf32>
    %c64 = arith.constant 64 : index
    %c0_48 = arith.constant 0 : index
    %47 = vector.load %arg15[%c64, %c0_48] : memref<216x512xf32, #tpu.memory_space<vmem>>, vector<4x512xf32>
    tpu.vector_store %arg15[%c64, %c0_48], %46 {strides = array<i32>} : memref<216x512xf32, #tpu.memory_space<vmem>>, vector<4x512xf32>,
    %c0_49 = arith.constant 0 : index
    %c423_50 = arith.constant 423 : index
    %48 = vector.load %arg14[%c0_49, %c423_50] : memref<4x1536xf32, #tpu.memory_space<vmem>>, vector<4x512xf32>
    %c68 = arith.constant 68 : index
    %c0_51 = arith.constant 0 : index
    %49 = vector.load %arg15[%c68, %c0_51] : memref<216x512xf32, #tpu.memory_space<vmem>>, vector<4x512xf32>
    tpu.vector_store %arg15[%c68, %c0_51], %48 {strides = array<i32>} : memref<216x512xf32, #tpu.memory_space<vmem>>, vector<4x512xf32>,
    %c0_52 = arith.constant 0 : index
    %c501 = arith.constant 501 : index
    %50 = vector.load %arg13[%c0_52, %c501] : memref<4x1536xf32, #tpu.memory_space<vmem>>, vector<4x512xf32>
    %c72 = arith.constant 72 : index
    %c0_53 = arith.constant 0 : index
    %51 = vector.load %arg15[%c72, %c0_53] : memref<216x512xf32, #tpu.memory_space<vmem>>, vector<4x512xf32>
    tpu.vector_store %arg15[%c72, %c0_53], %50 {strides = array<i32>} : memref<216x512xf32, #tpu.memory_space<vmem>>, vector<4x512xf32>,
    %c0_54 = arith.constant 0 : index
    %c501_55 = arith.constant 501 : index
    %52 = vector.load %arg14[%c0_54, %c501_55] : memref<4x1536xf32, #tpu.memory_space<vmem>>, vector<4x512xf32>
    %c76 = arith.constant 76 : index
    %c0_56 = arith.constant 0 : index
    %53 = vector.load %arg15[%c76, %c0_56] : memref<216x512xf32, #tpu.memory_space<vmem>>, vector<4x512xf32>
    tpu.vector_store %arg15[%c76, %c0_56], %52 {strides = array<i32>} : memref<216x512xf32, #tpu.memory_space<vmem>>, vector<4x512xf32>,
    %c0_57 = arith.constant 0 : index
    %c502 = arith.constant 502 : index
    %54 = vector.load %arg13[%c0_57, %c502] : memref<4x1536xf32, #tpu.memory_space<vmem>>, vector<4x512xf32>
    %c80 = arith.constant 80 : index
    %c0_58 = arith.constant 0 : index
    %55 = vector.load %arg15[%c80, %c0_58] : memref<216x512xf32, #tpu.memory_space<vmem>>, vector<4x512xf32>
    tpu.vector_store %arg15[%c80, %c0_58], %54 {strides = array<i32>} : memref<216x512xf32, #tpu.memory_space<vmem>>, vector<4x512xf32>,
    %c0_59 = arith.constant 0 : index
    %c502_60 = arith.constant 502 : index
    %56 = vector.load %arg14[%c0_59, %c502_60] : memref<4x1536xf32, #tpu.memory_space<vmem>>, vector<4x512xf32>
    %c84 = arith.constant 84 : index
    %c0_61 = arith.constant 0 : index
    %57 = vector.load %arg15[%c84, %c0_61] : memref<216x512xf32, #tpu.memory_space<vmem>>, vector<4x512xf32>
    tpu.vector_store %arg15[%c84, %c0_61], %56 {strides = array<i32>} : memref<216x512xf32, #tpu.memory_space<vmem>>, vector<4x512xf32>,
    %c0_62 = arith.constant 0 : index
    %c503 = arith.constant 503 : index
    %58 = vector.load %arg13[%c0_62, %c503] : memref<4x1536xf32, #tpu.memory_space<vmem>>, vector<4x512xf32>
    %c88 = arith.constant 88 : index
    %c0_63 = arith.constant 0 : index
    %59 = vector.load %arg15[%c88, %c0_63] : memref<216x512xf32, #tpu.memory_space<vmem>>, vector<4x512xf32>
    tpu.vector_store %arg15[%c88, %c0_63], %58 {strides = array<i32>} : memref<216x512xf32, #tpu.memory_space<vmem>>, vector<4x512xf32>,
    %c0_64 = arith.constant 0 : index
    %c503_65 = arith.constant 503 : index
    %60 = vector.load %arg14[%c0_64, %c503_65] : memref<4x1536xf32, #tpu.memory_space<vmem>>, vector<4x512xf32>
    %c92 = arith.constant 92 : index
    %c0_66 = arith.constant 0 : index
    %61 = vector.load %arg15[%c92, %c0_66] : memref<216x512xf32, #tpu.memory_space<vmem>>, vector<4x512xf32>
    tpu.vector_store %arg15[%c92, %c0_66], %60 {strides = array<i32>} : memref<216x512xf32, #tpu.memory_space<vmem>>, vector<4x512xf32>,
    %c0_67 = arith.constant 0 : index
    %c511 = arith.constant 511 : index
    %62 = vector.load %arg13[%c0_67, %c511] : memref<4x1536xf32, #tpu.memory_space<vmem>>, vector<4x512xf32>
    %c96 = arith.constant 96 : index
    %c0_68 = arith.constant 0 : index
    %63 = vector.load %arg15[%c96, %c0_68] : memref<216x512xf32, #tpu.memory_space<vmem>>, vector<4x512xf32>
    tpu.vector_store %arg15[%c96, %c0_68], %62 {strides = array<i32>} : memref<216x512xf32, #tpu.memory_space<vmem>>, vector<4x512xf32>,
    %c0_69 = arith.constant 0 : index
    %c511_70 = arith.constant 511 : index
    %64 = vector.load %arg14[%c0_69, %c511_70] : memref<4x1536xf32, #tpu.memory_space<vmem>>, vector<4x512xf32>
    %c100 = arith.constant 100 : index
    %c0_71 = arith.constant 0 : index
    %65 = vector.load %arg15[%c100, %c0_71] : memref<216x512xf32, #tpu.memory_space<vmem>>, vector<4x512xf32>
    tpu.vector_store %arg15[%c100, %c0_71], %64 {strides = array<i32>} : memref<216x512xf32, #tpu.memory_space<vmem>>, vector<4x512xf32>,
    %c0_72 = arith.constant 0 : index
    %c512 = arith.constant 512 : index
    %66 = vector.load %arg13[%c0_72, %c512] : memref<4x1536xf32, #tpu.memory_space<vmem>>, vector<4x512xf32>
    %c104 = arith.constant 104 : index
    %c0_73 = arith.constant 0 : index
    %67 = vector.load %arg15[%c104, %c0_73] : memref<216x512xf32, #tpu.memory_space<vmem>>, vector<4x512xf32>
    tpu.vector_store %arg15[%c104, %c0_73], %66 {strides = array<i32>} : memref<216x512xf32, #tpu.memory_space<vmem>>, vector<4x512xf32>,
    %c0_74 = arith.constant 0 : index
    %c512_75 = arith.constant 512 : index
    %68 = vector.load %arg14[%c0_74, %c512_75] : memref<4x1536xf32, #tpu.memory_space<vmem>>, vector<4x512xf32>
    %c108 = arith.constant 108 : index
    %c0_76 = arith.constant 0 : index
    %69 = vector.load %arg15[%c108, %c0_76] : memref<216x512xf32, #tpu.memory_space<vmem>>, vector<4x512xf32>
    tpu.vector_store %arg15[%c108, %c0_76], %68 {strides = array<i32>} : memref<216x512xf32, #tpu.memory_space<vmem>>, vector<4x512xf32>,
    %c0_77 = arith.constant 0 : index
    %c513 = arith.constant 513 : index
    %70 = vector.load %arg13[%c0_77, %c513] : memref<4x1536xf32, #tpu.memory_space<vmem>>, vector<4x512xf32>
    %c112 = arith.constant 112 : index
    %c0_78 = arith.constant 0 : index
    %71 = vector.load %arg15[%c112, %c0_78] : memref<216x512xf32, #tpu.memory_space<vmem>>, vector<4x512xf32>
    tpu.vector_store %arg15[%c112, %c0_78], %70 {strides = array<i32>} : memref<216x512xf32, #tpu.memory_space<vmem>>, vector<4x512xf32>,
    %c0_79 = arith.constant 0 : index
    %c513_80 = arith.constant 513 : index
    %72 = vector.load %arg14[%c0_79, %c513_80] : memref<4x1536xf32, #tpu.memory_space<vmem>>, vector<4x512xf32>
    %c116 = arith.constant 116 : index
    %c0_81 = arith.constant 0 : index
    %73 = vector.load %arg15[%c116, %c0_81] : memref<216x512xf32, #tpu.memory_space<vmem>>, vector<4x512xf32>
    tpu.vector_store %arg15[%c116, %c0_81], %72 {strides = array<i32>} : memref<216x512xf32, #tpu.memory_space<vmem>>, vector<4x512xf32>,
    %c0_82 = arith.constant 0 : index
    %c521 = arith.constant 521 : index
    %74 = vector.load %arg13[%c0_82, %c521] : memref<4x1536xf32, #tpu.memory_space<vmem>>, vector<4x512xf32>
    %c120 = arith.constant 120 : index
    %c0_83 = arith.constant 0 : index
    %75 = vector.load %arg15[%c120, %c0_83] : memref<216x512xf32, #tpu.memory_space<vmem>>, vector<4x512xf32>
    tpu.vector_store %arg15[%c120, %c0_83], %74 {strides = array<i32>} : memref<216x512xf32, #tpu.memory_space<vmem>>, vector<4x512xf32>,
    %c0_84 = arith.constant 0 : index
    %c521_85 = arith.constant 521 : index
    %76 = vector.load %arg14[%c0_84, %c521_85] : memref<4x1536xf32, #tpu.memory_space<vmem>>, vector<4x512xf32>
    %c124 = arith.constant 124 : index
    %c0_86 = arith.constant 0 : index
    %77 = vector.load %arg15[%c124, %c0_86] : memref<216x512xf32, #tpu.memory_space<vmem>>, vector<4x512xf32>
    tpu.vector_store %arg15[%c124, %c0_86], %76 {strides = array<i32>} : memref<216x512xf32, #tpu.memory_space<vmem>>, vector<4x512xf32>,
    %c0_87 = arith.constant 0 : index
    %c522 = arith.constant 522 : index
    %78 = vector.load %arg13[%c0_87, %c522] : memref<4x1536xf32, #tpu.memory_space<vmem>>, vector<4x512xf32>
    %c128 = arith.constant 128 : index
    %c0_88 = arith.constant 0 : index
    %79 = vector.load %arg15[%c128, %c0_88] : memref<216x512xf32, #tpu.memory_space<vmem>>, vector<4x512xf32>
    tpu.vector_store %arg15[%c128, %c0_88], %78 {strides = array<i32>} : memref<216x512xf32, #tpu.memory_space<vmem>>, vector<4x512xf32>,
    %c0_89 = arith.constant 0 : index
    %c522_90 = arith.constant 522 : index
    %80 = vector.load %arg14[%c0_89, %c522_90] : memref<4x1536xf32, #tpu.memory_space<vmem>>, vector<4x512xf32>
    %c132 = arith.constant 132 : index
    %c0_91 = arith.constant 0 : index
    %81 = vector.load %arg15[%c132, %c0_91] : memref<216x512xf32, #tpu.memory_space<vmem>>, vector<4x512xf32>
    tpu.vector_store %arg15[%c132, %c0_91], %80 {strides = array<i32>} : memref<216x512xf32, #tpu.memory_space<vmem>>, vector<4x512xf32>,
    %c0_92 = arith.constant 0 : index
    %c523 = arith.constant 523 : index
    %82 = vector.load %arg13[%c0_92, %c523] : memref<4x1536xf32, #tpu.memory_space<vmem>>, vector<4x512xf32>
    %c136 = arith.constant 136 : index
    %c0_93 = arith.constant 0 : index
    %83 = vector.load %arg15[%c136, %c0_93] : memref<216x512xf32, #tpu.memory_space<vmem>>, vector<4x512xf32>
    tpu.vector_store %arg15[%c136, %c0_93], %82 {strides = array<i32>} : memref<216x512xf32, #tpu.memory_space<vmem>>, vector<4x512xf32>,
    %c0_94 = arith.constant 0 : index
    %c523_95 = arith.constant 523 : index
    %84 = vector.load %arg14[%c0_94, %c523_95] : memref<4x1536xf32, #tpu.memory_space<vmem>>, vector<4x512xf32>
    %c140 = arith.constant 140 : index
    %c0_96 = arith.constant 0 : index
    %85 = vector.load %arg15[%c140, %c0_96] : memref<216x512xf32, #tpu.memory_space<vmem>>, vector<4x512xf32>
    tpu.vector_store %arg15[%c140, %c0_96], %84 {strides = array<i32>} : memref<216x512xf32, #tpu.memory_space<vmem>>, vector<4x512xf32>,
    %c0_97 = arith.constant 0 : index
    %c601 = arith.constant 601 : index
    %86 = vector.load %arg13[%c0_97, %c601] : memref<4x1536xf32, #tpu.memory_space<vmem>>, vector<4x512xf32>
    %c144 = arith.constant 144 : index
    %c0_98 = arith.constant 0 : index
    %87 = vector.load %arg15[%c144, %c0_98] : memref<216x512xf32, #tpu.memory_space<vmem>>, vector<4x512xf32>
    tpu.vector_store %arg15[%c144, %c0_98], %86 {strides = array<i32>} : memref<216x512xf32, #tpu.memory_space<vmem>>, vector<4x512xf32>,
    %c0_99 = arith.constant 0 : index
    %c601_100 = arith.constant 601 : index
    %88 = vector.load %arg14[%c0_99, %c601_100] : memref<4x1536xf32, #tpu.memory_space<vmem>>, vector<4x512xf32>
    %c148 = arith.constant 148 : index
    %c0_101 = arith.constant 0 : index
    %89 = vector.load %arg15[%c148, %c0_101] : memref<216x512xf32, #tpu.memory_space<vmem>>, vector<4x512xf32>
    tpu.vector_store %arg15[%c148, %c0_101], %88 {strides = array<i32>} : memref<216x512xf32, #tpu.memory_space<vmem>>, vector<4x512xf32>,
    %c0_102 = arith.constant 0 : index
    %c602 = arith.constant 602 : index
    %90 = vector.load %arg13[%c0_102, %c602] : memref<4x1536xf32, #tpu.memory_space<vmem>>, vector<4x512xf32>
    %c152 = arith.constant 152 : index
    %c0_103 = arith.constant 0 : index
    %91 = vector.load %arg15[%c152, %c0_103] : memref<216x512xf32, #tpu.memory_space<vmem>>, vector<4x512xf32>
    tpu.vector_store %arg15[%c152, %c0_103], %90 {strides = array<i32>} : memref<216x512xf32, #tpu.memory_space<vmem>>, vector<4x512xf32>,
    %c0_104 = arith.constant 0 : index
    %c602_105 = arith.constant 602 : index
    %92 = vector.load %arg14[%c0_104, %c602_105] : memref<4x1536xf32, #tpu.memory_space<vmem>>, vector<4x512xf32>
    %c156 = arith.constant 156 : index
    %c0_106 = arith.constant 0 : index
    %93 = vector.load %arg15[%c156, %c0_106] : memref<216x512xf32, #tpu.memory_space<vmem>>, vector<4x512xf32>
    tpu.vector_store %arg15[%c156, %c0_106], %92 {strides = array<i32>} : memref<216x512xf32, #tpu.memory_space<vmem>>, vector<4x512xf32>,
    %c0_107 = arith.constant 0 : index
    %c603 = arith.constant 603 : index
    %94 = vector.load %arg13[%c0_107, %c603] : memref<4x1536xf32, #tpu.memory_space<vmem>>, vector<4x512xf32>
    %c160 = arith.constant 160 : index
    %c0_108 = arith.constant 0 : index
    %95 = vector.load %arg15[%c160, %c0_108] : memref<216x512xf32, #tpu.memory_space<vmem>>, vector<4x512xf32>
    tpu.vector_store %arg15[%c160, %c0_108], %94 {strides = array<i32>} : memref<216x512xf32, #tpu.memory_space<vmem>>, vector<4x512xf32>,
    %c0_109 = arith.constant 0 : index
    %c603_110 = arith.constant 603 : index
    %96 = vector.load %arg14[%c0_109, %c603_110] : memref<4x1536xf32, #tpu.memory_space<vmem>>, vector<4x512xf32>
    %c164 = arith.constant 164 : index
    %c0_111 = arith.constant 0 : index
    %97 = vector.load %arg15[%c164, %c0_111] : memref<216x512xf32, #tpu.memory_space<vmem>>, vector<4x512xf32>
    tpu.vector_store %arg15[%c164, %c0_111], %96 {strides = array<i32>} : memref<216x512xf32, #tpu.memory_space<vmem>>, vector<4x512xf32>,
    %c0_112 = arith.constant 0 : index
    %c611 = arith.constant 611 : index
    %98 = vector.load %arg13[%c0_112, %c611] : memref<4x1536xf32, #tpu.memory_space<vmem>>, vector<4x512xf32>
    %c168 = arith.constant 168 : index
    %c0_113 = arith.constant 0 : index
    %99 = vector.load %arg15[%c168, %c0_113] : memref<216x512xf32, #tpu.memory_space<vmem>>, vector<4x512xf32>
    tpu.vector_store %arg15[%c168, %c0_113], %98 {strides = array<i32>} : memref<216x512xf32, #tpu.memory_space<vmem>>, vector<4x512xf32>,
    %c0_114 = arith.constant 0 : index
    %c611_115 = arith.constant 611 : index
    %100 = vector.load %arg14[%c0_114, %c611_115] : memref<4x1536xf32, #tpu.memory_space<vmem>>, vector<4x512xf32>
    %c172 = arith.constant 172 : index
    %c0_116 = arith.constant 0 : index
    %101 = vector.load %arg15[%c172, %c0_116] : memref<216x512xf32, #tpu.memory_space<vmem>>, vector<4x512xf32>
    tpu.vector_store %arg15[%c172, %c0_116], %100 {strides = array<i32>} : memref<216x512xf32, #tpu.memory_space<vmem>>, vector<4x512xf32>,
    %c0_117 = arith.constant 0 : index
    %c612 = arith.constant 612 : index
    %102 = vector.load %arg13[%c0_117, %c612] : memref<4x1536xf32, #tpu.memory_space<vmem>>, vector<4x512xf32>
    %c176 = arith.constant 176 : index
    %c0_118 = arith.constant 0 : index
    %103 = vector.load %arg15[%c176, %c0_118] : memref<216x512xf32, #tpu.memory_space<vmem>>, vector<4x512xf32>
    tpu.vector_store %arg15[%c176, %c0_118], %102 {strides = array<i32>} : memref<216x512xf32, #tpu.memory_space<vmem>>, vector<4x512xf32>,
    %c0_119 = arith.constant 0 : index
    %c612_120 = arith.constant 612 : index
    %104 = vector.load %arg14[%c0_119, %c612_120] : memref<4x1536xf32, #tpu.memory_space<vmem>>, vector<4x512xf32>
    %c180 = arith.constant 180 : index
    %c0_121 = arith.constant 0 : index
    %105 = vector.load %arg15[%c180, %c0_121] : memref<216x512xf32, #tpu.memory_space<vmem>>, vector<4x512xf32>
    tpu.vector_store %arg15[%c180, %c0_121], %104 {strides = array<i32>} : memref<216x512xf32, #tpu.memory_space<vmem>>, vector<4x512xf32>,
    %c0_122 = arith.constant 0 : index
    %c613 = arith.constant 613 : index
    %106 = vector.load %arg13[%c0_122, %c613] : memref<4x1536xf32, #tpu.memory_space<vmem>>, vector<4x512xf32>
    %c184 = arith.constant 184 : index
    %c0_123 = arith.constant 0 : index
    %107 = vector.load %arg15[%c184, %c0_123] : memref<216x512xf32, #tpu.memory_space<vmem>>, vector<4x512xf32>
    tpu.vector_store %arg15[%c184, %c0_123], %106 {strides = array<i32>} : memref<216x512xf32, #tpu.memory_space<vmem>>, vector<4x512xf32>,
    %c0_124 = arith.constant 0 : index
    %c613_125 = arith.constant 613 : index
    %108 = vector.load %arg14[%c0_124, %c613_125] : memref<4x1536xf32, #tpu.memory_space<vmem>>, vector<4x512xf32>
    %c188 = arith.constant 188 : index
    %c0_126 = arith.constant 0 : index
    %109 = vector.load %arg15[%c188, %c0_126] : memref<216x512xf32, #tpu.memory_space<vmem>>, vector<4x512xf32>
    tpu.vector_store %arg15[%c188, %c0_126], %108 {strides = array<i32>} : memref<216x512xf32, #tpu.memory_space<vmem>>, vector<4x512xf32>,
    %c0_127 = arith.constant 0 : index
    %c621 = arith.constant 621 : index
    %110 = vector.load %arg13[%c0_127, %c621] : memref<4x1536xf32, #tpu.memory_space<vmem>>, vector<4x512xf32>
    %c192 = arith.constant 192 : index
    %c0_128 = arith.constant 0 : index
    %111 = vector.load %arg15[%c192, %c0_128] : memref<216x512xf32, #tpu.memory_space<vmem>>, vector<4x512xf32>
    tpu.vector_store %arg15[%c192, %c0_128], %110 {strides = array<i32>} : memref<216x512xf32, #tpu.memory_space<vmem>>, vector<4x512xf32>,
    %c0_129 = arith.constant 0 : index
    %c621_130 = arith.constant 621 : index
    %112 = vector.load %arg14[%c0_129, %c621_130] : memref<4x1536xf32, #tpu.memory_space<vmem>>, vector<4x512xf32>
    %c196 = arith.constant 196 : index
    %c0_131 = arith.constant 0 : index
    %113 = vector.load %arg15[%c196, %c0_131] : memref<216x512xf32, #tpu.memory_space<vmem>>, vector<4x512xf32>
    tpu.vector_store %arg15[%c196, %c0_131], %112 {strides = array<i32>} : memref<216x512xf32, #tpu.memory_space<vmem>>, vector<4x512xf32>,
    %c0_132 = arith.constant 0 : index
    %c622 = arith.constant 622 : index
    %114 = vector.load %arg13[%c0_132, %c622] : memref<4x1536xf32, #tpu.memory_space<vmem>>, vector<4x512xf32>
    %c200 = arith.constant 200 : index
    %c0_133 = arith.constant 0 : index
    %115 = vector.load %arg15[%c200, %c0_133] : memref<216x512xf32, #tpu.memory_space<vmem>>, vector<4x512xf32>
    tpu.vector_store %arg15[%c200, %c0_133], %114 {strides = array<i32>} : memref<216x512xf32, #tpu.memory_space<vmem>>, vector<4x512xf32>,
    %c0_134 = arith.constant 0 : index
    %c622_135 = arith.constant 622 : index
    %116 = vector.load %arg14[%c0_134, %c622_135] : memref<4x1536xf32, #tpu.memory_space<vmem>>, vector<4x512xf32>
    %c204 = arith.constant 204 : index
    %c0_136 = arith.constant 0 : index
    %117 = vector.load %arg15[%c204, %c0_136] : memref<216x512xf32, #tpu.memory_space<vmem>>, vector<4x512xf32>
    tpu.vector_store %arg15[%c204, %c0_136], %116 {strides = array<i32>} : memref<216x512xf32, #tpu.memory_space<vmem>>, vector<4x512xf32>,
    %c0_137 = arith.constant 0 : index
    %c623 = arith.constant 623 : index
    %118 = vector.load %arg13[%c0_137, %c623] : memref<4x1536xf32, #tpu.memory_space<vmem>>, vector<4x512xf32>
    %c208 = arith.constant 208 : index
    %c0_138 = arith.constant 0 : index
    %119 = vector.load %arg15[%c208, %c0_138] : memref<216x512xf32, #tpu.memory_space<vmem>>, vector<4x512xf32>
    tpu.vector_store %arg15[%c208, %c0_138], %118 {strides = array<i32>} : memref<216x512xf32, #tpu.memory_space<vmem>>, vector<4x512xf32>,
    %c0_139 = arith.constant 0 : index
    %c623_140 = arith.constant 623 : index
    %120 = vector.load %arg14[%c0_139, %c623_140] : memref<4x1536xf32, #tpu.memory_space<vmem>>, vector<4x512xf32>
    %c212 = arith.constant 212 : index
    %c0_141 = arith.constant 0 : index
    %121 = vector.load %arg15[%c212, %c0_141] : memref<216x512xf32, #tpu.memory_space<vmem>>, vector<4x512xf32>
    tpu.vector_store %arg15[%c212, %c0_141], %120 {strides = array<i32>} : memref<216x512xf32, #tpu.memory_space<vmem>>, vector<4x512xf32>,
    %c0_142 = arith.constant 0 : index
    %c0_143 = arith.constant 0 : index
    %122 = vector.load %arg6[%c0_142, %c0_143] : memref<4x216xf32, #tpu.memory_space<vmem>>, vector<4x216xf32>
    %c0_144 = arith.constant 0 : index
    %c0_145 = arith.constant 0 : index
    %123 = vector.load %arg15[%c0_144, %c0_145] : memref<216x512xf32, #tpu.memory_space<vmem>>, vector<216x512xf32>
    %cst = arith.constant dense<0.000000e+00> : vector<4x512xf32>
    %124 = tpu.matmul %122, %123, %cst {dimension_numbers = #tpu.dot_dimension_numbers<[1], [0], [0], [1], [0, 0, 1, 1], [], []>} : vector<4x216xf32>, vector<216x512xf32>, vector<4x512xf32> -> vector<4x512xf32>
    %c0_146 = arith.constant 0 : index
    %c0_147 = arith.constant 0 : index
    %125 = vector.load %arg7[%c0_146, %c0_147] : memref<1x512xf32, #tpu.memory_space<vmem>>, vector<1x512xf32>
    %126 = vector.broadcast %125 : vector<1x512xf32> to vector<4x512xf32>
    %127 = arith.mulf %124, %126 : vector<4x512xf32>
    %c0_148 = arith.constant 0 : index
    %c0_149 = arith.constant 0 : index
    %c0_150 = arith.constant 0 : index
    %128 = vector.load %arg10[%c0_148, %c0_149, %c0_150] : memref<1x4x512xf32, #tpu.memory_space<vmem>>, vector<1x4x512xf32>
    %129 = vector.shape_cast %128 : vector<1x4x512xf32> to vector<4x512xf32>
    %130 = vector.shape_cast %127 : vector<4x512xf32> to vector<1x4x512xf32>
    tpu.vector_store %arg10[%c0_148, %c0_149, %c0_150], %130 {strides = array<i32>} : memref<1x4x512xf32, #tpu.memory_space<vmem>>, vector<1x4x512xf32>,
    %c0_151 = arith.constant 0 : index
    %c0_152 = arith.constant 0 : index
    %c0_153 = arith.constant 0 : index
    %131 = vector.load %arg11[%c0_151, %c0_152, %c0_153] : memref<1x4x1xf32, #tpu.memory_space<vmem>>, vector<1x4x1xf32>
    %132 = vector.shape_cast %131 : vector<1x4x1xf32> to vector<4x1xf32>
    %cst_154 = arith.constant dense<0.000000e+00> : vector<4xf32>
    %133 = vector.multi_reduction <add>, %127, %cst_154 [1] : vector<4x512xf32> to vector<4xf32>
    %134 = vector.shape_cast %133 : vector<4xf32> to vector<4x1xf32>
    %135 = arith.addf %132, %134 : vector<4x1xf32>
    %c0_155 = arith.constant 0 : index
    %c0_156 = arith.constant 0 : index
    %c0_157 = arith.constant 0 : index
    %136 = vector.load %arg11[%c0_155, %c0_156, %c0_157] : memref<1x4x1xf32, #tpu.memory_space<vmem>>, vector<1x4x1xf32>
    %137 = vector.shape_cast %136 : vector<1x4x1xf32> to vector<4x1xf32>
    %138 = vector.shape_cast %135 : vector<4x1xf32> to vector<1x4x1xf32>
    tpu.vector_store %arg11[%c0_155, %c0_156, %c0_157], %138 {strides = array<i32>} : memref<1x4x1xf32, #tpu.memory_space<vmem>>, vector<1x4x1xf32>,
    %c0_158 = arith.constant 0 : index
    %c0_159 = arith.constant 0 : index
    %c0_160 = arith.constant 0 : index
    %139 = vector.load %arg12[%c0_158, %c0_159, %c0_160] : memref<1x4x1xf32, #tpu.memory_space<vmem>>, vector<1x4x1xf32>
    %140 = vector.shape_cast %139 : vector<1x4x1xf32> to vector<4x1xf32>
    %141 = arith.mulf %127, %127 : vector<4x512xf32>
    %cst_161 = arith.constant dense<0.000000e+00> : vector<4xf32>
    %142 = vector.multi_reduction <add>, %141, %cst_161 [1] : vector<4x512xf32> to vector<4xf32>
    %143 = vector.shape_cast %142 : vector<4xf32> to vector<4x1xf32>
    %144 = arith.addf %140, %143 : vector<4x1xf32>
    %c0_162 = arith.constant 0 : index
    %c0_163 = arith.constant 0 : index
    %c0_164 = arith.constant 0 : index
    %145 = vector.load %arg12[%c0_162, %c0_163, %c0_164] : memref<1x4x1xf32, #tpu.memory_space<vmem>>, vector<1x4x1xf32>
    %146 = vector.shape_cast %145 : vector<1x4x1xf32> to vector<4x1xf32>
    %147 = vector.shape_cast %144 : vector<4x1xf32> to vector<1x4x1xf32>
    tpu.vector_store %arg12[%c0_162, %c0_163, %c0_164], %147 {strides = array<i32>} : memref<1x4x1xf32, #tpu.memory_space<vmem>>, vector<1x4x1xf32>,
    return
  }
  func.func @transform_0(%arg0: i32, %arg1: i32) -> (i32, i32, i32) {
    %c1_i32 = arith.constant 1 : i32
    %0 = arith.addi %arg1, %c1_i32 : i32
    %c1_i32_0 = arith.constant 1 : i32
    %1 = arith.minsi %0, %c1_i32_0 : i32
    %c0_i32 = arith.constant 0 : i32
    %c0_i32_1 = arith.constant 0 : i32
    return %arg0, %c0_i32, %1 : i32, i32, i32
  }
  func.func @transform_1(%arg0: i32, %arg1: i32) -> (i32, i32, i32) {
    %c0_i32 = arith.constant 0 : i32
    %c0_i32_0 = arith.constant 0 : i32
    %c0_i32_1 = arith.constant 0 : i32
    return %arg0, %c0_i32, %c0_i32_0 : i32, i32, i32
  }
  func.func @transform_2(%arg0: i32, %arg1: i32) -> (i32, i32, i32) {
    %c1_i32 = arith.constant 1 : i32
    %0 = arith.addi %arg1, %c1_i32 : i32
    %c1_i32_0 = arith.constant 1 : i32
    %1 = arith.minsi %0, %c1_i32_0 : i32
    %c0_i32 = arith.constant 0 : i32
    %c0_i32_1 = arith.constant 0 : i32
    return %arg0, %c0_i32, %1 : i32, i32, i32
  }
  func.func @transform_3(%arg0: i32, %arg1: i32) -> (i32, i32, i32) {
    %c0_i32 = arith.constant 0 : i32
    %c0_i32_0 = arith.constant 0 : i32
    %c0_i32_1 = arith.constant 0 : i32
    return %arg0, %c0_i32, %c0_i32_0 : i32, i32, i32
  }
  func.func @transform_4(%arg0: i32, %arg1: i32) -> (i32, i32) {
    %c0_i32 = arith.constant 0 : i32
    %c0_i32_0 = arith.constant 0 : i32
    %c0_i32_1 = arith.constant 0 : i32
    return %c0_i32, %c0_i32_0 : i32, i32
  }
  func.func @transform_5(%arg0: i32, %arg1: i32) -> (i32, i32) {
    %c0_i32 = arith.constant 0 : i32
    %c0_i32_0 = arith.constant 0 : i32
    return %c0_i32, %arg1 : i32, i32
  }
  func.func @transform_6(%arg0: i32, %arg1: i32) -> (i32, i32) {
    %c1_i32 = arith.constant 1 : i32
    %0 = arith.addi %arg1, %c1_i32 : i32
    %c1_i32_0 = arith.constant 1 : i32
    %1 = arith.minsi %0, %c1_i32_0 : i32
    %c0_i32 = arith.constant 0 : i32
    %c0_i32_1 = arith.constant 0 : i32
    return %c0_i32, %1 : i32, i32
  }
  func.func @transform_7(%arg0: i32, %arg1: i32) -> (i32, i32) {
    %c0_i32 = arith.constant 0 : i32
    %c0_i32_0 = arith.constant 0 : i32
    %c0_i32_1 = arith.constant 0 : i32
    return %c0_i32, %c0_i32_0 : i32, i32
  }
  func.func @transform_8(%arg0: i32, %arg1: i32) -> (i32, i32, i32) {
    %c0_i32 = arith.constant 0 : i32
    %c0_i32_0 = arith.constant 0 : i32
    return %arg0, %c0_i32, %arg1 : i32, i32, i32
  }
  func.func @transform_9(%arg0: i32, %arg1: i32) -> (i32, i32, i32) {
    %c0_i32 = arith.constant 0 : i32
    %c0_i32_0 = arith.constant 0 : i32
    %c0_i32_1 = arith.constant 0 : i32
    return %arg0, %c0_i32, %c0_i32_0 : i32, i32, i32
  }
  func.func @transform_10(%arg0: i32, %arg1: i32) -> (i32, i32, i32) {
    %c0_i32 = arith.constant 0 : i32
    %c0_i32_0 = arith.constant 0 : i32
    %c0_i32_1 = arith.constant 0 : i32
    return %arg0, %c0_i32, %c0_i32_0 : i32, i32, i32
  }
}

module attributes {stable_mosaic.version = 11 : i64} {
  func.func @_conv_kernel(%arg0: i32, %arg1: i32, %arg2: memref<1x4x512xf32, #tpu.memory_space<vmem>>, %arg3: memref<1x4x512xf32, #tpu.memory_space<vmem>>, %arg4: memref<4x1xf32, #tpu.memory_space<vmem>>, %arg5: memref<4x1xf32, #tpu.memory_space<vmem>>, %arg6: memref<4x108xf32, #tpu.memory_space<vmem>>, %arg7: memref<1x512xf32, #tpu.memory_space<vmem>>, %arg8: memref<1x512xf32, #tpu.memory_space<vmem>>, %arg9: memref<1x512xf32, #tpu.memory_space<vmem>>, %arg10: memref<1x4x512xf32, #tpu.memory_space<vmem>>, %arg11: memref<1x4x1xf32, #tpu.memory_space<vmem>>, %arg12: memref<1x4x1xf32, #tpu.memory_space<vmem>>, %arg13: memref<4x1536xf32, #tpu.memory_space<vmem>>, %arg14: memref<108x512xf32, #tpu.memory_space<vmem>>) attributes {dimension_semantics = [#tpu.dimension_semantics<parallel>, #tpu.dimension_semantics<arbitrary>], iteration_bounds = array<i64: 2, 2>, scalar_prefetch = 0 : i64, scratch_operands = 2 : i64, tpu.core_type = #tpu.core_type<tc>, window_params = [{transform_indices = @transform_0, window_bounds = array<i64: 1, 4, 512>}, {transform_indices = @transform_1, window_bounds = array<i64: 1, 4, 512>}, {pipeline_mode = #tpu.pipeline_mode<synchronous>, transform_indices = @transform_2, window_bounds = array<i64: 4, 1>}, {pipeline_mode = #tpu.pipeline_mode<synchronous>, transform_indices = @transform_3, window_bounds = array<i64: 4, 1>}, {pipeline_mode = #tpu.pipeline_mode<synchronous>, transform_indices = @transform_4, window_bounds = array<i64: 4, 108>}, {transform_indices = @transform_5, window_bounds = array<i64: 1, 512>}, {transform_indices = @transform_6, window_bounds = array<i64: 1, 512>}, {transform_indices = @transform_7, window_bounds = array<i64: 1, 512>}, {transform_indices = @transform_8, window_bounds = array<i64: 1, 4, 512>}, {transform_indices = @transform_9, window_bounds = array<i64: 1, 4, 1>}, {transform_indices = @transform_10, window_bounds = array<i64: 1, 4, 1>}]} {
    %c0_i32 = arith.constant 0 : i32
    %0 = arith.cmpi eq, %arg1, %c0_i32 : i32
    %1 = arith.extui %0 : i1 to i32
    %c0_i32_0 = arith.constant 0 : i32
    %2 = arith.cmpi ne, %1, %c0_i32_0 : i32
    scf.if %2 {
      %cst_84 = arith.constant 0.000000e+00 : f32
      %94 = vector.broadcast %cst_84 : f32 to vector<4x1xf32>
      %c0_85 = arith.constant 0 : index
      %c0_86 = arith.constant 0 : index
      %c0_87 = arith.constant 0 : index
      %95 = vector.load %arg11[%c0_85, %c0_86, %c0_87] : memref<1x4x1xf32, #tpu.memory_space<vmem>>, vector<1x4x1xf32>
      %96 = vector.shape_cast %95 : vector<1x4x1xf32> to vector<4x1xf32>
      %97 = vector.shape_cast %94 : vector<4x1xf32> to vector<1x4x1xf32>
      tpu.vector_store %arg11[%c0_85, %c0_86, %c0_87], %97 {strides = array<i32>} : memref<1x4x1xf32, #tpu.memory_space<vmem>>, vector<1x4x1xf32>,
      %cst_88 = arith.constant 0.000000e+00 : f32
      %98 = vector.broadcast %cst_88 : f32 to vector<4x1xf32>
      %c0_89 = arith.constant 0 : index
      %c0_90 = arith.constant 0 : index
      %c0_91 = arith.constant 0 : index
      %99 = vector.load %arg12[%c0_89, %c0_90, %c0_91] : memref<1x4x1xf32, #tpu.memory_space<vmem>>, vector<1x4x1xf32>
      %100 = vector.shape_cast %99 : vector<1x4x1xf32> to vector<4x1xf32>
      %101 = vector.shape_cast %98 : vector<4x1xf32> to vector<1x4x1xf32>
      tpu.vector_store %arg12[%c0_89, %c0_90, %c0_91], %101 {strides = array<i32>} : memref<1x4x1xf32, #tpu.memory_space<vmem>>, vector<1x4x1xf32>,
      %cst_92 = arith.constant 0.000000e+00 : f32
      %102 = vector.broadcast %cst_92 : f32 to vector<4x512xf32>
      %c0_93 = arith.constant 0 : index
      %c0_94 = arith.constant 0 : index
      %103 = vector.load %arg13[%c0_93, %c0_94] : memref<4x1536xf32, #tpu.memory_space<vmem>>, vector<4x512xf32>
      tpu.vector_store %arg13[%c0_93, %c0_94], %102 {strides = array<i32>} : memref<4x1536xf32, #tpu.memory_space<vmem>>, vector<4x512xf32>,
      %c0_95 = arith.constant 0 : index
      %c0_96 = arith.constant 0 : index
      %c0_97 = arith.constant 0 : index
      %104 = vector.load %arg3[%c0_95, %c0_96, %c0_97] : memref<1x4x512xf32, #tpu.memory_space<vmem>>, vector<1x4x512xf32>
      %105 = vector.shape_cast %104 : vector<1x4x512xf32> to vector<4x512xf32>
      %c0_98 = arith.constant 0 : index
      %c0_99 = arith.constant 0 : index
      %106 = vector.load %arg4[%c0_98, %c0_99] : memref<4x1xf32, #tpu.memory_space<vmem>>, vector<4x1xf32>
      %107 = vector.broadcast %106 : vector<4x1xf32> to vector<4x512xf32>
      %108 = arith.mulf %105, %107 : vector<4x512xf32>
      %c0_100 = arith.constant 0 : index
      %c0_101 = arith.constant 0 : index
      %109 = vector.load %arg5[%c0_100, %c0_101] : memref<4x1xf32, #tpu.memory_space<vmem>>, vector<4x1xf32>
      %110 = vector.broadcast %109 : vector<4x1xf32> to vector<4x512xf32>
      %111 = arith.addf %108, %110 : vector<4x512xf32>
      %cst_102 = arith.constant 0.000000e+00 : f32
      %112 = vector.broadcast %cst_102 : f32 to vector<4x512xf32>
      %113 = arith.maximumf %111, %112 : vector<4x512xf32>
      %c0_103 = arith.constant 0 : index
      %c0_104 = arith.constant 0 : index
      %114 = vector.load %arg9[%c0_103, %c0_104] : memref<1x512xf32, #tpu.memory_space<vmem>>, vector<1x512xf32>
      %115 = vector.broadcast %114 : vector<1x512xf32> to vector<4x512xf32>
      %116 = arith.mulf %113, %115 : vector<4x512xf32>
      %c0_105 = arith.constant 0 : index
      %c512_106 = arith.constant 512 : index
      %117 = vector.load %arg13[%c0_105, %c512_106] : memref<4x1536xf32, #tpu.memory_space<vmem>>, vector<4x512xf32>
      tpu.vector_store %arg13[%c0_105, %c512_106], %116 {strides = array<i32>} : memref<4x1536xf32, #tpu.memory_space<vmem>>, vector<4x512xf32>,
    } else {
    }
    %c0_i32_1 = arith.constant 0 : i32
    %3 = arith.cmpi sgt, %arg1, %c0_i32_1 : i32
    %4 = arith.extui %3 : i1 to i32
    %c0_i32_2 = arith.constant 0 : i32
    %5 = arith.cmpi ne, %4, %c0_i32_2 : i32
    scf.if %5 {
      %c0_84 = arith.constant 0 : index
      %c512_85 = arith.constant 512 : index
      %94 = vector.load %arg13[%c0_84, %c512_85] : memref<4x1536xf32, #tpu.memory_space<vmem>>, vector<4x1024xf32>
      %c0_86 = arith.constant 0 : index
      %c0_87 = arith.constant 0 : index
      %95 = vector.load %arg13[%c0_86, %c0_87] : memref<4x1536xf32, #tpu.memory_space<vmem>>, vector<4x1024xf32>
      tpu.vector_store %arg13[%c0_86, %c0_87], %94 {strides = array<i32>} : memref<4x1536xf32, #tpu.memory_space<vmem>>, vector<4x1024xf32>,
    } else {
    }
    %c1_i32 = arith.constant 1 : i32
    %6 = arith.addi %arg1, %c1_i32 : i32
    %c2_i32 = arith.constant 2 : i32
    %7 = arith.cmpi slt, %6, %c2_i32 : i32
    %8 = arith.extui %7 : i1 to i32
    %c0_i32_3 = arith.constant 0 : i32
    %9 = arith.cmpi ne, %8, %c0_i32_3 : i32
    scf.if %9 {
      %c0_84 = arith.constant 0 : index
      %c0_85 = arith.constant 0 : index
      %c0_86 = arith.constant 0 : index
      %94 = vector.load %arg2[%c0_84, %c0_85, %c0_86] : memref<1x4x512xf32, #tpu.memory_space<vmem>>, vector<1x4x512xf32>
      %95 = vector.shape_cast %94 : vector<1x4x512xf32> to vector<4x512xf32>
      %c0_87 = arith.constant 0 : index
      %c0_88 = arith.constant 0 : index
      %96 = vector.load %arg4[%c0_87, %c0_88] : memref<4x1xf32, #tpu.memory_space<vmem>>, vector<4x1xf32>
      %97 = vector.broadcast %96 : vector<4x1xf32> to vector<4x512xf32>
      %98 = arith.mulf %95, %97 : vector<4x512xf32>
      %c0_89 = arith.constant 0 : index
      %c0_90 = arith.constant 0 : index
      %99 = vector.load %arg5[%c0_89, %c0_90] : memref<4x1xf32, #tpu.memory_space<vmem>>, vector<4x1xf32>
      %100 = vector.broadcast %99 : vector<4x1xf32> to vector<4x512xf32>
      %101 = arith.addf %98, %100 : vector<4x512xf32>
      %cst_91 = arith.constant 0.000000e+00 : f32
      %102 = vector.broadcast %cst_91 : f32 to vector<4x512xf32>
      %103 = arith.maximumf %101, %102 : vector<4x512xf32>
      %c0_92 = arith.constant 0 : index
      %c0_93 = arith.constant 0 : index
      %104 = vector.load %arg8[%c0_92, %c0_93] : memref<1x512xf32, #tpu.memory_space<vmem>>, vector<1x512xf32>
      %105 = vector.broadcast %104 : vector<1x512xf32> to vector<4x512xf32>
      %106 = arith.mulf %103, %105 : vector<4x512xf32>
      %c0_94 = arith.constant 0 : index
      %c1024 = arith.constant 1024 : index
      %107 = vector.load %arg13[%c0_94, %c1024] : memref<4x1536xf32, #tpu.memory_space<vmem>>, vector<4x512xf32>
      tpu.vector_store %arg13[%c0_94, %c1024], %106 {strides = array<i32>} : memref<4x1536xf32, #tpu.memory_space<vmem>>, vector<4x512xf32>,
    } else {
    }
    %c1_i32_4 = arith.constant 1 : i32
    %10 = arith.addi %arg1, %c1_i32_4 : i32
    %c2_i32_5 = arith.constant 2 : i32
    %11 = arith.cmpi sge, %10, %c2_i32_5 : i32
    %12 = arith.extui %11 : i1 to i32
    %c0_i32_6 = arith.constant 0 : i32
    %13 = arith.cmpi ne, %12, %c0_i32_6 : i32
    scf.if %13 {
      %cst_84 = arith.constant 0.000000e+00 : f32
      %94 = vector.broadcast %cst_84 : f32 to vector<4x512xf32>
      %c0_85 = arith.constant 0 : index
      %c1024 = arith.constant 1024 : index
      %95 = vector.load %arg13[%c0_85, %c1024] : memref<4x1536xf32, #tpu.memory_space<vmem>>, vector<4x512xf32>
      tpu.vector_store %arg13[%c0_85, %c1024], %94 {strides = array<i32>} : memref<4x1536xf32, #tpu.memory_space<vmem>>, vector<4x512xf32>,
    } else {
    }
    %c0 = arith.constant 0 : index
    %c401 = arith.constant 401 : index
    %14 = vector.load %arg13[%c0, %c401] : memref<4x1536xf32, #tpu.memory_space<vmem>>, vector<4x512xf32>
    %c0_7 = arith.constant 0 : index
    %c0_8 = arith.constant 0 : index
    %15 = vector.load %arg14[%c0_7, %c0_8] : memref<108x512xf32, #tpu.memory_space<vmem>>, vector<4x512xf32>
    tpu.vector_store %arg14[%c0_7, %c0_8], %14 {strides = array<i32>} : memref<108x512xf32, #tpu.memory_space<vmem>>, vector<4x512xf32>,
    %c0_9 = arith.constant 0 : index
    %c402 = arith.constant 402 : index
    %16 = vector.load %arg13[%c0_9, %c402] : memref<4x1536xf32, #tpu.memory_space<vmem>>, vector<4x512xf32>
    %c4 = arith.constant 4 : index
    %c0_10 = arith.constant 0 : index
    %17 = vector.load %arg14[%c4, %c0_10] : memref<108x512xf32, #tpu.memory_space<vmem>>, vector<4x512xf32>
    tpu.vector_store %arg14[%c4, %c0_10], %16 {strides = array<i32>} : memref<108x512xf32, #tpu.memory_space<vmem>>, vector<4x512xf32>,
    %c0_11 = arith.constant 0 : index
    %c403 = arith.constant 403 : index
    %18 = vector.load %arg13[%c0_11, %c403] : memref<4x1536xf32, #tpu.memory_space<vmem>>, vector<4x512xf32>
    %c8 = arith.constant 8 : index
    %c0_12 = arith.constant 0 : index
    %19 = vector.load %arg14[%c8, %c0_12] : memref<108x512xf32, #tpu.memory_space<vmem>>, vector<4x512xf32>
    tpu.vector_store %arg14[%c8, %c0_12], %18 {strides = array<i32>} : memref<108x512xf32, #tpu.memory_space<vmem>>, vector<4x512xf32>,
    %c0_13 = arith.constant 0 : index
    %c411 = arith.constant 411 : index
    %20 = vector.load %arg13[%c0_13, %c411] : memref<4x1536xf32, #tpu.memory_space<vmem>>, vector<4x512xf32>
    %c12 = arith.constant 12 : index
    %c0_14 = arith.constant 0 : index
    %21 = vector.load %arg14[%c12, %c0_14] : memref<108x512xf32, #tpu.memory_space<vmem>>, vector<4x512xf32>
    tpu.vector_store %arg14[%c12, %c0_14], %20 {strides = array<i32>} : memref<108x512xf32, #tpu.memory_space<vmem>>, vector<4x512xf32>,
    %c0_15 = arith.constant 0 : index
    %c412 = arith.constant 412 : index
    %22 = vector.load %arg13[%c0_15, %c412] : memref<4x1536xf32, #tpu.memory_space<vmem>>, vector<4x512xf32>
    %c16 = arith.constant 16 : index
    %c0_16 = arith.constant 0 : index
    %23 = vector.load %arg14[%c16, %c0_16] : memref<108x512xf32, #tpu.memory_space<vmem>>, vector<4x512xf32>
    tpu.vector_store %arg14[%c16, %c0_16], %22 {strides = array<i32>} : memref<108x512xf32, #tpu.memory_space<vmem>>, vector<4x512xf32>,
    %c0_17 = arith.constant 0 : index
    %c413 = arith.constant 413 : index
    %24 = vector.load %arg13[%c0_17, %c413] : memref<4x1536xf32, #tpu.memory_space<vmem>>, vector<4x512xf32>
    %c20 = arith.constant 20 : index
    %c0_18 = arith.constant 0 : index
    %25 = vector.load %arg14[%c20, %c0_18] : memref<108x512xf32, #tpu.memory_space<vmem>>, vector<4x512xf32>
    tpu.vector_store %arg14[%c20, %c0_18], %24 {strides = array<i32>} : memref<108x512xf32, #tpu.memory_space<vmem>>, vector<4x512xf32>,
    %c0_19 = arith.constant 0 : index
    %c421 = arith.constant 421 : index
    %26 = vector.load %arg13[%c0_19, %c421] : memref<4x1536xf32, #tpu.memory_space<vmem>>, vector<4x512xf32>
    %c24 = arith.constant 24 : index
    %c0_20 = arith.constant 0 : index
    %27 = vector.load %arg14[%c24, %c0_20] : memref<108x512xf32, #tpu.memory_space<vmem>>, vector<4x512xf32>
    tpu.vector_store %arg14[%c24, %c0_20], %26 {strides = array<i32>} : memref<108x512xf32, #tpu.memory_space<vmem>>, vector<4x512xf32>,
    %c0_21 = arith.constant 0 : index
    %c422 = arith.constant 422 : index
    %28 = vector.load %arg13[%c0_21, %c422] : memref<4x1536xf32, #tpu.memory_space<vmem>>, vector<4x512xf32>
    %c28 = arith.constant 28 : index
    %c0_22 = arith.constant 0 : index
    %29 = vector.load %arg14[%c28, %c0_22] : memref<108x512xf32, #tpu.memory_space<vmem>>, vector<4x512xf32>
    tpu.vector_store %arg14[%c28, %c0_22], %28 {strides = array<i32>} : memref<108x512xf32, #tpu.memory_space<vmem>>, vector<4x512xf32>,
    %c0_23 = arith.constant 0 : index
    %c423 = arith.constant 423 : index
    %30 = vector.load %arg13[%c0_23, %c423] : memref<4x1536xf32, #tpu.memory_space<vmem>>, vector<4x512xf32>
    %c32 = arith.constant 32 : index
    %c0_24 = arith.constant 0 : index
    %31 = vector.load %arg14[%c32, %c0_24] : memref<108x512xf32, #tpu.memory_space<vmem>>, vector<4x512xf32>
    tpu.vector_store %arg14[%c32, %c0_24], %30 {strides = array<i32>} : memref<108x512xf32, #tpu.memory_space<vmem>>, vector<4x512xf32>,
    %c0_25 = arith.constant 0 : index
    %c501 = arith.constant 501 : index
    %32 = vector.load %arg13[%c0_25, %c501] : memref<4x1536xf32, #tpu.memory_space<vmem>>, vector<4x512xf32>
    %c36 = arith.constant 36 : index
    %c0_26 = arith.constant 0 : index
    %33 = vector.load %arg14[%c36, %c0_26] : memref<108x512xf32, #tpu.memory_space<vmem>>, vector<4x512xf32>
    tpu.vector_store %arg14[%c36, %c0_26], %32 {strides = array<i32>} : memref<108x512xf32, #tpu.memory_space<vmem>>, vector<4x512xf32>,
    %c0_27 = arith.constant 0 : index
    %c502 = arith.constant 502 : index
    %34 = vector.load %arg13[%c0_27, %c502] : memref<4x1536xf32, #tpu.memory_space<vmem>>, vector<4x512xf32>
    %c40 = arith.constant 40 : index
    %c0_28 = arith.constant 0 : index
    %35 = vector.load %arg14[%c40, %c0_28] : memref<108x512xf32, #tpu.memory_space<vmem>>, vector<4x512xf32>
    tpu.vector_store %arg14[%c40, %c0_28], %34 {strides = array<i32>} : memref<108x512xf32, #tpu.memory_space<vmem>>, vector<4x512xf32>,
    %c0_29 = arith.constant 0 : index
    %c503 = arith.constant 503 : index
    %36 = vector.load %arg13[%c0_29, %c503] : memref<4x1536xf32, #tpu.memory_space<vmem>>, vector<4x512xf32>
    %c44 = arith.constant 44 : index
    %c0_30 = arith.constant 0 : index
    %37 = vector.load %arg14[%c44, %c0_30] : memref<108x512xf32, #tpu.memory_space<vmem>>, vector<4x512xf32>
    tpu.vector_store %arg14[%c44, %c0_30], %36 {strides = array<i32>} : memref<108x512xf32, #tpu.memory_space<vmem>>, vector<4x512xf32>,
    %c0_31 = arith.constant 0 : index
    %c511 = arith.constant 511 : index
    %38 = vector.load %arg13[%c0_31, %c511] : memref<4x1536xf32, #tpu.memory_space<vmem>>, vector<4x512xf32>
    %c48 = arith.constant 48 : index
    %c0_32 = arith.constant 0 : index
    %39 = vector.load %arg14[%c48, %c0_32] : memref<108x512xf32, #tpu.memory_space<vmem>>, vector<4x512xf32>
    tpu.vector_store %arg14[%c48, %c0_32], %38 {strides = array<i32>} : memref<108x512xf32, #tpu.memory_space<vmem>>, vector<4x512xf32>,
    %c0_33 = arith.constant 0 : index
    %c512 = arith.constant 512 : index
    %40 = vector.load %arg13[%c0_33, %c512] : memref<4x1536xf32, #tpu.memory_space<vmem>>, vector<4x512xf32>
    %c52 = arith.constant 52 : index
    %c0_34 = arith.constant 0 : index
    %41 = vector.load %arg14[%c52, %c0_34] : memref<108x512xf32, #tpu.memory_space<vmem>>, vector<4x512xf32>
    tpu.vector_store %arg14[%c52, %c0_34], %40 {strides = array<i32>} : memref<108x512xf32, #tpu.memory_space<vmem>>, vector<4x512xf32>,
    %c0_35 = arith.constant 0 : index
    %c513 = arith.constant 513 : index
    %42 = vector.load %arg13[%c0_35, %c513] : memref<4x1536xf32, #tpu.memory_space<vmem>>, vector<4x512xf32>
    %c56 = arith.constant 56 : index
    %c0_36 = arith.constant 0 : index
    %43 = vector.load %arg14[%c56, %c0_36] : memref<108x512xf32, #tpu.memory_space<vmem>>, vector<4x512xf32>
    tpu.vector_store %arg14[%c56, %c0_36], %42 {strides = array<i32>} : memref<108x512xf32, #tpu.memory_space<vmem>>, vector<4x512xf32>,
    %c0_37 = arith.constant 0 : index
    %c521 = arith.constant 521 : index
    %44 = vector.load %arg13[%c0_37, %c521] : memref<4x1536xf32, #tpu.memory_space<vmem>>, vector<4x512xf32>
    %c60 = arith.constant 60 : index
    %c0_38 = arith.constant 0 : index
    %45 = vector.load %arg14[%c60, %c0_38] : memref<108x512xf32, #tpu.memory_space<vmem>>, vector<4x512xf32>
    tpu.vector_store %arg14[%c60, %c0_38], %44 {strides = array<i32>} : memref<108x512xf32, #tpu.memory_space<vmem>>, vector<4x512xf32>,
    %c0_39 = arith.constant 0 : index
    %c522 = arith.constant 522 : index
    %46 = vector.load %arg13[%c0_39, %c522] : memref<4x1536xf32, #tpu.memory_space<vmem>>, vector<4x512xf32>
    %c64 = arith.constant 64 : index
    %c0_40 = arith.constant 0 : index
    %47 = vector.load %arg14[%c64, %c0_40] : memref<108x512xf32, #tpu.memory_space<vmem>>, vector<4x512xf32>
    tpu.vector_store %arg14[%c64, %c0_40], %46 {strides = array<i32>} : memref<108x512xf32, #tpu.memory_space<vmem>>, vector<4x512xf32>,
    %c0_41 = arith.constant 0 : index
    %c523 = arith.constant 523 : index
    %48 = vector.load %arg13[%c0_41, %c523] : memref<4x1536xf32, #tpu.memory_space<vmem>>, vector<4x512xf32>
    %c68 = arith.constant 68 : index
    %c0_42 = arith.constant 0 : index
    %49 = vector.load %arg14[%c68, %c0_42] : memref<108x512xf32, #tpu.memory_space<vmem>>, vector<4x512xf32>
    tpu.vector_store %arg14[%c68, %c0_42], %48 {strides = array<i32>} : memref<108x512xf32, #tpu.memory_space<vmem>>, vector<4x512xf32>,
    %c0_43 = arith.constant 0 : index
    %c601 = arith.constant 601 : index
    %50 = vector.load %arg13[%c0_43, %c601] : memref<4x1536xf32, #tpu.memory_space<vmem>>, vector<4x512xf32>
    %c72 = arith.constant 72 : index
    %c0_44 = arith.constant 0 : index
    %51 = vector.load %arg14[%c72, %c0_44] : memref<108x512xf32, #tpu.memory_space<vmem>>, vector<4x512xf32>
    tpu.vector_store %arg14[%c72, %c0_44], %50 {strides = array<i32>} : memref<108x512xf32, #tpu.memory_space<vmem>>, vector<4x512xf32>,
    %c0_45 = arith.constant 0 : index
    %c602 = arith.constant 602 : index
    %52 = vector.load %arg13[%c0_45, %c602] : memref<4x1536xf32, #tpu.memory_space<vmem>>, vector<4x512xf32>
    %c76 = arith.constant 76 : index
    %c0_46 = arith.constant 0 : index
    %53 = vector.load %arg14[%c76, %c0_46] : memref<108x512xf32, #tpu.memory_space<vmem>>, vector<4x512xf32>
    tpu.vector_store %arg14[%c76, %c0_46], %52 {strides = array<i32>} : memref<108x512xf32, #tpu.memory_space<vmem>>, vector<4x512xf32>,
    %c0_47 = arith.constant 0 : index
    %c603 = arith.constant 603 : index
    %54 = vector.load %arg13[%c0_47, %c603] : memref<4x1536xf32, #tpu.memory_space<vmem>>, vector<4x512xf32>
    %c80 = arith.constant 80 : index
    %c0_48 = arith.constant 0 : index
    %55 = vector.load %arg14[%c80, %c0_48] : memref<108x512xf32, #tpu.memory_space<vmem>>, vector<4x512xf32>
    tpu.vector_store %arg14[%c80, %c0_48], %54 {strides = array<i32>} : memref<108x512xf32, #tpu.memory_space<vmem>>, vector<4x512xf32>,
    %c0_49 = arith.constant 0 : index
    %c611 = arith.constant 611 : index
    %56 = vector.load %arg13[%c0_49, %c611] : memref<4x1536xf32, #tpu.memory_space<vmem>>, vector<4x512xf32>
    %c84 = arith.constant 84 : index
    %c0_50 = arith.constant 0 : index
    %57 = vector.load %arg14[%c84, %c0_50] : memref<108x512xf32, #tpu.memory_space<vmem>>, vector<4x512xf32>
    tpu.vector_store %arg14[%c84, %c0_50], %56 {strides = array<i32>} : memref<108x512xf32, #tpu.memory_space<vmem>>, vector<4x512xf32>,
    %c0_51 = arith.constant 0 : index
    %c612 = arith.constant 612 : index
    %58 = vector.load %arg13[%c0_51, %c612] : memref<4x1536xf32, #tpu.memory_space<vmem>>, vector<4x512xf32>
    %c88 = arith.constant 88 : index
    %c0_52 = arith.constant 0 : index
    %59 = vector.load %arg14[%c88, %c0_52] : memref<108x512xf32, #tpu.memory_space<vmem>>, vector<4x512xf32>
    tpu.vector_store %arg14[%c88, %c0_52], %58 {strides = array<i32>} : memref<108x512xf32, #tpu.memory_space<vmem>>, vector<4x512xf32>,
    %c0_53 = arith.constant 0 : index
    %c613 = arith.constant 613 : index
    %60 = vector.load %arg13[%c0_53, %c613] : memref<4x1536xf32, #tpu.memory_space<vmem>>, vector<4x512xf32>
    %c92 = arith.constant 92 : index
    %c0_54 = arith.constant 0 : index
    %61 = vector.load %arg14[%c92, %c0_54] : memref<108x512xf32, #tpu.memory_space<vmem>>, vector<4x512xf32>
    tpu.vector_store %arg14[%c92, %c0_54], %60 {strides = array<i32>} : memref<108x512xf32, #tpu.memory_space<vmem>>, vector<4x512xf32>,
    %c0_55 = arith.constant 0 : index
    %c621 = arith.constant 621 : index
    %62 = vector.load %arg13[%c0_55, %c621] : memref<4x1536xf32, #tpu.memory_space<vmem>>, vector<4x512xf32>
    %c96 = arith.constant 96 : index
    %c0_56 = arith.constant 0 : index
    %63 = vector.load %arg14[%c96, %c0_56] : memref<108x512xf32, #tpu.memory_space<vmem>>, vector<4x512xf32>
    tpu.vector_store %arg14[%c96, %c0_56], %62 {strides = array<i32>} : memref<108x512xf32, #tpu.memory_space<vmem>>, vector<4x512xf32>,
    %c0_57 = arith.constant 0 : index
    %c622 = arith.constant 622 : index
    %64 = vector.load %arg13[%c0_57, %c622] : memref<4x1536xf32, #tpu.memory_space<vmem>>, vector<4x512xf32>
    %c100 = arith.constant 100 : index
    %c0_58 = arith.constant 0 : index
    %65 = vector.load %arg14[%c100, %c0_58] : memref<108x512xf32, #tpu.memory_space<vmem>>, vector<4x512xf32>
    tpu.vector_store %arg14[%c100, %c0_58], %64 {strides = array<i32>} : memref<108x512xf32, #tpu.memory_space<vmem>>, vector<4x512xf32>,
    %c0_59 = arith.constant 0 : index
    %c623 = arith.constant 623 : index
    %66 = vector.load %arg13[%c0_59, %c623] : memref<4x1536xf32, #tpu.memory_space<vmem>>, vector<4x512xf32>
    %c104 = arith.constant 104 : index
    %c0_60 = arith.constant 0 : index
    %67 = vector.load %arg14[%c104, %c0_60] : memref<108x512xf32, #tpu.memory_space<vmem>>, vector<4x512xf32>
    tpu.vector_store %arg14[%c104, %c0_60], %66 {strides = array<i32>} : memref<108x512xf32, #tpu.memory_space<vmem>>, vector<4x512xf32>,
    %c0_61 = arith.constant 0 : index
    %c0_62 = arith.constant 0 : index
    %68 = vector.load %arg6[%c0_61, %c0_62] : memref<4x108xf32, #tpu.memory_space<vmem>>, vector<4x108xf32>
    %c0_63 = arith.constant 0 : index
    %c0_64 = arith.constant 0 : index
    %69 = vector.load %arg14[%c0_63, %c0_64] : memref<108x512xf32, #tpu.memory_space<vmem>>, vector<108x512xf32>
    %cst = arith.constant dense<0.000000e+00> : vector<4x512xf32>
    %70 = tpu.matmul %68, %69, %cst {dimension_numbers = #tpu.dot_dimension_numbers<[1], [0], [0], [1], [0, 0, 1, 1], [], []>} : vector<4x108xf32>, vector<108x512xf32>, vector<4x512xf32> -> vector<4x512xf32>
    %c0_65 = arith.constant 0 : index
    %c0_66 = arith.constant 0 : index
    %71 = vector.load %arg7[%c0_65, %c0_66] : memref<1x512xf32, #tpu.memory_space<vmem>>, vector<1x512xf32>
    %72 = vector.broadcast %71 : vector<1x512xf32> to vector<4x512xf32>
    %73 = arith.mulf %70, %72 : vector<4x512xf32>
    %c0_67 = arith.constant 0 : index
    %c0_68 = arith.constant 0 : index
    %c0_69 = arith.constant 0 : index
    %74 = vector.load %arg10[%c0_67, %c0_68, %c0_69] : memref<1x4x512xf32, #tpu.memory_space<vmem>>, vector<1x4x512xf32>
    %75 = vector.shape_cast %74 : vector<1x4x512xf32> to vector<4x512xf32>
    %76 = vector.shape_cast %73 : vector<4x512xf32> to vector<1x4x512xf32>
    tpu.vector_store %arg10[%c0_67, %c0_68, %c0_69], %76 {strides = array<i32>} : memref<1x4x512xf32, #tpu.memory_space<vmem>>, vector<1x4x512xf32>,
    %c0_70 = arith.constant 0 : index
    %c0_71 = arith.constant 0 : index
    %c0_72 = arith.constant 0 : index
    %77 = vector.load %arg11[%c0_70, %c0_71, %c0_72] : memref<1x4x1xf32, #tpu.memory_space<vmem>>, vector<1x4x1xf32>
    %78 = vector.shape_cast %77 : vector<1x4x1xf32> to vector<4x1xf32>
    %cst_73 = arith.constant dense<0.000000e+00> : vector<4xf32>
    %79 = vector.multi_reduction <add>, %73, %cst_73 [1] : vector<4x512xf32> to vector<4xf32>
    %80 = vector.shape_cast %79 : vector<4xf32> to vector<4x1xf32>
    %81 = arith.addf %78, %80 : vector<4x1xf32>
    %c0_74 = arith.constant 0 : index
    %c0_75 = arith.constant 0 : index
    %c0_76 = arith.constant 0 : index
    %82 = vector.load %arg11[%c0_74, %c0_75, %c0_76] : memref<1x4x1xf32, #tpu.memory_space<vmem>>, vector<1x4x1xf32>
    %83 = vector.shape_cast %82 : vector<1x4x1xf32> to vector<4x1xf32>
    %84 = vector.shape_cast %81 : vector<4x1xf32> to vector<1x4x1xf32>
    tpu.vector_store %arg11[%c0_74, %c0_75, %c0_76], %84 {strides = array<i32>} : memref<1x4x1xf32, #tpu.memory_space<vmem>>, vector<1x4x1xf32>,
    %c0_77 = arith.constant 0 : index
    %c0_78 = arith.constant 0 : index
    %c0_79 = arith.constant 0 : index
    %85 = vector.load %arg12[%c0_77, %c0_78, %c0_79] : memref<1x4x1xf32, #tpu.memory_space<vmem>>, vector<1x4x1xf32>
    %86 = vector.shape_cast %85 : vector<1x4x1xf32> to vector<4x1xf32>
    %87 = arith.mulf %73, %73 : vector<4x512xf32>
    %cst_80 = arith.constant dense<0.000000e+00> : vector<4xf32>
    %88 = vector.multi_reduction <add>, %87, %cst_80 [1] : vector<4x512xf32> to vector<4xf32>
    %89 = vector.shape_cast %88 : vector<4xf32> to vector<4x1xf32>
    %90 = arith.addf %86, %89 : vector<4x1xf32>
    %c0_81 = arith.constant 0 : index
    %c0_82 = arith.constant 0 : index
    %c0_83 = arith.constant 0 : index
    %91 = vector.load %arg12[%c0_81, %c0_82, %c0_83] : memref<1x4x1xf32, #tpu.memory_space<vmem>>, vector<1x4x1xf32>
    %92 = vector.shape_cast %91 : vector<1x4x1xf32> to vector<4x1xf32>
    %93 = vector.shape_cast %90 : vector<4x1xf32> to vector<1x4x1xf32>
    tpu.vector_store %arg12[%c0_81, %c0_82, %c0_83], %93 {strides = array<i32>} : memref<1x4x1xf32, #tpu.memory_space<vmem>>, vector<1x4x1xf32>,
    return
  }
  func.func @transform_0(%arg0: i32, %arg1: i32) -> (i32, i32, i32) {
    %c1_i32 = arith.constant 1 : i32
    %0 = arith.addi %arg1, %c1_i32 : i32
    %c1_i32_0 = arith.constant 1 : i32
    %1 = arith.minsi %0, %c1_i32_0 : i32
    %c0_i32 = arith.constant 0 : i32
    %c0_i32_1 = arith.constant 0 : i32
    return %arg0, %c0_i32, %1 : i32, i32, i32
  }
  func.func @transform_1(%arg0: i32, %arg1: i32) -> (i32, i32, i32) {
    %c0_i32 = arith.constant 0 : i32
    %c0_i32_0 = arith.constant 0 : i32
    %c0_i32_1 = arith.constant 0 : i32
    return %arg0, %c0_i32, %c0_i32_0 : i32, i32, i32
  }
  func.func @transform_2(%arg0: i32, %arg1: i32) -> (i32, i32) {
    %c0_i32 = arith.constant 0 : i32
    %c0_i32_0 = arith.constant 0 : i32
    %c0_i32_1 = arith.constant 0 : i32
    return %c0_i32, %c0_i32_0 : i32, i32
  }
  func.func @transform_3(%arg0: i32, %arg1: i32) -> (i32, i32) {
    %c0_i32 = arith.constant 0 : i32
    %c0_i32_0 = arith.constant 0 : i32
    %c0_i32_1 = arith.constant 0 : i32
    return %c0_i32, %c0_i32_0 : i32, i32
  }
  func.func @transform_4(%arg0: i32, %arg1: i32) -> (i32, i32) {
    %c0_i32 = arith.constant 0 : i32
    %c0_i32_0 = arith.constant 0 : i32
    %c0_i32_1 = arith.constant 0 : i32
    return %c0_i32, %c0_i32_0 : i32, i32
  }
  func.func @transform_5(%arg0: i32, %arg1: i32) -> (i32, i32) {
    %c0_i32 = arith.constant 0 : i32
    %c0_i32_0 = arith.constant 0 : i32
    return %c0_i32, %arg1 : i32, i32
  }
  func.func @transform_6(%arg0: i32, %arg1: i32) -> (i32, i32) {
    %c1_i32 = arith.constant 1 : i32
    %0 = arith.addi %arg1, %c1_i32 : i32
    %c1_i32_0 = arith.constant 1 : i32
    %1 = arith.minsi %0, %c1_i32_0 : i32
    %c0_i32 = arith.constant 0 : i32
    %c0_i32_1 = arith.constant 0 : i32
    return %c0_i32, %1 : i32, i32
  }
  func.func @transform_7(%arg0: i32, %arg1: i32) -> (i32, i32) {
    %c0_i32 = arith.constant 0 : i32
    %c0_i32_0 = arith.constant 0 : i32
    %c0_i32_1 = arith.constant 0 : i32
    return %c0_i32, %c0_i32_0 : i32, i32
  }
  func.func @transform_8(%arg0: i32, %arg1: i32) -> (i32, i32, i32) {
    %c0_i32 = arith.constant 0 : i32
    %c0_i32_0 = arith.constant 0 : i32
    return %arg0, %c0_i32, %arg1 : i32, i32, i32
  }
  func.func @transform_9(%arg0: i32, %arg1: i32) -> (i32, i32, i32) {
    %c0_i32 = arith.constant 0 : i32
    %c0_i32_0 = arith.constant 0 : i32
    %c0_i32_1 = arith.constant 0 : i32
    return %arg0, %c0_i32, %c0_i32_0 : i32, i32, i32
  }
  func.func @transform_10(%arg0: i32, %arg1: i32) -> (i32, i32, i32) {
    %c0_i32 = arith.constant 0 : i32
    %c0_i32_0 = arith.constant 0 : i32
    %c0_i32_1 = arith.constant 0 : i32
    return %arg0, %c0_i32, %c0_i32_0 : i32, i32, i32
  }
}

module attributes {stable_mosaic.version = 11 : i64} {
  func.func @_bn_relu_kernel(%arg0: i32, %arg1: i32, %arg2: memref<1x4x512xf32, #tpu.memory_space<vmem>>, %arg3: memref<4x1xf32, #tpu.memory_space<vmem>>, %arg4: memref<4x1xf32, #tpu.memory_space<vmem>>, %arg5: memref<1x4x512xf32, #tpu.memory_space<vmem>>) attributes {dimension_semantics = [#tpu.dimension_semantics<parallel>, #tpu.dimension_semantics<parallel>], iteration_bounds = array<i64: 2, 2>, scalar_prefetch = 0 : i64, scratch_operands = 0 : i64, tpu.core_type = #tpu.core_type<tc>, window_params = [{transform_indices = @transform_0, window_bounds = array<i64: 1, 4, 512>}, {pipeline_mode = #tpu.pipeline_mode<synchronous>, transform_indices = @transform_1, window_bounds = array<i64: 4, 1>}, {pipeline_mode = #tpu.pipeline_mode<synchronous>, transform_indices = @transform_2, window_bounds = array<i64: 4, 1>}, {transform_indices = @transform_3, window_bounds = array<i64: 1, 4, 512>}]} {
    %c0 = arith.constant 0 : index
    %c0_0 = arith.constant 0 : index
    %c0_1 = arith.constant 0 : index
    %0 = vector.load %arg2[%c0, %c0_0, %c0_1] : memref<1x4x512xf32, #tpu.memory_space<vmem>>, vector<1x4x512xf32>
    %1 = vector.shape_cast %0 : vector<1x4x512xf32> to vector<4x512xf32>
    %c0_2 = arith.constant 0 : index
    %c0_3 = arith.constant 0 : index
    %2 = vector.load %arg3[%c0_2, %c0_3] : memref<4x1xf32, #tpu.memory_space<vmem>>, vector<4x1xf32>
    %3 = vector.broadcast %2 : vector<4x1xf32> to vector<4x512xf32>
    %4 = arith.mulf %1, %3 : vector<4x512xf32>
    %c0_4 = arith.constant 0 : index
    %c0_5 = arith.constant 0 : index
    %5 = vector.load %arg4[%c0_4, %c0_5] : memref<4x1xf32, #tpu.memory_space<vmem>>, vector<4x1xf32>
    %6 = vector.broadcast %5 : vector<4x1xf32> to vector<4x512xf32>
    %7 = arith.addf %4, %6 : vector<4x512xf32>
    %cst = arith.constant 0.000000e+00 : f32
    %8 = vector.broadcast %cst : f32 to vector<4x512xf32>
    %9 = arith.maximumf %7, %8 : vector<4x512xf32>
    %c0_6 = arith.constant 0 : index
    %c0_7 = arith.constant 0 : index
    %c0_8 = arith.constant 0 : index
    %10 = vector.load %arg5[%c0_6, %c0_7, %c0_8] : memref<1x4x512xf32, #tpu.memory_space<vmem>>, vector<1x4x512xf32>
    %11 = vector.shape_cast %10 : vector<1x4x512xf32> to vector<4x512xf32>
    %12 = vector.shape_cast %9 : vector<4x512xf32> to vector<1x4x512xf32>
    tpu.vector_store %arg5[%c0_6, %c0_7, %c0_8], %12 {strides = array<i32>} : memref<1x4x512xf32, #tpu.memory_space<vmem>>, vector<1x4x512xf32>,
    return
  }
  func.func @transform_0(%arg0: i32, %arg1: i32) -> (i32, i32, i32) {
    %c0_i32 = arith.constant 0 : i32
    %c0_i32_0 = arith.constant 0 : i32
    return %arg0, %c0_i32, %arg1 : i32, i32, i32
  }
  func.func @transform_1(%arg0: i32, %arg1: i32) -> (i32, i32) {
    %c0_i32 = arith.constant 0 : i32
    %c0_i32_0 = arith.constant 0 : i32
    %c0_i32_1 = arith.constant 0 : i32
    return %c0_i32, %c0_i32_0 : i32, i32
  }
  func.func @transform_2(%arg0: i32, %arg1: i32) -> (i32, i32) {
    %c0_i32 = arith.constant 0 : i32
    %c0_i32_0 = arith.constant 0 : i32
    %c0_i32_1 = arith.constant 0 : i32
    return %c0_i32, %c0_i32_0 : i32, i32
  }
  func.func @transform_3(%arg0: i32, %arg1: i32) -> (i32, i32, i32) {
    %c0_i32 = arith.constant 0 : i32
    %c0_i32_0 = arith.constant 0 : i32
    return %arg0, %c0_i32, %arg1 : i32, i32, i32
  }
}

</mosaic_0001>

<bundles_post_ra>
// kernel: decoder_block_forward.4
= control target key start
LH: loop header
LB: loop body
LE: loop exit
PB: predicated region body
PF: predicated region fallthrough
CT: control target
= control target key end

     0   :  { %vm43_vm0 = vcmask 64512   ;;  %v171_v3 = vmov 0   ;;  %s235_s0 = inlined_call_operand.vmem [shape: f32[8,128], index: 0, kind: input, shape index: {}]   ;;  %s236_s1 = inlined_call_operand.vmem [shape: f32[32,8], index: 1, kind: input, shape index: {}]   ;;  %s237_s2 = inlined_call_operand.vmem [shape: f32[32,1], index: 2, kind: input, shape index: {}]   ;;  %s238_s3 = inlined_call_operand.vmem [shape: f32[32,128], index: 3, kind: output, shape index: {}]  }
   0x1   :  { %v18_v0 = vld [vmem:[%s235_s0] sm:$0xff]  ;;  %v16_v2 = vld [vmem:[%s236_s1 + $0x10] sm:$0xff]  ;;  %170 = vset.pattern.permute.xlu1 %v171_v3  ;;  %169 = vset.pattern.permute.xlu0 %v171_v3  ;;  %v15_v4 = vld [vmem:[%s236_s1 + $0x8] sm:$0xff] }
   0x2   :  { %v14_v1 = vld [vmem:[%s236_s1] sm:$0xff]  ;;  %158 = vmatprep.subr.mxu0 %v18_v0  ;;  %166 = vmatprep.subr.mxu1 %v18_v0  ;;  %v17_v5 = vld [vmem:[%s236_s1 + $0x18] sm:$0xff]  ;;  %v21_v6 = vld [vmem:[%s237_s2 + $0x10] sm:$0xff] }
   0x3   :  { %159 = vmatpush3.msra.mxu0 %v18_v0  ;;  %167 = vmatpush3.msra.mxu1 %v18_v0  ;;  %v19_v7 = vld [vmem:[%s237_s2] sm:$0xff]  ;;  %v22_v8 = vld [vmem:[%s237_s2 + $0x18] sm:$0xff]  ;;  %v20_v9 = vld [vmem:[%s237_s2 + $0x8] sm:$0xff] }
   0x4   :  { %160 = vmatprep.mubr.msk.f32.mxu0 %vm43_vm0, %v14_v1  ;;  %163 = vmatprep.mubr.msk.f32.mxu1 %vm43_vm0, %v16_v2 }
   0x5   :  { %161 = vmatmul.mubr.msk.f32.vlgmr.msra.gmra.mrb[0].mxu0 %vm43_vm0, %v15_v4  ;;  %164 = vmatmul.mubr.msk.f32.vlgmr.msra.gmra.mrb[0].mxu1 %vm43_vm0, %v17_v5 }
   0x6   :  { %35 = vperm.xlu1 %170, %v21_v6   ;;  %25 = vperm.xlu0 %169, %v19_v7  }
   0xa   :  { %40 = vperm.xlu1 %170, %v22_v8   ;;  %30 = vperm.xlu0 %169, %v20_v9  }
  0x85   :  { %v36_v10 = vpop.permute.xlu1 %35  ;;  %v26_v11 = vpop.permute.xlu0 %25 }
  0x89   :  { %v41_v12 = vpop.permute.xlu1 %40  ;;  %v31_v13 = vpop.permute.xlu0 %30 }
  0xd8   :  { %v162_v14 = vpop.f32.mrb[0].mxu0  ;;  %v165_v15 = vpop.f32.mrb[0].mxu1 }
  0xd9   :  { %v128_v16 = vadd.f32 %v162_v14, %v31_v13  ;;  %v138_v17 = vadd.f32 %v165_v15, %v41_v12  ;;  %v122_v18 = vpop.f32.mrb[1].mxu0  ;;  %v132_v19 = vpop.f32.mrb[1].mxu1 }
  0xda   :  { %v123_v20 = vadd.f32 %v122_v18, %v26_v11  ;;  %v133_v21 = vadd.f32 %v132_v19, %v36_v10 }
  0xdb   :  { %142 = vst [vmem:[%s238_s3 + $0x8] sm:$0xff] %v128_v16  ;;  %144 = vst [vmem:[%s238_s3 + $0x18] sm:$0xff] %v138_v17 }
  0xdc   :  { %141 = vst [vmem:[%s238_s3] sm:$0xff] %v123_v20  ;;  %143 = vst [vmem:[%s238_s3 + $0x10] sm:$0xff] %v133_v21 }

// kernel: decoder_block_forward.6
= control target key start
LH: loop header
LB: loop body
LE: loop exit
PB: predicated region body
PF: predicated region fallthrough
CT: control target
= control target key end

     0   :  { %s2280_s13 = smov 0   ;;  %s2282_s14 = smov 0   ;;  %s2800_s0 = inlined_call_operand.vmem [shape: f32[2,4,1024], index: 0, kind: input, shape index: {}, may-alias: {0,1}]   ;;  %s2801_s1 = inlined_call_operand.vmem [shape: f32[2,4,1024], index: 1, kind: input, shape index: {}, may-alias: {0,1}]   ;;  %s2802_s2 = inlined_call_operand.vmem [shape: f32[4,1], index: 2, kind: input, shape index: {}]   ;;  %s2803_s3 = inlined_call_operand.vmem [shape: f32[4,1], index: 3, kind: input, shape index: {}]   ;;  %s2804_s4 = inlined_call_operand.vmem [shape: f32[4,108], index: 4, kind: input, shape index: {}]   ;;  %s2805_s5 = inlined_call_operand.vmem [shape: f32[1,1024], index: 5, kind: input, shape index: {}, may-alias: {5,6,7}]   ;;  %s2806_s6 = inlined_call_operand.vmem [shape: f32[1,1024], index: 6, kind: input, shape index: {}, may-alias: {5,6,7}]   ;;  %s2807_s7 = inlined_call_operand.vmem [shape: f32[1,1024], index: 7, kind: input, shape index: {}, may-alias: {5,6,7}]   ;;  %s2808_s8 = inlined_call_operand.vmem [shape: f32[2,4,1024], index: 8, kind: output, shape index: {0}]   ;;  %s2809_s9 = inlined_call_operand.vmem [shape: f32[2,4,1], index: 9, kind: output, shape index: {1}]   ;;  %s2810_s10 = inlined_call_operand.vmem [shape: f32[2,4,1], index: 10, kind: output, shape index: {2}]  }
   0x1   :  { %2815 = sst [smem:[#allocation10_spill]] %s2801_s1  ;;  %s2284_s15 = smov 0  }
   0x2   :  { %2816 = sst [smem:[#allocation11_spill]] %s2804_s4  ;;  %s2286_s16 = smov 0  }
   0x3   :  { %2817 = sst [smem:[#allocation12_spill]] %s2807_s7  ;;  %s2288_s17 = smov 0  }
   0x4 LB: > { %2818 = sst [smem:[#allocation4_spill]] %s2181_s15  ;;  %s30_s18 = sadd.s32 1, %s2181_s15  ;;  %s2189_s17 = sphi %s2288_s17, %s21_s17   ;;  %s2185_s16 = sphi %s2286_s16, %s2835_s16   ;;  %s2181_s15 = sphi %s2284_s15, %s2834_s15   ;;  %s2177_s14 = sphi %s2282_s14, %s2833_s14   ;;  %s2173_s13 = sphi %s2280_s13, %s2832_s13  }
   0x5   : > { %2819 = sst [smem:[#allocation5_spill]] %s2185_s16  ;;  %s33_s19 = sadd.s32 1, %s2185_s16 }
   0x6   : > { %2820 = sst [smem:[#allocation6_spill]] %s2189_s17  ;;  %p31_p0 = scmp.ge.s32.totalorder %s30_s18, 2 }
   0x7   : > { %p1969_p1 = scmp.ge.s32.totalorder %s2189_s17, 1  ;;  %p392_p2 = scmp.lt.s32.totalorder %s2189_s17, 5 }
   0x8   : > { %s2837_s18 = smov (%p31_p0, %s30_s18), 0  ;;  %s2839_s19 = smov (!%p31_p0, %s33_s19), %s2185_s16 }
   0x9   : > { %2821 = sst [smem:[#allocation7_spill]] %s2837_s18  ;;  %p393_p3 = pnand %p1969_p1, %p392_p2 }
   0xa   : > { %p35_p4 = scmp.ge.s32.totalorder %s2839_s19, 2 }
   0xb   : > { %396 = sbr.rel (%p393_p3) target bundleno = 1105 (0x451), region = 52 }
   0xc   : > { %s2841_s19 = smov (%p35_p4, %s2839_s19), 0 }
   0xd   : > { %2822 = sst [smem:[#allocation8_spill]] %s2841_s19 }
  0x12   : > { %s2313_s20 = sadd.s32 1, %s2173_s13  ;;  %p469_p5 = scmp.lt.s32.totalorder %s2177_s14, 1 }
  0x13   : > { %2823 = sst [smem:[#allocation9_spill]] %s2313_s20  ;;  %p466_p6 = scmp.lt.s32.totalorder %s2313_s20, 1 }
  0x14   : > { %s1975_s21 = sshll.u32 %s2173_s13, 2  ;;  %s2843_s14 = smov (!%p469_p5, %s2177_s14), 1 }
  0x15   : > { %s467_s22 = scalar_select %p466_p6, %s2313_s20, 1 }
  0x16   : > { %s1994_s23 = sshll.u32 %s2843_s14, 5  ;;  %s2824_s1 = sld [smem:[#allocation10_spill]] }
  0x17   : > { %s1970_s24 = sshll.u32 %s467_s22, 2  ;;  %p487_p8 = scmp.lt.s32.totalorder %s1975_s21, 7 }
  0x18   : > { %p471_p7 = scmp.lt.s32.totalorder %s1970_s24, 7  ;;  %s1971_s28 = sshll.u32 %s2843_s14, 3 }
  0x19   : > { %s1980_s29 = sshll.u32 %s2843_s14, 2  ;;  %s2847_s21 = smov (!%p487_p8, %s1975_s21), 7 }
  0x1a   : > { %s2845_s24 = smov (!%p471_p7, %s1970_s24), 7  ;;  %s508_s16 = sadd.s32 %s1971_s28, %s2847_s21 }
  0x1b   : > { %s474_s30 = sadd.s32 %s1971_s28, %s2845_s24  ;;  %s497_s22 = scalar_lea.vmem %s2806_s6, %s2845_s24 }
  0x1c   : > { %s2321_s27 = scalar_lea.vmem %s2824_s1, %s1994_s23  ;;  %s1972_s25 = sshll.u32 %s474_s30, 2 }
  0x1d   : > { %s489_s1 = scalar_lea.vmem %s2805_s5, %s2847_s21  ;;  %s2339_s18 = scalar_lea.vmem %s2800_s0, %s1972_s25 }
  0x1e   : > { %s1979_s15 = sshll.u32 %s508_s16, 2  ;;  %s2345_s20 = scalar_lea.vmem %s2809_s9, %s1980_s29 }
  0x1f   : > { %s2350_s30 = scalar_lea.vmem %s2808_s8, %s1979_s15  ;;  %s2355_s26 = scalar_lea.vmem %s2810_s10, %s1980_s29 }
  0x20   : > { %p1982_p9 = scmp.ne.s32.totalorder %s2173_s13, 0 }
  0x21   : > { %v531_v0 = vld [vmem:[%s2802_s2] sm:$0xf] (!%p1982_p9)  ;;  %v2191_v1 = vmov (!%p1982_p9), 0   ;;  %vm524_vm0 = vcmask (!%p1982_p9), 3072   ;;  %v2192_v3 = vmov (!%p1982_p9), 0.0   ;;  %v539_v6 = vlaneseq (!%p1982_p9)  ;;  %s2825_s28 = sld [smem:[#allocation12_spill]] (!%p1982_p9) }
  0x22   : > { %523 = sbr.rel (%p1982_p9) target bundleno = 176 (0xb0), region = 56  ;;  %2129 = vset.pattern.permute.xlu0 (!%p1982_p9), %v2191_v1  ;;  %v546_v2 = vld [vmem:[%s2803_s3] sm:$0xf] (!%p1982_p9)  ;;  %525 = vst.msk [vmem:[%s2345_s20] sm:$0xf] (!%p1982_p9), %vm524_vm0, %v2192_v3  ;;  %528 = vst [vmem:[#allocation2 + $0x8] sm:$0xff] (!%p1982_p9), %v2192_v3 }
  0x23   : > { %534 = vperm.xlu0 (!%p1982_p9), %2129, %v531_v0   ;;  %526 = vst.msk [vmem:[%s2355_s26] sm:$0xf] (!%p1982_p9), %vm524_vm0, %v2192_v3  ;;  %v2193_v4 = vmov (!%p1982_p9), 839922192   ;;  %v540_v8 = vshrl.u32 (!%p1982_p9), %v539_v6, 7  ;;  %v529_v17 = vld [vmem:[%s2321_s27] sm:$0xff] (!%p1982_p9) }
  0x24   : > { %v537_v5 = vunpack.c.l.s4 (!%p1982_p9), %v2193_v4  ;;  %v530_v18 = vld [vmem:[%s2321_s27 + $0x8] sm:$0xff] (!%p1982_p9) }
  0x25   : > { %v567_v10 = vsub.s32 (!%p1982_p9), 0, %v540_v8  ;;  %v571_v11 = vsub.s32 (!%p1982_p9), 1, %v540_v8  ;;  %v575_v12 = vsub.s32 (!%p1982_p9), 2, %v540_v8  ;;  %v579_v13 = vsub.s32 (!%p1982_p9), 3, %v540_v8 }
  0x26   : > { %v538_v7 = vunpack.c.0.s8 (!%p1982_p9), %v537_v5 }
  0x27   : > { %549 = vperm.xlu0 (!%p1982_p9), %2129, %v546_v2   ;;  %v563_v15 = vld [vmem:[%s2825_s28] sm:$0xf] (!%p1982_p9) }
  0x28   : > { %v541_v9 = vsub.s32 (!%p1982_p9), %v538_v7, %v540_v8  ;;  %v568_v19 = vrot.slane (!%p1982_p9), %v563_v15, %v567_v10  ;;  %v572_v20 = vrot.slane (!%p1982_p9), %v563_v15, %v571_v11  ;;  %v576_v21 = vrot.slane (!%p1982_p9), %v563_v15, %v575_v12 }
  0x29   : > { %v580_v22 = vrot.slane %v563_v15, %v579_v13 }
  0x2a   : > { %v581_v27 = vcombine.low %v568_v19, %v572_v20 }
  0x2b   : > { %v582_v28 = vcombine.low %v576_v21, %v580_v22 }
  0xa2   : > { %v535_v14 = vpop.permute.xlu0 %534 }
  0xa3   : > { %v542_v16 = vrot.slane %v535_v14, %v541_v9 }
  0xa5   : > { %v544_v24 = vmul.f32 %v542_v16, %v529_v17  ;;  %v545_v25 = vmul.f32 %v542_v16, %v530_v18 }
  0xa6   : > { %v550_v23 = vpop.permute.xlu0 %549 }
  0xa7   : > { %v557_v26 = vrot.slane %v550_v23, %v541_v9 }
  0xa9   : > { %v559_v29 = vadd.f32 %v557_v26, %v544_v24  ;;  %v560_v30 = vadd.f32 %v557_v26, %v545_v25 }
  0xab   : > { %v561_v31 = vmax.f32 %v559_v29, 0.0  ;;  %v562_v32 = vmax.f32 %v560_v30, 0.0 }
  0xad   : > { %v585_v33 = vmul.f32 %v581_v27, %v561_v31  ;;  %v586_v34 = vmul.f32 %v582_v28, %v562_v32 }
  0xaf   : > { %587 = vst [vmem:[#allocation2 + $0x10] sm:$0xff] %v585_v33  ;;  %588 = vst [vmem:[#allocation2 + $0x18] sm:$0xff] %v586_v34 }
  0xb0 PF: > { %p1983_p10 = scmp.le.s32.totalorder %s2173_s13, 0 }
  0xb1   : > { %v595_v36 = vld [vmem:[#allocation2 + $0x20] sm:$0xff] (!%p1983_p10)  ;;  %v596_v37 = vld [vmem:[#allocation2 + $0x28] sm:$0xff] (!%p1983_p10) }
  0xb2   : > { %592 = sbr.rel (%p1983_p10) target bundleno = 185 (0xb9), region = 60  ;;  %599 = vst [vmem:[#allocation2 + $0x10] sm:$0xff] (!%p1983_p10), %v595_v36 }
  0xb6   : > { %v594_v35 = vld [vmem:[#allocation2 + $0x18] sm:$0xff] (!%p1983_p10) }
  0xb7   : > { %598 = vst [vmem:[#allocation2 + $0x8] sm:$0xff] (!%p1983_p10), %v594_v35  ;;  %600 = vst [vmem:[#allocation2 + $0x18] sm:$0xff] (!%p1983_p10), %v596_v37 }
  0xb9 PF: > { %s2826_s27 = sld [smem:[#allocation9_spill]] }
  0xbf   : > { %p1984_p11 = scmp.ge.s32.totalorder %s2826_s27, 2 }
  0xc0   : > { %v608_v38 = vld [vmem:[%s2802_s2] sm:$0xf] (!%p1984_p11)  ;;  %v2194_v39 = vmov (!%p1984_p11), 0   ;;  %v2195_v41 = vmov (!%p1984_p11), 839922192   ;;  %v616_v43 = vlaneseq (!%p1984_p11)  ;;  %v607_v55 = vld [vmem:[%s2339_s18 + $0x8] sm:$0xff] (!%p1984_p11) }
  0xc1   : > { %605 = sbr.rel (%p1984_p11) target bundleno = 335 (0x14f), region = 64  ;;  %2130 = vset.pattern.permute.xlu0 (!%p1984_p11), %v2194_v39  ;;  %v623_v40 = vld [vmem:[%s2803_s3] sm:$0xf] (!%p1984_p11)  ;;  %v614_v42 = vunpack.c.l.s4 (!%p1984_p11), %v2195_v41 }
  0xc2   : > { %611 = vperm.xlu0 (!%p1984_p11), %2130, %v608_v38   ;;  %v617_v45 = vshrl.u32 (!%p1984_p11), %v616_v43, 7  ;;  %v640_v52 = vld [vmem:[%s497_s22] sm:$0xf] (!%p1984_p11) }
  0xc3   : > { %v615_v44 = vunpack.c.0.s8 (!%p1984_p11), %v614_v42  ;;  %v606_v54 = vld [vmem:[%s2339_s18] sm:$0xff] (!%p1984_p11) }
  0xc4   : > { %v644_v47 = vsub.s32 (!%p1984_p11), 0, %v617_v45  ;;  %v648_v48 = vsub.s32 (!%p1984_p11), 1, %v617_v45  ;;  %v652_v49 = vsub.s32 (!%p1984_p11), 2, %v617_v45  ;;  %v656_v50 = vsub.s32 (!%p1984_p11), 3, %v617_v45 }
  0xc5   : > { %v618_v46 = vsub.s32 (!%p1984_p11), %v615_v44, %v617_v45 }
  0xc6   : > { %626 = vperm.xlu0 (!%p1984_p11), %2130, %v623_v40   ;;  %v645_v56 = vrot.slane (!%p1984_p11), %v640_v52, %v644_v47  ;;  %v649_v57 = vrot.slane (!%p1984_p11), %v640_v52, %v648_v48  ;;  %v653_v58 = vrot.slane (!%p1984_p11), %v640_v52, %v652_v49  ;;  %v657_v59 = vrot.slane (!%p1984_p11), %v640_v52, %v656_v50 }
  0xc8   : > { %v658_v0 = vcombine.low %v645_v56, %v649_v57  ;;  %v659_v1 = vcombine.low %v653_v58, %v657_v59 }
 0x141   : > { %v612_v51 = vpop.permute.xlu0 %611 }
 0x142   : > { %v619_v53 = vrot.slane %v612_v51, %v618_v46 }
 0x144   : > { %v621_v61 = vmul.f32 %v619_v53, %v606_v54  ;;  %v622_v62 = vmul.f32 %v619_v53, %v607_v55 }
 0x145   : > { %v627_v60 = vpop.permute.xlu0 %626 }
 0x146   : > { %v634_v63 = vrot.slane %v627_v60, %v618_v46 }
 0x148   : > { %v636_v2 = vadd.f32 %v634_v63, %v621_v61  ;;  %v637_v3 = vadd.f32 %v634_v63, %v622_v62 }
 0x14a   : > { %v638_v4 = vmax.f32 %v636_v2, 0.0  ;;  %v639_v5 = vmax.f32 %v637_v3, 0.0 }
 0x14c   : > { %v662_v6 = vmul.f32 %v658_v0, %v638_v4  ;;  %v663_v7 = vmul.f32 %v659_v1, %v639_v5 }
 0x14e   : > { %664 = vst [vmem:[#allocation2 + $0x20] sm:$0xff] %v662_v6  ;;  %665 = vst [vmem:[#allocation2 + $0x28] sm:$0xff] %v663_v7 }
 0x14f PF: > { %s2827_s18 = sld [smem:[#allocation9_spill]] }
 0x155   : > { %p1985_p12 = scmp.lt.s32.totalorder %s2827_s18, 2 }
 0x156   : > { %v2196_v8 = vmov (!%p1985_p12), 0.0  }
 0x157   : > { %669 = sbr.rel (%p1985_p12) target bundleno = 350 (0x15e), region = 68  ;;  %670 = vst [vmem:[#allocation2 + $0x20] sm:$0xff] (!%p1985_p12), %v2196_v8  ;;  %671 = vst [vmem:[#allocation2 + $0x28] sm:$0xff] (!%p1985_p12), %v2196_v8 }
 0x15e PF: > { %v2387_v9 = vld [vmem:[#allocation2 + $0xc] sm:$0xff]  ;;  %v2389_v10 = vld [vmem:[#allocation2 + $0x14] sm:$0xff]  ;;  %s2197_s24 = smov 110   ;;  %s2198_s22 = smov 111   ;;  %v674_v18 = vld [vmem:[#allocation2 + $0x1c] sm:$0xf] }
 0x15f   : > { %714 = vrot.lane.b32.xlu1 %v2387_v9, %s2197_s24  ;;  %v2395_v11 = vcombine.high %v2387_v9, %v2387_v9  ;;  %v2399_v12 = vcombine.low %v2389_v10, %v2389_v10  ;;  %v2405_v13 = vld [vmem:[#allocation2 + $0x18] sm:$0xff]  ;;  %s2199_s23 = smov 109   ;;  %v2408_v14 = vld [vmem:[#allocation2 + $0x10] sm:$0xff]  ;;  %v709_v17 = vcombine.low %v2387_v9, %v2387_v9  ;;  %s2200_s19 = smov 101   ;;  %v2431_v19 = vcombine.high %v2389_v10, %v2389_v10  ;;  %v1095_v62 = vld [vmem:[#allocation2 + $0x20] sm:$0xf] }
 0x160   : > { %v2412_v15 = vcombine.low %v2405_v13, %v2405_v13  ;;  %1092 = vst [vmem:[#allocation3 + $0xd8] sm:$0xf0] %v2405_v13  ;;  %v2417_v16 = vcombine.low %v2408_v14, %v2408_v14  ;;  %1090 = vst [vmem:[#allocation3 + $0xc8] sm:$0xf0] %v2408_v14  ;;  %v2135_v20 = vld [vmem:[#allocation2 + $0x1c] ss:$0 sps:$4 sm:$0xff]   ;;  %v2481_v38 = vcombine.high %v2408_v14, %v2408_v14 }
 0x161   : > { %682 = vrot.lane.b32.xlu0 %v2395_v11, %s2198_s22  ;;  %v737_v21 = vld [vmem:[#allocation2 + $0x1c] sm:$0xf]  ;;  %s2201_s16 = smov 100   ;;  %s2202_s4 = smov 99   ;;  %vm722_vm1 = vcmask 900096   ;;  %vm690_vm2 = vcmask 908288   ;;  %v2506_v50 = vcombine.high %v2405_v13, %v2405_v13 }
 0x162   : > { %1091 = vst [vmem:[#allocation3 + $0xd0] sm:$0xf0] %v2412_v15  ;;  %1089 = vst [vmem:[#allocation3 + $0xc0] sm:$0xf0] %v2417_v16  ;;  %v2136_v22 = vld [vmem:[#allocation2 + $0x1c] ss:$0 sps:$4 sm:$0xff]  }
 0x163   : > { %716 = vrot.lane.b32.xlu1 %v2399_v12, %s2197_s24  ;;  %s2203_s7 = smov 91   ;;  %s2204_s15 = smov 90   ;;  %v800_v23 = vld [vmem:[#allocation2 + $0x1c] sm:$0xf]  ;;  %vm753_vm3 = vcmask 891904   ;;  %vm785_vm4 = vcmask 826368  }
 0x164   : > { %v2137_v24 = vld [vmem:[#allocation2 + $0x1c] ss:$0 sps:$4 sm:$0xff]   ;;  %s2205_s17 = smov 89   ;;  %s2206_s28 = smov 11   ;;  %v2145_v6 = vld [vmem:[#allocation2 + $0x20] ss:$0 sps:$4 sm:$0xff]  }
 0x165   : > { %684 = vrot.lane.b32.xlu0 %v2389_v10, %s2198_s22  ;;  %v863_v25 = vld [vmem:[#allocation2 + $0x1c] sm:$0xf]  ;;  %s2207_s27 = smov 10   ;;  %s2208_s29 = smov 9   ;;  %vm816_vm5 = vcmask 818176   ;;  %vm848_vm6 = vcmask 809984  }
 0x166   : > { %v2138_v26 = vld [vmem:[#allocation2 + $0x1c] ss:$0 sps:$4 sm:$0xff]   ;;  %s2209_s25 = smov 1   ;;  %s2210_s13 = smov 127   ;;  %vm879_vm7 = vcmask 744448   ;;  %vm911_vm8 = vcmask 736256  }
 0x167   : > { %747 = vrot.lane.b32.xlu1 %v2389_v10, %s2199_s23  ;;  %v926_v27 = vld [vmem:[#allocation2 + $0x1c] sm:$0xf]  ;;  %s2211_s14 = smov 119   ;;  %s2212_s11 = smov 118   ;;  %vm942_vm9 = vcmask 728064   ;;  %vm974_vm10 = vcmask 89088  }
 0x168   : > { %v2139_v28 = vld [vmem:[#allocation2 + $0x1c] ss:$0 sps:$4 sm:$0xff]   ;;  %s2213_s12 = smov 117   ;;  %s2214_s18 = smov 39   ;;  %vm1005_vm11 = vcmask 80896   ;;  %vm1037_vm12 = vcmask 72704  }
 0x169   : > { %745 = vrot.lane.b32.xlu0 %v2395_v11, %s2199_s23  ;;  %v989_v29 = vld [vmem:[#allocation2 + $0x1c] sm:$0xf]  ;;  %vm1068_vm13 = vcmask 7168   ;;  %vm1111_vm14 = vcmask 1039360   ;;  %vm1143_vm15 = vcmask 973824   ;;  %vm1174_vm0 = vcmask 965632  }
 0x16a   : > { %v2140_v30 = vld [vmem:[#allocation2 + $0x1c] ss:$0 sps:$4 sm:$0xff]  }
 0x16b   : > { %779 = vrot.lane.b32.xlu1 %v2399_v12, %s2200_s19  ;;  %v1052_v57 = vld [vmem:[#allocation2 + $0x1c] sm:$0xf] }
 0x16d   : > { %777 = vrot.lane.b32.xlu0 %v2387_v9, %s2200_s19 }
 0x16f   : > { %712 = vrot.lane.b32.xlu1 %v709_v17, %s2197_s24 }
 0x171   : > { %680 = vrot.lane.b32.xlu0 %v2387_v9, %s2198_s22 }
 0x173   : > { %775 = vrot.lane.b32.xlu1 %v709_v17, %s2200_s19 }
 0x175   : > { %743 = vrot.lane.b32.xlu0 %v2387_v9, %s2199_s23 }
 0x177   : > { %688 = vrot.lane.b32.xlu1 %v674_v18, %s2198_s22 }
 0x179   : > { %686 = vrot.lane.b32.xlu0 %v2431_v19, %s2198_s22  ;;  %s2216_s22 = smov 37  }
 0x17b   : > { %720 = vrot.lane.b32.xlu1 %v2135_v20, %s2197_s24 }
 0x17d   : > { %718 = vrot.lane.b32.xlu0 %v2389_v10, %s2197_s24  ;;  %s2215_s24 = smov 38  }
 0x17f   : > { %751 = vrot.lane.b32.xlu1 %v737_v21, %s2199_s23 }
 0x181   : > { %749 = vrot.lane.b32.xlu0 %v2431_v19, %s2199_s23  ;;  %s2217_s23 = smov 29  }
 0x183   : > { %783 = vrot.lane.b32.xlu1 %v2136_v22, %s2200_s19 }
 0x185   : > { %781 = vrot.lane.b32.xlu0 %v2389_v10, %s2200_s19  ;;  %s2218_s19 = smov 28  }
 0x187   : > { %810 = vrot.lane.b32.xlu1 %v2389_v10, %s2201_s16 }
 0x189   : > { %808 = vrot.lane.b32.xlu0 %v2395_v11, %s2201_s16 }
 0x18b   : > { %842 = vrot.lane.b32.xlu1 %v2399_v12, %s2202_s4 }
 0x18d   : > { %840 = vrot.lane.b32.xlu0 %v2387_v9, %s2202_s4 }
 0x18f   : > { %873 = vrot.lane.b32.xlu1 %v2389_v10, %s2203_s7 }
 0x191   : > { %871 = vrot.lane.b32.xlu0 %v2395_v11, %s2203_s7 }
 0x193   : > { %905 = vrot.lane.b32.xlu1 %v2399_v12, %s2204_s15 }
 0x195   : > { %903 = vrot.lane.b32.xlu0 %v2387_v9, %s2204_s15 }
 0x197   : > { %838 = vrot.lane.b32.xlu1 %v709_v17, %s2202_s4 }
 0x199   : > { %806 = vrot.lane.b32.xlu0 %v2387_v9, %s2201_s16 }
 0x19b   : > { %901 = vrot.lane.b32.xlu1 %v709_v17, %s2204_s15 }
 0x19d   : > { %869 = vrot.lane.b32.xlu0 %v2387_v9, %s2203_s7 }
 0x19f   : > { %814 = vrot.lane.b32.xlu1 %v800_v23, %s2201_s16 }
 0x1a1   : > { %812 = vrot.lane.b32.xlu0 %v2431_v19, %s2201_s16  ;;  %s2219_s16 = smov 27  }
 0x1a3   : > { %846 = vrot.lane.b32.xlu1 %v2137_v24, %s2202_s4 }
 0x1a5   : > { %844 = vrot.lane.b32.xlu0 %v2389_v10, %s2202_s4  ;;  %s2220_s4 = smov 19  }
 0x1a7   : > { %877 = vrot.lane.b32.xlu1 %v863_v25, %s2203_s7 }
 0x1a9   : > { %875 = vrot.lane.b32.xlu0 %v2431_v19, %s2203_s7  ;;  %s2221_s7 = smov 18  }
 0x1ab   : > { %909 = vrot.lane.b32.xlu1 %v2138_v26, %s2204_s15 }
 0x1ad   : > { %907 = vrot.lane.b32.xlu0 %v2389_v10, %s2204_s15  ;;  %s2222_s15 = smov 17  }
 0x1af   : > { %936 = vrot.lane.b32.xlu1 %v2389_v10, %s2205_s17 }
 0x1b1   : > { %934 = vrot.lane.b32.xlu0 %v2395_v11, %s2205_s17 }
 0x1b3   : > { %968 = vrot.lane.b32.xlu1 %v2399_v12, %s2206_s28 }
 0x1b5   : > { %966 = vrot.lane.b32.xlu0 %v2387_v9, %s2206_s28 }
 0x1b7   : > { %999 = vrot.lane.b32.xlu1 %v2389_v10, %s2207_s27 }
 0x1b9   : > { %997 = vrot.lane.b32.xlu0 %v2395_v11, %s2207_s27 }
 0x1bb   : > { %1031 = vrot.lane.b32.xlu1 %v2399_v12, %s2208_s29 }
 0x1bd   : > { %1029 = vrot.lane.b32.xlu0 %v2387_v9, %s2208_s29 }
 0x1bf   : > { %964 = vrot.lane.b32.xlu1 %v709_v17, %s2206_s28 }
 0x1c1   : > { %932 = vrot.lane.b32.xlu0 %v2387_v9, %s2205_s17 }
 0x1c3   : > { %1027 = vrot.lane.b32.xlu1 %v709_v17, %s2208_s29 }
 0x1c5   : > { %995 = vrot.lane.b32.xlu0 %v2387_v9, %s2207_s27 }
 0x1c7   : > { %940 = vrot.lane.b32.xlu1 %v926_v27, %s2205_s17 }
 0x1c9   : > { %938 = vrot.lane.b32.xlu0 %v2431_v19, %s2205_s17 }
 0x1cb   : > { %972 = vrot.lane.b32.xlu1 %v2139_v28, %s2206_s28 }
 0x1cd   : > { %970 = vrot.lane.b32.xlu0 %v2389_v10, %s2206_s28 }
 0x1cf   : > { %1003 = vrot.lane.b32.xlu1 %v989_v29, %s2207_s27 }
 0x1d1   : > { %v715_v31 = vpop.permute.xlu1 %714  ;;  %1001 = vrot.lane.b32.xlu0 %v2431_v19, %s2207_s27  ;;  %s2830_s27 = sld [smem:[#allocation11_spill]] }
 0x1d3   : > { %1035 = vrot.lane.b32.xlu1 %v2140_v30, %s2208_s29  ;;  %v683_v32 = vpop.permute.xlu0 %682 }
 0x1d5   : > { %v2467_v33 = vpop.permute.xlu1 %716  ;;  %1033 = vrot.lane.b32.xlu0 %v2389_v10, %s2208_s29 }
 0x1d6   : > { %v724_v34 = vsel %vm722_vm1, %v715_v31, %v2467_v33 }
 0x1d7   : > { %732 = vst [vmem:[#allocation3 + $0x8] sm:$0xf0] %v724_v34  ;;  %1062 = vrot.lane.b32.xlu1 %v2389_v10, %s2209_s25  ;;  %v685_v35 = vpop.permute.xlu0 %684 }
 0x1d8   : > { %v692_v36 = vsel %vm690_vm2, %v683_v32, %v685_v35 }
 0x1d9   : > { %700 = vst [vmem:[#allocation3 + $0x8] sm:$0xf] %v692_v36  ;;  %v2475_v37 = vpop.permute.xlu1 %747  ;;  %1060 = vrot.lane.b32.xlu0 %v2395_v11, %s2209_s25 }
 0x1db   : > { %1105 = vrot.lane.b32.xlu1 %v2405_v13, %s2210_s13  ;;  %v746_v39 = vpop.permute.xlu0 %745 }
 0x1dc   : > { %v755_v40 = vsel %vm753_vm3, %v746_v39, %v2475_v37 }
 0x1dd   : > { %763 = vst [vmem:[#allocation3 + $0x28] sm:$0xf] %v755_v40  ;;  %v2487_v41 = vpop.permute.xlu1 %779  ;;  %1103 = vrot.lane.b32.xlu0 %v2481_v38, %s2210_s13 }
 0x1df   : > { %1137 = vrot.lane.b32.xlu1 %v2412_v15, %s2211_s14  ;;  %v778_v42 = vpop.permute.xlu0 %777 }
 0x1e0   : > { %v787_v43 = vsel %vm785_vm4, %v778_v42, %v2487_v41  ;;  %v1504_v53 = vld [vmem:[#allocation3 + $0x8] sm:$0xff] }
 0x1e1   : > { %795 = vst [vmem:[#allocation3 + $0x28] sm:$0xf0] %v787_v43  ;;  %v713_v44 = vpop.permute.xlu1 %712  ;;  %1135 = vrot.lane.b32.xlu0 %v2408_v14, %s2211_s14  ;;  %v1158_v43 = vld [vmem:[#allocation2 + $0x20] sm:$0xf] }
 0x1e2   : > { %v723_v45 = vsel %vm722_vm1, %v713_v44, %v715_v31 }
 0x1e3   : > { %731 = vst [vmem:[#allocation3] sm:$0xf0] %v723_v45  ;;  %1101 = vrot.lane.b32.xlu1 %v2408_v14, %s2210_s13  ;;  %v681_v46 = vpop.permute.xlu0 %680 }
 0x1e4   : > { %v691_v47 = vsel %vm690_vm2, %v681_v46, %v683_v32 }
 0x1e5   : > { %699 = vst [vmem:[#allocation3] sm:$0xf] %v691_v47  ;;  %v776_v48 = vpop.permute.xlu1 %775  ;;  %1058 = vrot.lane.b32.xlu0 %v2387_v9, %s2209_s25 }
 0x1e6   : > { %v786_v49 = vsel %vm785_vm4, %v776_v48, %v778_v42 }
 0x1e7   : > { %794 = vst [vmem:[#allocation3 + $0x20] sm:$0xf0] %v786_v49  ;;  %1064 = vrot.lane.b32.xlu1 %v2431_v19, %s2209_s25  ;;  %v744_v51 = vpop.permute.xlu0 %743 }
 0x1e8   : > { %v754_v52 = vsel %vm753_vm3, %v744_v51, %v746_v39  ;;  %v1508_v54 = vld [vmem:[#allocation3 + $0x28] sm:$0xff]  ;;  %v2146_v51 = vld [vmem:[#allocation2 + $0x20] ss:$0 sps:$4 sm:$0xff]  }
 0x1e9   : > { %762 = vst [vmem:[#allocation3 + $0x20] sm:$0xf] %v754_v52  ;;  %v689_v55 = vpop.permute.xlu1 %688  ;;  %1133 = vrot.lane.b32.xlu0 %v2417_v16, %s2211_s14  ;;  %v1995_v56 = vpack.c.bf16 %v1508_v54, %v1504_v53 }
 0x1eb   : > { %1107 = vrot.lane.b32.xlu1 %v2506_v50, %s2210_s13  ;;  %1996 = vmatprep.subr.bf16.mxu0 %v1995_v56  ;;  %v687_v58 = vpop.permute.xlu0 %686  ;;  %v1221_v56 = vld [vmem:[#allocation2 + $0x20] sm:$0xf] }
 0x1ec   : > { %v693_v59 = vsel %vm690_vm2, %v685_v35, %v687_v58  ;;  %v694_v60 = vsel %vm690_vm2, %v687_v58, %v689_v55  ;;  %v1503_v2 = vld [vmem:[#allocation3] sm:$0xff]  ;;  %vm1237_vm2 = vcmask 318464  }
 0x1ed   : > { %701 = vst [vmem:[#allocation3 + $0x10] sm:$0xf] %v693_v59  ;;  %702 = vst [vmem:[#allocation3 + $0x18] sm:$0xf] %v694_v60  ;;  %v721_v61 = vpop.permute.xlu1 %720  ;;  %1066 = vrot.lane.b32.xlu0 %v1052_v57, %s2209_s25 }
 0x1ef   : > { %1139 = vrot.lane.b32.xlu1 %v2405_v13, %s2211_s14  ;;  %v719_v63 = vpop.permute.xlu0 %718 }
 0x1f0   : > { %v725_v0 = vsel %vm722_vm1, %v2467_v33, %v719_v63  ;;  %v726_v1 = vsel %vm722_vm1, %v719_v63, %v721_v61  ;;  %v1507_v3 = vld [vmem:[#allocation3 + $0x20] sm:$0xff]  ;;  %vm1206_vm1 = vcmask 957440  }
 0x1f1   : > { %733 = vst [vmem:[#allocation3 + $0x10] sm:$0xf0] %v725_v0  ;;  %734 = vst [vmem:[#allocation3 + $0x18] sm:$0xf0] %v726_v1  ;;  %v752_v4 = vpop.permute.xlu1 %751  ;;  %1109 = vrot.lane.b32.xlu0 %v1095_v62, %s2210_s13  ;;  %v1997_v5 = vpack.c.bf16 %v1507_v3, %v1503_v2  ;;  %v2147_v0 = vld [vmem:[#allocation2 + $0x20] ss:$0 sps:$4 sm:$0xff]  }
 0x1f3   : > { %1166 = vrot.lane.b32.xlu1 %v2481_v38, %s2212_s11  ;;  %1998 = vmatpush1.bf16.msra.mxu0 %v1997_v5  ;;  %v750_v7 = vpop.permute.xlu0 %749 }
 0x1f4   : > { %v756_v8 = vsel %vm753_vm3, %v2475_v37, %v750_v7  ;;  %v757_v9 = vsel %vm753_vm3, %v750_v7, %v752_v4  ;;  %vm1269_vm3 = vcmask 310272  }
 0x1f5   : > { %764 = vst [vmem:[#allocation3 + $0x30] sm:$0xf] %v756_v8  ;;  %765 = vst [vmem:[#allocation3 + $0x38] sm:$0xf] %v757_v9  ;;  %v784_v10 = vpop.permute.xlu1 %783  ;;  %1141 = vrot.lane.b32.xlu0 %v2145_v6, %s2211_s14 }
 0x1f7   : > { %1198 = vrot.lane.b32.xlu1 %v2408_v14, %s2213_s12  ;;  %v782_v11 = vpop.permute.xlu0 %781 }
 0x1f8   : > { %v788_v12 = vsel %vm785_vm4, %v2487_v41, %v782_v11  ;;  %v789_v17 = vsel %vm785_vm4, %v782_v11, %v784_v10  ;;  %v1506_v23 = vld [vmem:[#allocation3 + $0x18] sm:$0xff]  ;;  %v1505_v26 = vld [vmem:[#allocation3 + $0x10] sm:$0xff]  ;;  %vm1300_vm4 = vcmask 302080  }
 0x1f9   : > { %796 = vst [vmem:[#allocation3 + $0x30] sm:$0xf0] %v788_v12  ;;  %797 = vst [vmem:[#allocation3 + $0x38] sm:$0xf0] %v789_v17  ;;  %v2535_v18 = vpop.permute.xlu1 %810  ;;  %1168 = vrot.lane.b32.xlu0 %v2405_v13, %s2212_s11 }
 0x1fb   : > { %1229 = vrot.lane.b32.xlu1 %v2481_v38, %s2214_s18  ;;  %v809_v19 = vpop.permute.xlu0 %808 }
 0x1fc   : > { %v818_v20 = vsel %vm816_vm5, %v809_v19, %v2535_v18 }
 0x1fd   : > { %826 = vst [vmem:[#allocation3 + $0x48] sm:$0xf] %v818_v20  ;;  %v2543_v21 = vpop.permute.xlu1 %842  ;;  %1200 = vrot.lane.b32.xlu0 %v2412_v15, %s2213_s12 }
 0x1ff   : > { %1261 = vrot.lane.b32.xlu1 %v2408_v14, %s2215_s24  ;;  %v841_v22 = vpop.permute.xlu0 %840 }
 0x200   : > { %v850_v24 = vsel %vm848_vm6, %v841_v22, %v2543_v21  ;;  %v1510_v25 = vld [vmem:[#allocation3 + $0x38] sm:$0xff]  ;;  %v1509_v27 = vld [vmem:[#allocation3 + $0x30] sm:$0xff] }
 0x201   : > { %858 = vst [vmem:[#allocation3 + $0x48] sm:$0xf0] %v850_v24  ;;  %v2551_v28 = vpop.permute.xlu1 %873  ;;  %1231 = vrot.lane.b32.xlu0 %v2405_v13, %s2214_s18  ;;  %v2025_v29 = vpack.c.bf16 %v1510_v25, %v1506_v23  ;;  %v2027_v30 = vpack.c.bf16 %v1509_v27, %v1505_v26 }
 0x203   : > { %1164 = vrot.lane.b32.xlu1 %v2408_v14, %s2212_s11  ;;  %2026 = vmatprep.subr.bf16.mxu1 %v2025_v29  ;;  %v872_v31 = vpop.permute.xlu0 %871 }
 0x204   : > { %v881_v32 = vsel %vm879_vm7, %v872_v31, %v2551_v28  ;;  %2028 = vmatpush1.bf16.msra.mxu1 %v2027_v30 }
 0x205   : > { %889 = vst [vmem:[#allocation3 + $0x68] sm:$0xf] %v881_v32  ;;  %v2559_v33 = vpop.permute.xlu1 %905  ;;  %1263 = vrot.lane.b32.xlu0 %v2412_v15, %s2215_s24 }
 0x207   : > { %1227 = vrot.lane.b32.xlu1 %v2408_v14, %s2214_s18  ;;  %v904_v34 = vpop.permute.xlu0 %903 }
 0x208   : > { %v913_v35 = vsel %vm911_vm8, %v904_v34, %v2559_v33  ;;  %v1512_v46 = vld [vmem:[#allocation3 + $0x48] sm:$0xff] }
 0x209   : > { %921 = vst [vmem:[#allocation3 + $0x68] sm:$0xf0] %v913_v35  ;;  %v839_v36 = vpop.permute.xlu1 %838  ;;  %1196 = vrot.lane.b32.xlu0 %v2417_v16, %s2213_s12 }
 0x20a   : > { %v849_v37 = vsel %vm848_vm6, %v839_v36, %v841_v22  ;;  %v1284_v36 = vld [vmem:[#allocation2 + $0x20] sm:$0xf] }
 0x20b   : > { %857 = vst [vmem:[#allocation3 + $0x40] sm:$0xf0] %v849_v37  ;;  %1170 = vrot.lane.b32.xlu1 %v2506_v50, %s2212_s11  ;;  %v807_v39 = vpop.permute.xlu0 %806 }
 0x20c   : > { %v817_v40 = vsel %vm816_vm5, %v807_v39, %v809_v19 }
 0x20d   : > { %825 = vst [vmem:[#allocation3 + $0x40] sm:$0xf] %v817_v40  ;;  %v902_v41 = vpop.permute.xlu1 %901  ;;  %1259 = vrot.lane.b32.xlu0 %v2417_v16, %s2215_s24 }
 0x20e   : > { %v912_v42 = vsel %vm911_vm8, %v902_v41, %v904_v34 }
 0x20f   : > { %920 = vst [vmem:[#allocation3 + $0x60] sm:$0xf0] %v912_v42  ;;  %1202 = vrot.lane.b32.xlu1 %v2405_v13, %s2213_s12  ;;  %v870_v44 = vpop.permute.xlu0 %869 }
 0x210   : > { %v880_v45 = vsel %vm879_vm7, %v870_v44, %v872_v31  ;;  %v1516_v47 = vld [vmem:[#allocation3 + $0x68] sm:$0xff]  ;;  %v2148_v44 = vld [vmem:[#allocation2 + $0x20] ss:$0 sps:$4 sm:$0xff]  }
 0x211   : > { %888 = vst [vmem:[#allocation3 + $0x60] sm:$0xf] %v880_v45  ;;  %v815_v48 = vpop.permute.xlu1 %814  ;;  %1172 = vrot.lane.b32.xlu0 %v1158_v43, %s2212_s11  ;;  %v1999_v49 = vpack.c.bf16 %v1516_v47, %v1512_v46 }
 0x213   : > { %1233 = vrot.lane.b32.xlu1 %v2506_v50, %s2214_s18  ;;  %2000 = vmatprep.subr.bf16.mxu0 %v1999_v49  ;;  %v813_v52 = vpop.permute.xlu0 %812  ;;  %v1347_v49 = vld [vmem:[#allocation2 + $0x20] sm:$0xf] }
 0x214   : > { %v819_v53 = vsel %vm816_vm5, %v2535_v18, %v813_v52  ;;  %v820_v54 = vsel %vm816_vm5, %v813_v52, %v815_v48  ;;  %v1511_v60 = vld [vmem:[#allocation3 + $0x40] sm:$0xff]  ;;  %vm1332_vm5 = vcmask 236544  }
 0x215   : > { %827 = vst [vmem:[#allocation3 + $0x50] sm:$0xf] %v819_v53  ;;  %828 = vst [vmem:[#allocation3 + $0x58] sm:$0xf] %v820_v54  ;;  %v847_v55 = vpop.permute.xlu1 %846  ;;  %1204 = vrot.lane.b32.xlu0 %v2146_v51, %s2213_s12 }
 0x217   : > { %1265 = vrot.lane.b32.xlu1 %v2405_v13, %s2215_s24  ;;  %v845_v57 = vpop.permute.xlu0 %844 }
 0x218   : > { %v851_v58 = vsel %vm848_vm6, %v2543_v21, %v845_v57  ;;  %v852_v59 = vsel %vm848_vm6, %v845_v57, %v847_v55  ;;  %v1515_v61 = vld [vmem:[#allocation3 + $0x60] sm:$0xff]  ;;  %vm1363_vm6 = vcmask 228352  }
 0x219   : > { %859 = vst [vmem:[#allocation3 + $0x50] sm:$0xf0] %v851_v58  ;;  %860 = vst [vmem:[#allocation3 + $0x58] sm:$0xf0] %v852_v59  ;;  %v878_v62 = vpop.permute.xlu1 %877  ;;  %1235 = vrot.lane.b32.xlu0 %v1221_v56, %s2214_s18  ;;  %v2001_v63 = vpack.c.bf16 %v1515_v61, %v1511_v60  ;;  %v2149_v58 = vld [vmem:[#allocation2 + $0x20] ss:$0 sps:$4 sm:$0xff]  }
 0x21b   : > { %1292 = vrot.lane.b32.xlu1 %v2481_v38, %s2216_s22  ;;  %2002 = vmatpush1.bf16.msra.mxu0 %v2001_v63  ;;  %v876_v1 = vpop.permute.xlu0 %875 }
 0x21c   : > { %v882_v2 = vsel %vm879_vm7, %v2551_v28, %v876_v1  ;;  %v883_v3 = vsel %vm879_vm7, %v876_v1, %v878_v62  ;;  %vm1395_vm7 = vcmask 220160  }
 0x21d   : > { %890 = vst [vmem:[#allocation3 + $0x70] sm:$0xf] %v882_v2  ;;  %891 = vst [vmem:[#allocation3 + $0x78] sm:$0xf] %v883_v3  ;;  %v910_v4 = vpop.permute.xlu1 %909  ;;  %1267 = vrot.lane.b32.xlu0 %v2147_v0, %s2215_s24 }
 0x21f   : > { %1324 = vrot.lane.b32.xlu1 %v2408_v14, %s2217_s23  ;;  %v908_v5 = vpop.permute.xlu0 %907 }
 0x220   : > { %v914_v6 = vsel %vm911_vm8, %v2559_v33, %v908_v5  ;;  %v915_v7 = vsel %vm911_vm8, %v908_v5, %v910_v4  ;;  %v1514_v17 = vld [vmem:[#allocation3 + $0x58] sm:$0xff]  ;;  %v1513_v20 = vld [vmem:[#allocation3 + $0x50] sm:$0xff]  ;;  %vm1426_vm8 = vcmask 154624  }
 0x221   : > { %922 = vst [vmem:[#allocation3 + $0x70] sm:$0xf0] %v914_v6  ;;  %923 = vst [vmem:[#allocation3 + $0x78] sm:$0xf0] %v915_v7  ;;  %v2603_v8 = vpop.permute.xlu1 %936  ;;  %1294 = vrot.lane.b32.xlu0 %v2405_v13, %s2216_s22 }
 0x223   : > { %1355 = vrot.lane.b32.xlu1 %v2481_v38, %s2218_s19  ;;  %v935_v9 = vpop.permute.xlu0 %934 }
 0x224   : > { %v944_v10 = vsel %vm942_vm9, %v935_v9, %v2603_v8 }
 0x225   : > { %952 = vst [vmem:[#allocation3 + $0x88] sm:$0xf] %v944_v10  ;;  %v2611_v11 = vpop.permute.xlu1 %968  ;;  %1326 = vrot.lane.b32.xlu0 %v2412_v15, %s2217_s23 }
 0x227   : > { %1387 = vrot.lane.b32.xlu1 %v2408_v14, %s2219_s16  ;;  %v967_v12 = vpop.permute.xlu0 %966 }
 0x228   : > { %v976_v18 = vsel %vm974_vm10, %v967_v12, %v2611_v11  ;;  %v1518_v19 = vld [vmem:[#allocation3 + $0x78] sm:$0xff]  ;;  %v1517_v21 = vld [vmem:[#allocation3 + $0x70] sm:$0xff] }
 0x229   : > { %984 = vst [vmem:[#allocation3 + $0x88] sm:$0xf0] %v976_v18  ;;  %v2619_v22 = vpop.permute.xlu1 %999  ;;  %1357 = vrot.lane.b32.xlu0 %v2405_v13, %s2218_s19  ;;  %v2029_v23 = vpack.c.bf16 %v1518_v19, %v1514_v17  ;;  %v2031_v24 = vpack.c.bf16 %v1517_v21, %v1513_v20  ;;  %v1410_v19 = vld [vmem:[#allocation2 + $0x20] sm:$0xf] }
 0x22b   : > { %1290 = vrot.lane.b32.xlu1 %v2408_v14, %s2216_s22  ;;  %2030 = vmatprep.subr.bf16.mxu1 %v2029_v23  ;;  %v998_v25 = vpop.permute.xlu0 %997 }
 0x22c   : > { %v1007_v26 = vsel %vm1005_vm11, %v998_v25, %v2619_v22  ;;  %2032 = vmatpush1.bf16.msra.mxu1 %v2031_v24 }
 0x22d   : > { %1015 = vst [vmem:[#allocation3 + $0xa8] sm:$0xf] %v1007_v26  ;;  %v2627_v27 = vpop.permute.xlu1 %1031  ;;  %1389 = vrot.lane.b32.xlu0 %v2412_v15, %s2219_s16 }
 0x22f   : > { %1353 = vrot.lane.b32.xlu1 %v2408_v14, %s2218_s19  ;;  %v1030_v28 = vpop.permute.xlu0 %1029 }
 0x230   : > { %v1039_v29 = vsel %vm1037_vm12, %v1030_v28, %v2627_v27  ;;  %v1520_v40 = vld [vmem:[#allocation3 + $0x88] sm:$0xff] }
 0x231   : > { %1047 = vst [vmem:[#allocation3 + $0xa8] sm:$0xf0] %v1039_v29  ;;  %v965_v30 = vpop.permute.xlu1 %964  ;;  %1322 = vrot.lane.b32.xlu0 %v2417_v16, %s2217_s23 }
 0x232   : > { %v975_v31 = vsel %vm974_vm10, %v965_v30, %v967_v12  ;;  %v1473_v30 = vld [vmem:[#allocation2 + $0x20] sm:$0xf] }
 0x233   : > { %983 = vst [vmem:[#allocation3 + $0x80] sm:$0xf0] %v975_v31  ;;  %1296 = vrot.lane.b32.xlu1 %v2506_v50, %s2216_s22  ;;  %v933_v32 = vpop.permute.xlu0 %932 }
 0x234   : > { %v943_v33 = vsel %vm942_vm9, %v933_v32, %v935_v9 }
 0x235   : > { %951 = vst [vmem:[#allocation3 + $0x80] sm:$0xf] %v943_v33  ;;  %v1028_v34 = vpop.permute.xlu1 %1027  ;;  %1385 = vrot.lane.b32.xlu0 %v2417_v16, %s2219_s16 }
 0x236   : > { %v1038_v35 = vsel %vm1037_vm12, %v1028_v34, %v1030_v28 }
 0x237   : > { %1046 = vst [vmem:[#allocation3 + $0xa0] sm:$0xf0] %v1038_v35  ;;  %1328 = vrot.lane.b32.xlu1 %v2405_v13, %s2217_s23  ;;  %v996_v37 = vpop.permute.xlu0 %995 }
 0x238   : > { %v1006_v39 = vsel %vm1005_vm11, %v996_v37, %v998_v25  ;;  %v1524_v41 = vld [vmem:[#allocation3 + $0xa8] sm:$0xff] }
 0x239   : > { %1014 = vst [vmem:[#allocation3 + $0xa0] sm:$0xf] %v1006_v39  ;;  %v941_v42 = vpop.permute.xlu1 %940  ;;  %1298 = vrot.lane.b32.xlu0 %v1284_v36, %s2216_s22  ;;  %v2003_v43 = vpack.c.bf16 %v1524_v41, %v1520_v40 }
 0x23b   : > { %1359 = vrot.lane.b32.xlu1 %v2506_v50, %s2218_s19  ;;  %2004 = vmatprep.subr.bf16.mxu0 %v2003_v43  ;;  %v939_v45 = vpop.permute.xlu0 %938 }
 0x23c   : > { %v945_v46 = vsel %vm942_vm9, %v2603_v8, %v939_v45  ;;  %v946_v47 = vsel %vm942_vm9, %v939_v45, %v941_v42  ;;  %v1519_v54 = vld [vmem:[#allocation3 + $0x80] sm:$0xff]  ;;  %vm1458_vm9 = vcmask 146432  }
 0x23d   : > { %953 = vst [vmem:[#allocation3 + $0x90] sm:$0xf] %v945_v46  ;;  %954 = vst [vmem:[#allocation3 + $0x98] sm:$0xf] %v946_v47  ;;  %v973_v48 = vpop.permute.xlu1 %972  ;;  %1330 = vrot.lane.b32.xlu0 %v2148_v44, %s2217_s23 }
 0x23f   : > { %1391 = vrot.lane.b32.xlu1 %v2405_v13, %s2219_s16  ;;  %v971_v51 = vpop.permute.xlu0 %970 }
 0x240   : > { %v977_v52 = vsel %vm974_vm10, %v2611_v11, %v971_v51  ;;  %v978_v53 = vsel %vm974_vm10, %v971_v51, %v973_v48  ;;  %v1523_v55 = vld [vmem:[#allocation3 + $0xa0] sm:$0xff]  ;;  %vm1489_vm10 = vcmask 138240  }
 0x241   : > { %985 = vst [vmem:[#allocation3 + $0x90] sm:$0xf0] %v977_v52  ;;  %986 = vst [vmem:[#allocation3 + $0x98] sm:$0xf0] %v978_v53  ;;  %v1004_v56 = vpop.permute.xlu1 %1003  ;;  %1361 = vrot.lane.b32.xlu0 %v1347_v49, %s2218_s19  ;;  %v2005_v57 = vpack.c.bf16 %v1523_v55, %v1519_v54 }
 0x243   : > { %1418 = vrot.lane.b32.xlu1 %v2481_v38, %s2220_s4  ;;  %2006 = vmatpush1.bf16.msra.mxu0 %v2005_v57  ;;  %v1002_v59 = vpop.permute.xlu0 %1001 }
 0x244   : > { %v1008_v60 = vsel %vm1005_vm11, %v2619_v22, %v1002_v59  ;;  %v1009_v61 = vsel %vm1005_vm11, %v1002_v59, %v1004_v56  ;;  %v2223_v22 = vmov 0.0   ;;  %vm1563_vm11 = vcmask 1043456  }
 0x245   : > { %1016 = vst [vmem:[#allocation3 + $0xb0] sm:$0xf] %v1008_v60  ;;  %1017 = vst [vmem:[#allocation3 + $0xb8] sm:$0xf] %v1009_v61  ;;  %v1036_v62 = vpop.permute.xlu1 %1035  ;;  %1393 = vrot.lane.b32.xlu0 %v2149_v58, %s2219_s16  ;;  %1640 = vmatprep.mubr.f32.mxu0 %v2223_v22 }
 0x246   : > { %1711 = vmatprep.mubr.f32.mxu1 %v2223_v22 }
 0x247   : > { %1450 = vrot.lane.b32.xlu1 %v2408_v14, %s2221_s7  ;;  %v1034_v63 = vpop.permute.xlu0 %1033 }
 0x248   : > { %v1040_v0 = vsel %vm1037_vm12, %v2627_v27, %v1034_v63  ;;  %v1041_v1 = vsel %vm1037_vm12, %v1034_v63, %v1036_v62  ;;  %v1522_v7 = vld [vmem:[#allocation3 + $0x98] sm:$0xff]  ;;  %v1521_v10 = vld [vmem:[#allocation3 + $0x90] sm:$0xff]  ;;  %vm2224_vm12 = vmmov 1  }
 0x249   : > { %1048 = vst [vmem:[#allocation3 + $0xb0] sm:$0xf0] %v1040_v0  ;;  %1049 = vst [vmem:[#allocation3 + $0xb8] sm:$0xf0] %v1041_v1  ;;  %v1063_v2 = vpop.permute.xlu1 %1062  ;;  %1420 = vrot.lane.b32.xlu0 %v2405_v13, %s2220_s4 }
 0x24b   : > { %1481 = vrot.lane.b32.xlu1 %v2481_v38, %s2222_s15  ;;  %v1061_v3 = vpop.permute.xlu0 %1060 }
 0x24c   : > { %v1070_v4 = vsel %vm1068_vm13, %v1061_v3, %v1063_v2 }
 0x24d   : > { %1078 = vst [vmem:[#allocation3 + $0xc8] sm:$0xf] %v1070_v4  ;;  %v1106_v5 = vpop.permute.xlu1 %1105  ;;  %1452 = vrot.lane.b32.xlu0 %v2412_v15, %s2221_s7 }
 0x24f   : > { %1416 = vrot.lane.b32.xlu1 %v2408_v14, %s2220_s4  ;;  %v1104_v6 = vpop.permute.xlu0 %1103 }
 0x250   : > { %v1113_v8 = vsel %vm1111_vm14, %v1104_v6, %v1106_v5  ;;  %v1526_v9 = vld [vmem:[#allocation3 + $0xb8] sm:$0xff]  ;;  %v1525_v11 = vld [vmem:[#allocation3 + $0xb0] sm:$0xff] }
 0x251   : > { %1121 = vst [vmem:[#allocation3 + $0xe8] sm:$0xf] %v1113_v8  ;;  %v1138_v38 = vpop.permute.xlu1 %1137  ;;  %1483 = vrot.lane.b32.xlu0 %v2405_v13, %s2222_s15  ;;  %v2033_v12 = vpack.c.bf16 %v1526_v9, %v1522_v7  ;;  %v2035_v17 = vpack.c.bf16 %v1525_v11, %v1521_v10 }
 0x253   : > { %1479 = vrot.lane.b32.xlu1 %v2408_v14, %s2222_s15  ;;  %2034 = vmatprep.subr.bf16.mxu1 %v2033_v12  ;;  %v1136_v15 = vpop.permute.xlu0 %1135  ;;  %v2150_v14 = vld [vmem:[#allocation2 + $0x20] ss:$0 sps:$4 sm:$0xff]  }
 0x254   : > { %v1145_v18 = vsel %vm1143_vm15, %v1136_v15, %v1138_v38  ;;  %2036 = vmatpush1.bf16.msra.mxu1 %v2035_v17  ;;  %v1528_v28 = vld [vmem:[#allocation3 + $0xc8] sm:$0xff] }
 0x255   : > { %1153 = vst [vmem:[#allocation3 + $0xe8] sm:$0xf0] %v1145_v18  ;;  %v1102_v20 = vpop.permute.xlu1 %1101  ;;  %1448 = vrot.lane.b32.xlu0 %v2417_v16, %s2221_s7 }
 0x256   : > { %v1112_v21 = vsel %vm1111_vm14, %v1102_v20, %v1104_v6 }
 0x257   : > { %1120 = vst [vmem:[#allocation3 + $0xe0] sm:$0xf] %v1112_v21  ;;  %v1059_v23 = vpop.permute.xlu0 %1058  ;;  %1424 = vrot.lane.b32.xlu1 %v1410_v19, %s2220_s4 }
 0x258   : > { %v1069_v24 = vsel %vm1068_vm13, %v1059_v23, %v1061_v3 }
 0x259   : > { %1077 = vst [vmem:[#allocation3 + $0xc0] sm:$0xf] %v1069_v24  ;;  %v1065_v25 = vpop.permute.xlu1 %1064  ;;  %1422 = vrot.lane.b32.xlu0 %v2506_v50, %s2220_s4 }
 0x25a   : > { %v1071_v26 = vsel %vm1068_vm13, %v1063_v2, %v1065_v25 }
 0x25b   : > { %1079 = vst [vmem:[#allocation3 + $0xd0] sm:$0xf] %v1071_v26  ;;  %v1134_v16 = vpop.permute.xlu0 %1133  ;;  %1456 = vrot.lane.b32.xlu1 %v2150_v14, %s2221_s7 }
 0x25c   : > { %v1144_v27 = vsel %vm1143_vm15, %v1134_v16, %v1136_v15  ;;  %v1532_v29 = vld [vmem:[#allocation3 + $0xe8] sm:$0xff] }
 0x25d   : > { %1152 = vst [vmem:[#allocation3 + $0xe0] sm:$0xf0] %v1144_v27  ;;  %v1108_v31 = vpop.permute.xlu1 %1107  ;;  %1454 = vrot.lane.b32.xlu0 %v2405_v13, %s2221_s7  ;;  %v2007_v32 = vpack.c.bf16 %v1532_v29, %v1528_v28 }
 0x25e   : > { %v1114_v33 = vsel %vm1111_vm14, %v1106_v5, %v1108_v31 }
 0x25f   : > { %1122 = vst [vmem:[#allocation3 + $0xf0] sm:$0xf] %v1114_v33  ;;  %2008 = vmatprep.subr.bf16.mxu0 %v2007_v32  ;;  %v1067_v34 = vpop.permute.xlu0 %1066  ;;  %1487 = vrot.lane.b32.xlu1 %v1473_v30, %s2222_s15 }
 0x260   : > { %v1072_v35 = vsel %vm1068_vm13, %v1065_v25, %v1067_v34  ;;  %v1527_v40 = vld [vmem:[#allocation3 + $0xc0] sm:$0xff]  ;;  %vm2747_vm13 = vmpackc.low %vm1563_vm11, %vm2224_vm12 }
 0x261   : > { %1080 = vst [vmem:[#allocation3 + $0xd8] sm:$0xf] %v1072_v35  ;;  %v1140_v36 = vpop.permute.xlu1 %1139  ;;  %1485 = vrot.lane.b32.xlu0 %v2506_v50, %s2222_s15 }
 0x262   : > { %v1146_v37 = vsel %vm1143_vm15, %v1138_v38, %v1140_v36  ;;  %v1529_v57 = vld [vmem:[#allocation3 + $0xd0] sm:$0xff] }
 0x263   : > { %1154 = vst [vmem:[#allocation3 + $0xf0] sm:$0xf0] %v1146_v37  ;;  %v1110_v39 = vpop.permute.xlu0 %1109 }
 0x264   : > { %v1115_v13 = vsel %vm1111_vm14, %v1108_v31, %v1110_v39  ;;  %v1531_v41 = vld [vmem:[#allocation3 + $0xe0] sm:$0xff]  ;;  %vm1559_vm14 = vcmask 883712  }
 0x265   : > { %1123 = vst [vmem:[#allocation3 + $0xf8] sm:$0xf] %v1115_v13  ;;  %v1167_v42 = vpop.permute.xlu1 %1166  ;;  %v2009_v43 = vpack.c.bf16 %v1531_v41, %v1527_v40 }
 0x267   : > { %2010 = vmatpush1.bf16.msra.mxu0 %v2009_v43  ;;  %v1142_v44 = vpop.permute.xlu0 %1141 }
 0x268   : > { %v1147_v45 = vsel %vm1143_vm15, %v1140_v36, %v1142_v44  ;;  %v1530_v53 = vld [vmem:[#allocation3 + $0xd8] sm:$0xff]  ;;  %vm1765_vm15 = vcmask 3072  }
 0x269   : > { %1155 = vst [vmem:[#allocation3 + $0xf8] sm:$0xf0] %v1147_v45  ;;  %v1199_v46 = vpop.permute.xlu1 %1198 }
 0x26a   : > { %v1533_v51 = vld [vmem:[#allocation3 + $0xf0] sm:$0xff] }
 0x26b   : > { %v1169_v47 = vpop.permute.xlu0 %1168  ;;  %v2039_v58 = vpack.c.bf16 %v1533_v51, %v1529_v57 }
 0x26c   : > { %v1176_v50 = vsel %vm1174_vm0, %v1167_v42, %v1169_v47 }
 0x26d   : > { %1184 = vst [vmem:[#allocation3 + $0x108] sm:$0xf] %v1176_v50  ;;  %v1230_v48 = vpop.permute.xlu1 %1229 }
 0x26f   : > { %v1201_v49 = vpop.permute.xlu0 %1200 }
 0x270   : > { %v1208_v52 = vsel %vm1206_vm1, %v1199_v46, %v1201_v49  ;;  %v1534_v54 = vld [vmem:[#allocation3 + $0xf8] sm:$0xff] }
 0x271   : > { %1216 = vst [vmem:[#allocation3 + $0x108] sm:$0xf0] %v1208_v52  ;;  %v1262_v55 = vpop.permute.xlu1 %1261  ;;  %v2037_v56 = vpack.c.bf16 %v1534_v54, %v1530_v53 }
 0x273   : > { %2038 = vmatprep.subr.bf16.mxu1 %v2037_v56  ;;  %v1232_v59 = vpop.permute.xlu0 %1231 }
 0x274   : > { %v1239_v60 = vsel %vm1237_vm2, %v1230_v48, %v1232_v59  ;;  %2040 = vmatpush1.bf16.msra.mxu1 %v2039_v58 }
 0x275   : > { %1247 = vst [vmem:[#allocation3 + $0x128] sm:$0xf] %v1239_v60  ;;  %v1165_v61 = vpop.permute.xlu1 %1164 }
 0x276   : > { %v1175_v62 = vsel %vm1174_vm0, %v1165_v61, %v1167_v42 }
 0x277   : > { %1183 = vst [vmem:[#allocation3 + $0x100] sm:$0xf] %v1175_v62  ;;  %v1264_v63 = vpop.permute.xlu0 %1263 }
 0x278   : > { %v1271_v0 = vsel %vm1269_vm3, %v1262_v55, %v1264_v63  ;;  %v1536_v9 = vld [vmem:[#allocation3 + $0x108] sm:$0xff] }
 0x279   : > { %1279 = vst [vmem:[#allocation3 + $0x128] sm:$0xf0] %v1271_v0  ;;  %v1228_v1 = vpop.permute.xlu1 %1227 }
 0x27a   : > { %v1238_v2 = vsel %vm1237_vm2, %v1228_v1, %v1230_v48 }
 0x27b   : > { %1246 = vst [vmem:[#allocation3 + $0x120] sm:$0xf] %v1238_v2  ;;  %v1197_v3 = vpop.permute.xlu0 %1196 }
 0x27c   : > { %v1207_v4 = vsel %vm1206_vm1, %v1197_v3, %v1199_v46 }
 0x27d   : > { %1215 = vst [vmem:[#allocation3 + $0x100] sm:$0xf0] %v1207_v4  ;;  %v1171_v5 = vpop.permute.xlu1 %1170 }
 0x27e   : > { %v1177_v6 = vsel %vm1174_vm0, %v1169_v47, %v1171_v5 }
 0x27f   : > { %1185 = vst [vmem:[#allocation3 + $0x110] sm:$0xf] %v1177_v6  ;;  %v1260_v7 = vpop.permute.xlu0 %1259 }
 0x280   : > { %v1270_v8 = vsel %vm1269_vm3, %v1260_v7, %v1262_v55  ;;  %v1540_v10 = vld [vmem:[#allocation3 + $0x128] sm:$0xff] }
 0x281   : > { %1278 = vst [vmem:[#allocation3 + $0x120] sm:$0xf0] %v1270_v8  ;;  %v1203_v11 = vpop.permute.xlu1 %1202  ;;  %v2011_v38 = vpack.c.bf16 %v1540_v10, %v1536_v9 }
 0x282   : > { %v1209_v12 = vsel %vm1206_vm1, %v1201_v49, %v1203_v11 }
 0x283   : > { %1217 = vst [vmem:[#allocation3 + $0x110] sm:$0xf0] %v1209_v12  ;;  %2012 = vmatprep.subr.bf16.mxu0 %v2011_v38  ;;  %v1173_v17 = vpop.permute.xlu0 %1172 }
 0x284   : > { %v1178_v15 = vsel %vm1174_vm0, %v1171_v5, %v1173_v17  ;;  %v1535_v22 = vld [vmem:[#allocation3 + $0x100] sm:$0xff] }
 0x285   : > { %1186 = vst [vmem:[#allocation3 + $0x118] sm:$0xf] %v1178_v15  ;;  %v1234_v18 = vpop.permute.xlu1 %1233 }
 0x286   : > { %v1240_v19 = vsel %vm1237_vm2, %v1232_v59, %v1234_v18 }
 0x287   : > { %1248 = vst [vmem:[#allocation3 + $0x130] sm:$0xf] %v1240_v19  ;;  %v1205_v20 = vpop.permute.xlu0 %1204 }
 0x288   : > { %v1210_v21 = vsel %vm1206_vm1, %v1203_v11, %v1205_v20  ;;  %v1539_v23 = vld [vmem:[#allocation3 + $0x120] sm:$0xff] }
 0x289   : > { %1218 = vst [vmem:[#allocation3 + $0x118] sm:$0xf0] %v1210_v21  ;;  %v1266_v14 = vpop.permute.xlu1 %1265  ;;  %v2013_v24 = vpack.c.bf16 %v1539_v23, %v1535_v22 }
 0x28a   : > { %v1272_v25 = vsel %vm1269_vm3, %v1264_v63, %v1266_v14  ;;  %v1537_v41 = vld [vmem:[#allocation3 + $0x110] sm:$0xff] }
 0x28b   : > { %1280 = vst [vmem:[#allocation3 + $0x130] sm:$0xf0] %v1272_v25  ;;  %2014 = vmatpush1.bf16.msra.mxu0 %v2013_v24  ;;  %v1236_v26 = vpop.permute.xlu0 %1235 }
 0x28c   : > { %v1241_v16 = vsel %vm1237_vm2, %v1234_v18, %v1236_v26 }
 0x28d   : > { %1249 = vst [vmem:[#allocation3 + $0x138] sm:$0xf] %v1241_v16  ;;  %v1293_v27 = vpop.permute.xlu1 %1292 }
 0x28f   : > { %v1268_v28 = vpop.permute.xlu0 %1267 }
 0x290   : > { %v1273_v29 = vsel %vm1269_vm3, %v1266_v14, %v1268_v28  ;;  %v1538_v37 = vld [vmem:[#allocation3 + $0x118] sm:$0xff] }
 0x291   : > { %1281 = vst [vmem:[#allocation3 + $0x138] sm:$0xf0] %v1273_v29  ;;  %v1325_v30 = vpop.permute.xlu1 %1324 }
 0x292   : > { %v1541_v35 = vld [vmem:[#allocation3 + $0x130] sm:$0xff] }
 0x293   : > { %v1295_v31 = vpop.permute.xlu0 %1294  ;;  %v2043_v42 = vpack.c.bf16 %v1541_v35, %v1537_v41 }
 0x294   : > { %v1302_v32 = vsel %vm1300_vm4, %v1293_v27, %v1295_v31 }
 0x295   : > { %1310 = vst [vmem:[#allocation3 + $0x148] sm:$0xf] %v1302_v32  ;;  %v1356_v33 = vpop.permute.xlu1 %1355 }
 0x297   : > { %v1327_v34 = vpop.permute.xlu0 %1326 }
 0x298   : > { %v1334_v36 = vsel %vm1332_vm5, %v1325_v30, %v1327_v34  ;;  %v1542_v39 = vld [vmem:[#allocation3 + $0x138] sm:$0xff] }
 0x299   : > { %1342 = vst [vmem:[#allocation3 + $0x148] sm:$0xf0] %v1334_v36  ;;  %v1388_v13 = vpop.permute.xlu1 %1387  ;;  %v2041_v40 = vpack.c.bf16 %v1542_v39, %v1538_v37 }
 0x29b   : > { %2042 = vmatprep.subr.bf16.mxu1 %v2041_v40  ;;  %v1358_v43 = vpop.permute.xlu0 %1357 }
 0x29c   : > { %v1365_v44 = vsel %vm1363_vm6, %v1356_v33, %v1358_v43  ;;  %2044 = vmatpush1.bf16.msra.mxu1 %v2043_v42 }
 0x29d   : > { %1373 = vst [vmem:[#allocation3 + $0x168] sm:$0xf] %v1365_v44  ;;  %v1291_v45 = vpop.permute.xlu1 %1290 }
 0x29e   : > { %v1301_v46 = vsel %vm1300_vm4, %v1291_v45, %v1293_v27 }
 0x29f   : > { %1309 = vst [vmem:[#allocation3 + $0x140] sm:$0xf] %v1301_v46  ;;  %v1390_v47 = vpop.permute.xlu0 %1389 }
 0x2a0   : > { %v1397_v50 = vsel %vm1395_vm7, %v1388_v13, %v1390_v47  ;;  %v1544_v57 = vld [vmem:[#allocation3 + $0x148] sm:$0xff] }
 0x2a1   : > { %1405 = vst [vmem:[#allocation3 + $0x168] sm:$0xf0] %v1397_v50  ;;  %v1354_v48 = vpop.permute.xlu1 %1353 }
 0x2a2   : > { %v1364_v49 = vsel %vm1363_vm6, %v1354_v48, %v1356_v33 }
 0x2a3   : > { %1372 = vst [vmem:[#allocation3 + $0x160] sm:$0xf] %v1364_v49  ;;  %v1323_v51 = vpop.permute.xlu0 %1322 }
 0x2a4   : > { %v1333_v52 = vsel %vm1332_vm5, %v1323_v51, %v1325_v30  ;;  %v1502_v51 = vld [vmem:[%s2830_s27] sm:$0xf] }
 0x2a5   : > { %1341 = vst [vmem:[#allocation3 + $0x140] sm:$0xf0] %v1333_v52  ;;  %v1297_v53 = vpop.permute.xlu1 %1296 }
 0x2a6   : > { %v1303_v54 = vsel %vm1300_vm4, %v1295_v31, %v1297_v53 }
 0x2a7   : > { %1311 = vst [vmem:[#allocation3 + $0x150] sm:$0xf] %v1303_v54  ;;  %v1386_v55 = vpop.permute.xlu0 %1385 }
 0x2a8   : > { %v1396_v56 = vsel %vm1395_vm7, %v1386_v55, %v1388_v13  ;;  %v1548_v58 = vld [vmem:[#allocation3 + $0x168] sm:$0xff] }
 0x2a9   : > { %1404 = vst [vmem:[#allocation3 + $0x160] sm:$0xf0] %v1396_v56  ;;  %v1329_v59 = vpop.permute.xlu1 %1328  ;;  %v2015_v60 = vpack.c.bf16 %v1548_v58, %v1544_v57 }
 0x2aa   : > { %v1335_v61 = vsel %vm1332_vm5, %v1327_v34, %v1329_v59 }
 0x2ab   : > { %1343 = vst [vmem:[#allocation3 + $0x150] sm:$0xf0] %v1335_v61  ;;  %2016 = vmatprep.subr.bf16.mxu0 %v2015_v60  ;;  %v1299_v62 = vpop.permute.xlu0 %1298  ;;  %v1720_v60 = vlaneseq }
 0x2ac   : > { %v1304_v63 = vsel %vm1300_vm4, %v1297_v53, %v1299_v62  ;;  %v1543_v4 = vld [vmem:[#allocation3 + $0x140] sm:$0xff] }
 0x2ad   : > { %1312 = vst [vmem:[#allocation3 + $0x158] sm:$0xf] %v1304_v63  ;;  %v1360_v0 = vpop.permute.xlu1 %1359  ;;  %v1721_v61 = vshrl.u32 %v1720_v60, 7  ;;  %v1718_v63 = vld [vmem:[%s489_s1] sm:$0xf] }
 0x2ae   : > { %v1366_v1 = vsel %vm1363_vm6, %v1358_v43, %v1360_v0 }
 0x2af   : > { %1374 = vst [vmem:[#allocation3 + $0x170] sm:$0xf] %v1366_v1  ;;  %v1331_v2 = vpop.permute.xlu0 %1330  ;;  %v1722_v62 = vsub.s32 0, %v1721_v61 }
 0x2b0   : > { %v1336_v3 = vsel %vm1332_vm5, %v1329_v59, %v1331_v2  ;;  %v1547_v5 = vld [vmem:[#allocation3 + $0x160] sm:$0xff] }
 0x2b1   : > { %1344 = vst [vmem:[#allocation3 + $0x158] sm:$0xf0] %v1336_v3  ;;  %v1392_v6 = vpop.permute.xlu1 %1391  ;;  %v2017_v7 = vpack.c.bf16 %v1547_v5, %v1543_v4  ;;  %v1723_v1 = vrot.slane %v1718_v63, %v1722_v62 }
 0x2b2   : > { %v1398_v8 = vsel %vm1395_vm7, %v1390_v47, %v1392_v6  ;;  %v1545_v26 = vld [vmem:[#allocation3 + $0x150] sm:$0xff] }
 0x2b3   : > { %1406 = vst [vmem:[#allocation3 + $0x170] sm:$0xf0] %v1398_v8  ;;  %2018 = vmatpush1.bf16.msra.mxu0 %v2017_v7  ;;  %v1362_v9 = vpop.permute.xlu0 %1361 }
 0x2b4   : > { %v1367_v10 = vsel %vm1363_vm6, %v1360_v0, %v1362_v9  ;;  %v1726_v0 = vsub.s32 1, %v1721_v61 }
 0x2b5   : > { %1375 = vst [vmem:[#allocation3 + $0x178] sm:$0xf] %v1367_v10  ;;  %v1419_v11 = vpop.permute.xlu1 %1418 }
 0x2b6   : > { %v1727_v2 = vrot.slane %v1718_v63, %v1726_v0 }
 0x2b7   : > { %v1394_v38 = vpop.permute.xlu0 %1393 }
 0x2b8   : > { %v1399_v12 = vsel %vm1395_vm7, %v1392_v6, %v1394_v38  ;;  %v1546_v23 = vld [vmem:[#allocation3 + $0x158] sm:$0xff] }
 0x2b9   : > { %1407 = vst [vmem:[#allocation3 + $0x178] sm:$0xf0] %v1399_v12  ;;  %v1451_v17 = vpop.permute.xlu1 %1450 }
 0x2ba   : > { %v1549_v21 = vld [vmem:[#allocation3 + $0x170] sm:$0xff] }
 0x2bb   : > { %v1421_v15 = vpop.permute.xlu0 %1420  ;;  %v2047_v27 = vpack.c.bf16 %v1549_v21, %v1545_v26 }
 0x2bc   : > { %v1428_v18 = vsel %vm1426_vm8, %v1419_v11, %v1421_v15 }
 0x2bd   : > { %1436 = vst [vmem:[#allocation3 + $0x188] sm:$0xf] %v1428_v18  ;;  %v1482_v19 = vpop.permute.xlu1 %1481  ;;  %v1734_v18 = vsub.s32 3, %v1721_v61 }
 0x2bf   : > { %v1453_v20 = vpop.permute.xlu0 %1452  ;;  %v1735_v21 = vrot.slane %v1718_v63, %v1734_v18 }
 0x2c0   : > { %v1460_v22 = vsel %vm1458_vm9, %v1451_v17, %v1453_v20  ;;  %v1550_v14 = vld [vmem:[#allocation3 + $0x178] sm:$0xff] }
 0x2c1   : > { %1468 = vst [vmem:[#allocation3 + $0x188] sm:$0xf0] %v1460_v22  ;;  %v1417_v24 = vpop.permute.xlu1 %1416  ;;  %v2045_v25 = vpack.c.bf16 %v1550_v14, %v1546_v23 }
 0x2c2   : > { %v1427_v16 = vsel %vm1426_vm8, %v1417_v24, %v1419_v11 }
 0x2c3   : > { %1435 = vst [vmem:[#allocation3 + $0x180] sm:$0xf] %v1427_v16  ;;  %2046 = vmatprep.subr.bf16.mxu1 %v2045_v25  ;;  %v1484_v28 = vpop.permute.xlu0 %1483 }
 0x2c4   : > { %v1491_v29 = vsel %vm1489_vm10, %v1482_v19, %v1484_v28  ;;  %2048 = vmatpush1.bf16.msra.mxu1 %v2047_v27 }
 0x2c5   : > { %1499 = vst [vmem:[#allocation3 + $0x1a8] sm:$0xf] %v1491_v29  ;;  %v1480_v30 = vpop.permute.xlu1 %1479 }
 0x2c6   : > { %v1490_v31 = vsel %vm1489_vm10, %v1480_v30, %v1482_v19 }
 0x2c7   : > { %1498 = vst [vmem:[#allocation3 + $0x1a0] sm:$0xf] %v1490_v31  ;;  %v1449_v32 = vpop.permute.xlu0 %1448 }
 0x2c8   : > { %v1459_v33 = vsel %vm1458_vm9, %v1449_v32, %v1451_v17  ;;  %v1552_v39 = vld [vmem:[#allocation3 + $0x188] sm:$0xff] }
 0x2c9   : > { %1467 = vst [vmem:[#allocation3 + $0x180] sm:$0xf0] %v1459_v33  ;;  %v1425_v34 = vpop.permute.xlu1 %1424 }
 0x2cb   : > { %v1423_v35 = vpop.permute.xlu0 %1422 }
 0x2cc   : > { %v1429_v36 = vsel %vm1426_vm8, %v1421_v15, %v1423_v35  ;;  %v1430_v37 = vsel %vm1426_vm8, %v1423_v35, %v1425_v34  ;;  %v1556_v13 = vld [vmem:[#allocation3 + $0x1a8] sm:$0xf]  ;;  %v1730_v15 = vsub.s32 2, %v1721_v61  ;;  %v1754_v35 = vld [vmem:[%s2345_s20] sm:$0xf] }
 0x2cd   : > { %1437 = vst [vmem:[#allocation3 + $0x190] sm:$0xf] %v1429_v36  ;;  %1438 = vst [vmem:[#allocation3 + $0x198] sm:$0xf] %v1430_v37  ;;  %v1457_v41 = vpop.permute.xlu1 %1456  ;;  %v2019_v42 = vpack.c.bf16 %v1556_v13, %v1552_v39  ;;  %v1767_v37 = vld [vmem:[%s2355_s26] sm:$0xf] }
 0x2ce   : > { %v1555_v47 = vld [vmem:[#allocation3 + $0x1a0] sm:$0xf] }
 0x2cf   : > { %2021 = vmatprep.subr.msk.bf16.mxu0 %vm2747_vm13, %v2019_v42  ;;  %v1455_v43 = vpop.permute.xlu0 %1454 }
 0x2d0   : > { %v1461_v44 = vsel %vm1458_vm9, %v1453_v20, %v1455_v43  ;;  %v1462_v45 = vsel %vm1458_vm9, %v1455_v43, %v1457_v41  ;;  %v1551_v46 = vld [vmem:[#allocation3 + $0x180] sm:$0xff]  ;;  %v1731_v20 = vrot.slane %v1718_v63, %v1730_v15 }
 0x2d1   : > { %1469 = vst [vmem:[#allocation3 + $0x190] sm:$0xf0] %v1461_v44  ;;  %1470 = vst [vmem:[#allocation3 + $0x198] sm:$0xf0] %v1462_v45  ;;  %v1488_v50 = vpop.permute.xlu1 %1487  ;;  %v2022_v48 = vpack.c.bf16 %v1555_v47, %v1551_v46 }
 0x2d3   : > { %2024 = vmatpush1.bf16.msk.msra.mxu0 %vm2747_vm13, %v2022_v48  ;;  %v1486_v49 = vpop.permute.xlu0 %1485 }
 0x2d4   : > { %v1492_v52 = vsel %vm1489_vm10, %v1484_v28, %v1486_v49  ;;  %v1493_v53 = vsel %vm1489_vm10, %v1486_v49, %v1488_v50 }
 0x2d5   : > { %1500 = vst [vmem:[#allocation3 + $0x1b0] sm:$0xf] %v1492_v52  ;;  %1501 = vst [vmem:[#allocation3 + $0x1b8] sm:$0xf] %v1493_v53 }
 0x2d6   : > { %1988 = vmatmul.mubr.msk.f32.vlgmr.msra.gmra.mrb[0].mxu0 %vm1559_vm14, %v1502_v51 }
 0x2d8   : > { %v1554_v54 = vld [vmem:[#allocation3 + $0x198] sm:$0xff]  ;;  %v1553_v56 = vld [vmem:[#allocation3 + $0x190] sm:$0xff] }
 0x2dc   : > { %v1558_v55 = vld [vmem:[#allocation3 + $0x1b8] sm:$0xf]  ;;  %v1557_v57 = vld [vmem:[#allocation3 + $0x1b0] sm:$0xf] }
 0x2dd   : > { %v2049_v58 = vpack.c.bf16 %v1558_v55, %v1554_v54  ;;  %v2052_v59 = vpack.c.bf16 %v1557_v57, %v1553_v56 }
 0x2df   : > { %2051 = vmatprep.subr.msk.bf16.mxu1 %vm2747_vm13, %v2049_v58 }
 0x2e0   : > { %2054 = vmatpush1.bf16.msk.msra.mxu1 %vm2747_vm13, %v2052_v59 }
 0x2e3   : > { %1991 = vmatmul.mubr.msk.f32.vlgmr.msra.gmra.mrb[0].mxu1 %vm1559_vm14, %v1502_v51 }
 0x3a9   : > { %v1642_v3 = vpop.f32.mrb[0].mxu0 }
 0x3aa   : > { %v1740_v4 = vmul.f32 %v1723_v1, %v1642_v3  ;;  %v1644_v5 = vpop.f32.mrb[1].mxu0 }
 0x3ab   : > { %v1741_v6 = vmul.f32 %v1727_v2, %v1644_v5 }
 0x3ac   : > { %v1755_v7 = vsel %vm1563_vm11, %v1740_v4, 0.0  ;;  %v1768_v8 = vmul.f32 %v1740_v4, %v1740_v4 }
 0x3ad   : > { %v1748_v9 = vcombine.low %v1740_v4, %v1741_v6  ;;  %v1756_v10 = vsel %vm1563_vm11, %v1741_v6, 0.0  ;;  %v1769_v11 = vmul.f32 %v1741_v6, %v1741_v6 }
 0x3ae   : > { %v1772_v38 = vsel %vm1563_vm11, %v1768_v8, 0.0  ;;  %v1757_v12 = vadd.f32 %v1756_v10, %v1755_v7 }
 0x3af   : > { %1752 = vst [vmem:[%s2350_s30] sm:$0xff] %v1748_v9  ;;  %v1773_v17 = vsel %vm1563_vm11, %v1769_v11, 0.0 }
 0x3b0   : > { %v1774_v19 = vadd.f32 %v1773_v17, %v1772_v38 }
 0x3b6   : > { %v1713_v22 = vpop.f32.mrb[0].mxu1 }
 0x3b7   : > { %v1742_v23 = vmul.f32 %v1731_v20, %v1713_v22  ;;  %v1715_v14 = vpop.f32.mrb[1].mxu1 }
 0x3b8   : > { %v1743_v24 = vmul.f32 %v1735_v21, %v1715_v14 }
 0x3b9   : > { %v1758_v25 = vsel %vm1563_vm11, %v1742_v23, 0.0  ;;  %v1770_v26 = vmul.f32 %v1742_v23, %v1742_v23 }
 0x3ba   : > { %v1749_v16 = vcombine.low %v1742_v23, %v1743_v24  ;;  %v1771_v27 = vmul.f32 %v1743_v24, %v1743_v24  ;;  %v1759_v28 = vadd.f32 %v1758_v25, %v1757_v12  ;;  %v1760_v29 = vsel %vm1563_vm11, %v1743_v24, 0.0 }
 0x3bb   : > { %v1775_v30 = vsel %vm1563_vm11, %v1770_v26, 0.0 }
 0x3bc   : > { %1753 = vst [vmem:[%s2350_s30 + $0x8] sm:$0xff] %v1749_v16  ;;  %v1761_v31 = vadd.f32 %v1760_v29, %v1759_v28  ;;  %v1776_v32 = vadd.f32 %v1775_v30, %v1774_v19  ;;  %v1777_v33 = vsel %vm1563_vm11, %v1771_v27, 0.0 }
 0x3be   : > { %1762 = vadd.xlane.f32.xlu0 %v1761_v31  ;;  %v1778_v34 = vadd.f32 %v1777_v33, %v1776_v32 }
 0x3c0   : > { %1779 = vadd.xlane.f32.xlu1 %v1778_v34 }
 0x44b   : > { %v1763_v36 = vpop.xlane.xlu0 %1762 }
 0x44c   : > { %v1764_v39 = vadd.f32 %v1763_v36, %v1754_v35 }
 0x44d   : > { %v1780_v13 = vpop.xlane.xlu1 %1779 }
 0x44e   : > { %1766 = vst.msk [vmem:[%s2345_s20] sm:$0xf] %vm1765_vm15, %v1764_v39  ;;  %v1781_v40 = vadd.f32 %v1780_v13, %v1767_v37 }
 0x450   : > { %1782 = vst.msk [vmem:[%s2355_s26] sm:$0xf] %vm1765_vm15, %v1781_v40 }
 0x451 PF: > { %s2831_s1 = sld [smem:[#allocation6_spill]]  ;;  %s2832_s13 = sld [smem:[#allocation4_spill]] }
 0x452   : > { %s2833_s14 = sld [smem:[#allocation5_spill]]  ;;  %s2834_s15 = sld [smem:[#allocation7_spill]] }
 0x453   : > { %s2835_s16 = sld [smem:[#allocation8_spill]] }
 0x457   : > { %s21_s17 = sadd.s32 1, %s2831_s1  }
 0x458   : > { %p18_p13 = scmp.ge.s32.totalorder %s21_s17, 6  }
 0x45a   :  { %20 = sbr.rel (!%p18_p13) target bundleno = 4 (0x4), region = 131 }

// kernel: decoder_block_forward.7
= control target key start
LH: loop header
LB: loop body
LE: loop exit
PB: predicated region body
PF: predicated region fallthrough
CT: control target
= control target key end

     0   :  { %s454_s12 = smov 0   ;;  %s456_s13 = smov 0   ;;  %s514_s0 = inlined_call_operand.vmem [shape: f32[2,4,1024], index: 0, kind: input, shape index: {}]   ;;  %s515_s1 = inlined_call_operand.vmem [shape: f32[4,1], index: 1, kind: input, shape index: {}]   ;;  %s516_s2 = inlined_call_operand.vmem [shape: f32[4,1], index: 2, kind: input, shape index: {}]   ;;  %s517_s3 = inlined_call_operand.vmem [shape: f32[2,4,1024], index: 3, kind: output, shape index: {}]  }
   0x1   :  { %s458_s14 = smov 0   ;;  %s460_s15 = smov 0  }
   0x2   :  { %s462_s16 = smov 0  }
   0x3 LB: > { %s22_s17 = sadd.s32 1, %s422_s14  ;;  %s25_s18 = sadd.s32 1, %s426_s15  ;;  %s430_s16 = sphi %s462_s16, %s13_s16   ;;  %s426_s15 = sphi %s460_s15, %s521_s15   ;;  %s422_s14 = sphi %s458_s14, %s520_s14   ;;  %s418_s13 = sphi %s456_s13, %s519_s13   ;;  %s414_s12 = sphi %s454_s12, %s518_s12  }
   0x4   : > { %p23_p0 = scmp.ge.s32.totalorder %s22_s17, 2  ;;  %p340_p1 = scmp.ge.s32.totalorder %s430_s16, 1 }
   0x5   : > { %p158_p2 = scmp.lt.s32.totalorder %s430_s16, 5 }
   0x6   : > { %s523_s17 = smov (%p23_p0, %s22_s17), 0  ;;  %s525_s18 = smov (!%p23_p0, %s25_s18), %s426_s15 }
   0x7   : > { %p159_p3 = pnand %p340_p1, %p158_p2  ;;  %p27_p4 = scmp.ge.s32.totalorder %s525_s18, 2 }
   0x8   : > { %v212_v0 = vld [vmem:[%s515_s1] sm:$0xf] (!%p159_p3)  ;;  %v432_v1 = vmov (!%p159_p3), 0   ;;  %s341_s23 = sshll.u32 (!%p159_p3), %s414_s12, 2  ;;  %p191_p5 = scmp.lt.s32.totalorder (!%p159_p3), %s418_s13, 1  ;;  %v220_v5 = vlaneseq (!%p159_p3) }
   0x9   : > { %s527_s18 = smov (%p27_p4, %s525_s18), 0  ;;  %162 = sbr.rel (%p159_p3) target bundleno = 150 (0x96), region = 32 }
   0xa   : > { %391 = vset.pattern.permute.xlu0 (!%p159_p3), %v432_v1  ;;  %v227_v2 = vld [vmem:[%s516_s2] sm:$0xf] (!%p159_p3)  ;;  %p193_p6 = scmp.lt.s32.totalorder (!%p159_p3), %s341_s23, 7  ;;  %v433_v3 = vmov (!%p159_p3), 839922192   ;;  %v221_v7 = vshrl.u32 (!%p159_p3), %v220_v5, 7 }
   0xb   : > { %215 = vperm.xlu0 (!%p159_p3), %391, %v212_v0   ;;  %v218_v4 = vunpack.c.l.s4 (!%p159_p3), %v433_v3 }
   0xd   : > { %v219_v6 = vunpack.c.0.s8 (!%p159_p3), %v218_v4 }
   0xf   : > { %230 = vperm.xlu0 (!%p159_p3), %391, %v227_v2   ;;  %v222_v8 = vsub.s32 (!%p159_p3), %v219_v6, %v221_v7 }
  0x10   : > { %s529_s13 = smov (!%p191_p5, %s418_s13), 1  ;;  %s531_s23 = smov (!%p193_p6, %s341_s23), 7 }
  0x11   : > { %s342_s24 = sshll.u32 %s529_s13, 3 }
  0x12   : > { %s196_s25 = sadd.s32 %s342_s24, %s531_s23 }
  0x13   : > { %s343_s26 = sshll.u32 %s196_s25, 2 }
  0x14   : > { %s198_s29 = scalar_lea.vmem %s514_s0, %s343_s26  ;;  %s208_s5 = scalar_lea.vmem %s517_s3, %s343_s26 }
  0x15   : > { %v210_v11 = vld [vmem:[%s198_s29] sm:$0xff]  ;;  %v211_v12 = vld [vmem:[%s198_s29 + $0x8] sm:$0xff] }
  0x8a   : > { %v216_v9 = vpop.permute.xlu0 %215 }
  0x8b   : > { %v223_v10 = vrot.slane %v216_v9, %v222_v8 }
  0x8d   : > { %v225_v14 = vmul.f32 %v223_v10, %v210_v11  ;;  %v226_v15 = vmul.f32 %v223_v10, %v211_v12 }
  0x8e   : > { %v231_v13 = vpop.permute.xlu0 %230 }
  0x8f   : > { %v238_v16 = vrot.slane %v231_v13, %v222_v8 }
  0x91   : > { %v240_v17 = vadd.f32 %v238_v16, %v225_v14  ;;  %v241_v18 = vadd.f32 %v238_v16, %v226_v15 }
  0x93   : > { %v242_v19 = vmax.f32 %v240_v17, 0.0  ;;  %v243_v20 = vmax.f32 %v241_v18, 0.0 }
  0x95   : > { %244 = vst [vmem:[%s208_s5] sm:$0xff] %v242_v19  ;;  %245 = vst [vmem:[%s208_s5 + $0x8] sm:$0xff] %v243_v20 }
  0x96 PF: > { %s13_s16 = sadd.s32 1, %s430_s16   ;;  %s518_s12 = smov %s422_s14 }
  0x97   : > { %p10_p7 = scmp.ge.s32.totalorder %s13_s16, 6   ;;  %s519_s13 = smov %s426_s15 }
  0x98   : > { %s520_s14 = smov %s523_s17  ;;  %s521_s15 = smov %s527_s18 }
  0x99   :  { %12 = sbr.rel (!%p10_p7) target bundleno = 3 (0x3), region = 62 }

// kernel: decoder_block_forward.5
= control target key start
LH: loop header
LB: loop body
LE: loop exit
PB: predicated region body
PF: predicated region fallthrough
CT: control target
= control target key end

     0   :  { %s3192_s13 = smov 0   ;;  %s3194_s14 = smov 0   ;;  %s4045_s0 = inlined_call_operand.vmem [shape: f32[2,4,1024], index: 0, kind: input, shape index: {}, may-alias: {0,1}]   ;;  %s4046_s1 = inlined_call_operand.vmem [shape: f32[2,4,1024], index: 1, kind: input, shape index: {}, may-alias: {0,1}]   ;;  %s4047_s2 = inlined_call_operand.vmem [shape: f32[2,4,1024], index: 2, kind: input, shape index: {}, may-alias: {2,3}]   ;;  %s4048_s3 = inlined_call_operand.vmem [shape: f32[2,4,1024], index: 3, kind: input, shape index: {}, may-alias: {2,3}]   ;;  %s4049_s4 = inlined_call_operand.vmem [shape: f32[4,216], index: 4, kind: input, shape index: {}]   ;;  %s4050_s5 = inlined_call_operand.vmem [shape: f32[1,1024], index: 5, kind: input, shape index: {}, may-alias: {5,6,7}]   ;;  %s4051_s6 = inlined_call_operand.vmem [shape: f32[1,1024], index: 6, kind: input, shape index: {}, may-alias: {5,6,7}]   ;;  %s4052_s7 = inlined_call_operand.vmem [shape: f32[1,1024], index: 7, kind: input, shape index: {}, may-alias: {5,6,7}]   ;;  %s4053_s8 = inlined_call_operand.vmem [shape: f32[2,4,1024], index: 8, kind: output, shape index: {0}]   ;;  %s4054_s9 = inlined_call_operand.vmem [shape: f32[2,4,1], index: 9, kind: output, shape index: {1}]   ;;  %s4055_s10 = inlined_call_operand.vmem [shape: f32[2,4,1], index: 10, kind: output, shape index: {2}]  }
   0x1   :  { %4058 = sst [smem:[#allocation9_spill]] %s4046_s1  ;;  %s3196_s15 = smov 0  }
   0x2   :  { %4059 = sst [smem:[#allocation10_spill]] %s4048_s3  ;;  %s3198_s16 = smov 0  }
   0x3   :  { %4060 = sst [smem:[#allocation11_spill]] %s4054_s9  ;;  %s3200_s6 = smov 0  }
   0x4 LB: > { %4061 = sst [smem:[#allocation5_spill]] %s3099_s15  ;;  %s30_s7 = sadd.s32 1, %s3099_s15  ;;  %s3107_s6 = sphi %s3200_s6, %s21_s6   ;;  %s3103_s16 = sphi %s3198_s16, %s4071_s16   ;;  %s3099_s15 = sphi %s3196_s15, %s4070_s15   ;;  %s3095_s14 = sphi %s3194_s14, %s4069_s14   ;;  %s3091_s13 = sphi %s3192_s13, %s4068_s13  }
   0x5   : > { %4062 = sst [smem:[#allocation6_spill]] %s3103_s16  ;;  %s33_s17 = sadd.s32 1, %s3103_s16 }
   0x6   : > { %p31_p0 = scmp.ge.s32.totalorder %s30_s7, 2  ;;  %p2831_p1 = scmp.ge.s32.totalorder %s3107_s6, 1 }
   0x7   : > { %p431_p2 = scmp.lt.s32.totalorder %s3107_s6, 5 }
   0x8   : > { %s4073_s7 = smov (%p31_p0, %s30_s7), 0  ;;  %s4075_s17 = smov (!%p31_p0, %s33_s17), %s3103_s16 }
   0x9   : > { %4063 = sst [smem:[#allocation7_spill]] %s4073_s7  ;;  %p432_p3 = pnand %p2831_p1, %p431_p2 }
   0xa   : > { %p35_p4 = scmp.ge.s32.totalorder %s4075_s17, 2  ;;  %s3225_s18 = sadd.s32 (!%p432_p3), 1, %s3091_s13 }
   0xb   : > { %435 = sbr.rel (%p432_p3) target bundleno = 1071 (0x42f), region = 52  ;;  %p525_p5 = scmp.lt.s32.totalorder (!%p432_p3), %s3095_s14, 1 }
   0xc   : > { %s4077_s17 = smov (%p35_p4, %s4075_s17), 0  ;;  %p522_p6 = scmp.lt.s32.totalorder (!%p432_p3), %s3225_s18, 1 }
   0xd   : > { %4064 = sst [smem:[#allocation8_spill]] %s4077_s17  ;;  %s2842_s19 = sshll.u32 (!%p432_p3), %s3091_s13, 2 }
   0xe   : > { %s4065_s1 = sld [smem:[#allocation9_spill]] (!%p432_p3)  ;;  %s4066_s3 = sld [smem:[#allocation10_spill]] (!%p432_p3) }
   0xf   : > { %p564_p8 = scmp.lt.s32.totalorder (!%p432_p3), %s2842_s19, 7  ;;  %s4067_s9 = sld [smem:[#allocation11_spill]] (!%p432_p3) }
  0x10   : > { %p2848_p9 = scmp.ne.s32.totalorder (!%p432_p3), %s3091_s13, 0 }
  0x12   : > { %s4079_s14 = smov (!%p525_p5, %s3095_s14), 1  ;;  %s4083_s19 = smov (!%p564_p8, %s2842_s19), 7 }
  0x13   : > { %s523_s20 = scalar_select %p522_p6, %s3225_s18, 1 }
  0x14   : > { %s2833_s21 = sshll.u32 %s4079_s14, 3  ;;  %s2856_s22 = sshll.u32 %s4079_s14, 5  ;;  %vm601_vm0 = vcmask (!%p2848_p9), 3072   ;;  %v3109_v3 = vmov (!%p2848_p9), 0.0  }
  0x15   : > { %s2832_s23 = sshll.u32 %s523_s20, 2  ;;  %s541_s26 = scalar_lea.vmem %s4065_s1, %s2856_s22  ;;  %605 = vst [vmem:[#allocation2 + $0x8] sm:$0xff] (!%p2848_p9), %v3109_v3  ;;  %611 = vst [vmem:[#allocation3 + $0x8] sm:$0xff] (!%p2848_p9), %v3109_v3 }
  0x16   : > { %p527_p7 = scmp.lt.s32.totalorder %s2832_s23, 7  ;;  %s562_s29 = scalar_lea.vmem %s4066_s3, %s2856_s22  ;;  %v606_v0 = vld [vmem:[%s541_s26] sm:$0xff] (!%p2848_p9)  ;;  %v607_v1 = vld [vmem:[%s541_s26 + $0x8] sm:$0xff] (!%p2848_p9) }
  0x17   : > { %s2846_s30 = sshll.u32 %s4079_s14, 2  ;;  %s566_s7 = scalar_lea.vmem %s4050_s5, %s4083_s19  ;;  %v612_v2 = vld [vmem:[%s562_s29] sm:$0xff] (!%p2848_p9)  ;;  %608 = vst [vmem:[#allocation2 + $0x10] sm:$0xff] (!%p2848_p9), %v606_v0  ;;  %609 = vst [vmem:[#allocation2 + $0x18] sm:$0xff] (!%p2848_p9), %v607_v1  ;;  %v613_v4 = vld [vmem:[%s562_s29 + $0x8] sm:$0xff] (!%p2848_p9) }
  0x18   : > { %s4081_s23 = smov (!%p527_p7, %s2832_s23), 7  ;;  %s3241_s20 = scalar_lea.vmem %s4067_s9, %s2846_s30  ;;  %614 = vst [vmem:[#allocation3 + $0x10] sm:$0xff] (!%p2848_p9), %v612_v2  ;;  %615 = vst [vmem:[#allocation3 + $0x18] sm:$0xff] (!%p2848_p9), %v613_v4 }
  0x19   : > { %s530_s11 = sadd.s32 %s2833_s21, %s4081_s23  ;;  %s585_s23 = sadd.s32 %s2833_s21, %s4083_s19  ;;  %602 = vst.msk [vmem:[%s3241_s20] sm:$0xf] (!%p2848_p9), %vm601_vm0, %v3109_v3 }
  0x1a   : > { %s2834_s24 = sshll.u32 %s530_s11, 2  ;;  %s3261_s12 = scalar_lea.vmem %s4055_s10, %s2846_s30 }
  0x1b   : > { %s3250_s14 = scalar_lea.vmem %s4045_s0, %s2834_s24  ;;  %s3255_s16 = scalar_lea.vmem %s4047_s2, %s2834_s24  ;;  %603 = vst.msk [vmem:[%s3261_s12] sm:$0xf] (!%p2848_p9), %vm601_vm0, %v3109_v3 }
  0x1c   : > { %s2845_s11 = sshll.u32 %s585_s23, 2  ;;  %600 = sbr.rel (%p2848_p9) target bundleno = 35 (0x23), region = 56 }
  0x1d   : > { %s3266_s25 = scalar_lea.vmem %s4053_s8, %s2845_s11 }
  0x23 PF: > { %p2849_p10 = scmp.le.s32.totalorder %s3091_s13, 0 }
  0x24   : > { %v621_v5 = vld [vmem:[#allocation2 + $0x18] sm:$0xff] (!%p2849_p10)  ;;  %v622_v6 = vld [vmem:[#allocation2 + $0x20] sm:$0xff] (!%p2849_p10)  ;;  %v623_v7 = vld [vmem:[#allocation2 + $0x28] sm:$0xff] (!%p2849_p10) }
  0x25   : > { %619 = sbr.rel (%p2849_p10) target bundleno = 44 (0x2c), region = 60  ;;  %625 = vst [vmem:[#allocation2 + $0x8] sm:$0xff] (!%p2849_p10), %v621_v5  ;;  %626 = vst [vmem:[#allocation2 + $0x10] sm:$0xff] (!%p2849_p10), %v622_v6  ;;  %v629_v8 = vld [vmem:[#allocation3 + $0x18] sm:$0xff] (!%p2849_p10)  ;;  %v630_v9 = vld [vmem:[#allocation3 + $0x20] sm:$0xff] (!%p2849_p10) }
  0x26   : > { %627 = vst [vmem:[#allocation2 + $0x18] sm:$0xff] (!%p2849_p10), %v623_v7  ;;  %633 = vst [vmem:[#allocation3 + $0x8] sm:$0xff] (!%p2849_p10), %v629_v8  ;;  %v631_v10 = vld [vmem:[#allocation3 + $0x28] sm:$0xff] (!%p2849_p10) }
  0x27   : > { %634 = vst [vmem:[#allocation3 + $0x10] sm:$0xff] (!%p2849_p10), %v630_v9  ;;  %635 = vst [vmem:[#allocation3 + $0x18] sm:$0xff] (!%p2849_p10), %v631_v10 }
  0x2c PF: > { %p2850_p11 = scmp.ge.s32.totalorder %s3225_s18, 2 }
  0x2d   : > { %v641_v11 = vld [vmem:[%s3250_s14] sm:$0xff] (!%p2850_p11)  ;;  %v642_v12 = vld [vmem:[%s3250_s14 + $0x8] sm:$0xff] (!%p2850_p11) }
  0x2e   : > { %640 = sbr.rel (%p2850_p11) target bundleno = 53 (0x35), region = 64  ;;  %v645_v13 = vld [vmem:[%s3255_s16] sm:$0xff] (!%p2850_p11)  ;;  %643 = vst [vmem:[#allocation2 + $0x20] sm:$0xff] (!%p2850_p11), %v641_v11  ;;  %644 = vst [vmem:[#allocation2 + $0x28] sm:$0xff] (!%p2850_p11), %v642_v12  ;;  %v646_v14 = vld [vmem:[%s3255_s16 + $0x8] sm:$0xff] (!%p2850_p11) }
  0x2f   : > { %647 = vst [vmem:[#allocation3 + $0x20] sm:$0xff] (!%p2850_p11), %v645_v13  ;;  %648 = vst [vmem:[#allocation3 + $0x28] sm:$0xff] (!%p2850_p11), %v646_v14 }
  0x35 PF: > { %p2851_p12 = scmp.lt.s32.totalorder %s3225_s18, 2 }
  0x36   : > { %v3110_v15 = vmov (!%p2851_p12), 0.0  }
  0x37   : > { %652 = sbr.rel (%p2851_p12) target bundleno = 62 (0x3e), region = 68  ;;  %653 = vst [vmem:[#allocation2 + $0x20] sm:$0xff] (!%p2851_p12), %v3110_v15  ;;  %654 = vst [vmem:[#allocation2 + $0x28] sm:$0xff] (!%p2851_p12), %v3110_v15 }
  0x38   : > { %655 = vst [vmem:[#allocation3 + $0x20] sm:$0xff] (!%p2851_p12), %v3110_v15  ;;  %656 = vst [vmem:[#allocation3 + $0x28] sm:$0xff] (!%p2851_p12), %v3110_v15 }
  0x3e PF: > { %v3278_v16 = vld [vmem:[#allocation2 + $0x14] sm:$0xff]  ;;  %v3280_v17 = vld [vmem:[#allocation2 + $0xc] sm:$0xff]  ;;  %s3111_s3 = smov 111   ;;  %v3292_v20 = vld [vmem:[#allocation3 + $0xc] sm:$0xff]  ;;  %s3112_s9 = smov 110   ;;  %vm675_vm1 = vcmask 908288  }
  0x3f   : > { %669 = vrot.lane.b32.xlu1 %v3278_v16, %s3111_s3  ;;  %v3285_v18 = vcombine.high %v3278_v16, %v3278_v16  ;;  %665 = vrot.lane.b32.xlu0 %v3280_v17, %s3111_s3  ;;  %v3290_v19 = vcombine.high %v3280_v17, %v3280_v17  ;;  %v3298_v21 = vcombine.low %v3292_v20, %v3292_v20  ;;  %v659_v22 = vld [vmem:[#allocation2 + $0x1c] sm:$0xf]  ;;  %v3300_v23 = vld [vmem:[#allocation3 + $0x14] sm:$0xff]  ;;  %v3034_v25 = vld [vmem:[#allocation3 + $0x1c] ss:$0 sps:$4 sm:$0xff]   ;;  %s3113_s13 = smov 109  }
  0x40   : > { %v3305_v24 = vcombine.low %v3300_v23, %v3300_v23  ;;  %v721_v26 = vld [vmem:[#allocation2 + $0x1c] sm:$0xf]  ;;  %v3035_v27 = vld [vmem:[#allocation3 + $0x1c] ss:$0 sps:$4 sm:$0xff]   ;;  %s3114_s15 = smov 101   ;;  %s3115_s16 = smov 100  }
  0x41   : > { %v783_v28 = vld [vmem:[#allocation2 + $0x1c] sm:$0xf]  ;;  %v3036_v29 = vld [vmem:[#allocation3 + $0x1c] ss:$0 sps:$4 sm:$0xff]   ;;  %s3116_s18 = smov 99   ;;  %s3117_s21 = smov 91  }
  0x42   : > { %v845_v30 = vld [vmem:[#allocation2 + $0x1c] sm:$0xf]  ;;  %v3037_v31 = vld [vmem:[#allocation3 + $0x1c] ss:$0 sps:$4 sm:$0xff]   ;;  %v3367_v51 = vld [vmem:[#allocation2 + $0x10] sm:$0xff]  ;;  %s3118_s26 = smov 90  }
  0x43   : > { %671 = vrot.lane.b32.xlu1 %v3285_v18, %s3111_s3  ;;  %667 = vrot.lane.b32.xlu0 %v3290_v19, %s3111_s3  ;;  %v907_v32 = vld [vmem:[#allocation2 + $0x1c] sm:$0xf]  ;;  %v3038_v33 = vld [vmem:[#allocation3 + $0x1c] ss:$0 sps:$4 sm:$0xff]   ;;  %v3371_v54 = vcombine.high %v3367_v51, %v3367_v51  ;;  %1471 = vst [vmem:[#allocation4 + $0x1a0] sm:$0xf] %v3367_v51 }
  0x44   : > { %v969_v34 = vld [vmem:[#allocation2 + $0x1c] sm:$0xf]  ;;  %v3039_v35 = vld [vmem:[#allocation3 + $0x1c] ss:$0 sps:$4 sm:$0xff]   ;;  %vm737_vm2 = vcmask 900096   ;;  %v3397_v0 = vld [vmem:[#allocation3 + $0x10] sm:$0xff] }
  0x45   : > { %v1031_v46 = vld [vmem:[#allocation2 + $0x1c] sm:$0xf]  ;;  %1472 = vst [vmem:[#allocation4 + $0x1a8] sm:$0xf] %v3371_v54  ;;  %v3388_v59 = vld [vmem:[#allocation3 + $0x18] sm:$0xff]  ;;  %v3405_v1 = vcombine.low %v3397_v0, %v3397_v0  ;;  %vm799_vm3 = vcmask 891904  }
  0x46   : > { %v3376_v57 = vld [vmem:[#allocation2 + $0x18] sm:$0xff]  ;;  %v3392_v62 = vcombine.low %v3388_v59, %v3388_v59  ;;  %1486 = vst [vmem:[#allocation4 + $0x1b8] sm:$0xf0] %v3388_v59  ;;  %1484 = vst [vmem:[#allocation4 + $0x1a8] sm:$0xf0] %v3397_v0  ;;  %s3119_s29 = smov 89  }
  0x47   : > { %697 = vrot.lane.b32.xlu1 %v3298_v21, %s3111_s3  ;;  %673 = vrot.lane.b32.xlu0 %v659_v22, %s3111_s3  ;;  %v3384_v58 = vcombine.high %v3376_v57, %v3376_v57  ;;  %1473 = vst [vmem:[#allocation4 + $0x1b0] sm:$0xf] %v3376_v57  ;;  %1483 = vst [vmem:[#allocation4 + $0x1a0] sm:$0xf0] %v3405_v1  ;;  %v3040_v9 = vld [vmem:[#allocation3 + $0x1c] ss:$0 sps:$4 sm:$0xff]  }
  0x48   : > { %1485 = vst [vmem:[#allocation4 + $0x1b0] sm:$0xf0] %v3392_v62  ;;  %v1093_v14 = vld [vmem:[#allocation2 + $0x1c] sm:$0xf]  ;;  %s3120_s30 = smov 11   ;;  %vm861_vm4 = vcmask 826368  }
  0x49   : > { %1474 = vst [vmem:[#allocation4 + $0x1b8] sm:$0xf] %v3384_v58  ;;  %vm923_vm5 = vcmask 818176   ;;  %s3121_s24 = smov 10   ;;  %s3122_s27 = smov 9   ;;  %vm985_vm6 = vcmask 809984  }
  0x4a   : > { %vm1047_vm7 = vcmask 744448   ;;  %s3123_s22 = smov 1   ;;  %vm1109_vm8 = vcmask 736256   ;;  %s3124_s14 = smov 127   ;;  %vm1171_vm9 = vcmask 728064   ;;  %vm1233_vm10 = vcmask 89088  }
  0x4b   : > { %701 = vrot.lane.b32.xlu1 %v3305_v24, %s3111_s3  ;;  %699 = vrot.lane.b32.xlu0 %v3292_v20, %s3111_s3  ;;  %s3125_s28 = smov 119   ;;  %s3126_s23 = smov 118   ;;  %vm1295_vm11 = vcmask 80896   ;;  %vm1357_vm12 = vcmask 72704   ;;  %vm1419_vm13 = vcmask 7168   ;;  %vm1505_vm14 = vcmask 1039360  }
  0x4c   : > { %s3127_s17 = smov 117   ;;  %s3128_s11 = smov 39   ;;  %vm1567_vm15 = vcmask 973824   ;;  %vm1629_vm0 = vcmask 965632  }
  0x4d   : > { %s3129_s1 = smov 38  }
  0x4f   : > { %705 = vrot.lane.b32.xlu1 %v3034_v25, %s3111_s3  ;;  %703 = vrot.lane.b32.xlu0 %v3300_v23, %s3111_s3  ;;  %s3130_s3 = smov 37  }
  0x53   : > { %729 = vrot.lane.b32.xlu1 %v3290_v19, %s3112_s9  ;;  %727 = vrot.lane.b32.xlu0 %v3280_v17, %s3112_s9 }
  0x57   : > { %733 = vrot.lane.b32.xlu1 %v3285_v18, %s3112_s9  ;;  %731 = vrot.lane.b32.xlu0 %v3278_v16, %s3112_s9 }
  0x5b   : > { %759 = vrot.lane.b32.xlu1 %v3298_v21, %s3112_s9  ;;  %735 = vrot.lane.b32.xlu0 %v721_v26, %s3112_s9 }
  0x5f   : > { %763 = vrot.lane.b32.xlu1 %v3305_v24, %s3112_s9  ;;  %761 = vrot.lane.b32.xlu0 %v3292_v20, %s3112_s9 }
  0x63   : > { %767 = vrot.lane.b32.xlu1 %v3035_v27, %s3112_s9  ;;  %765 = vrot.lane.b32.xlu0 %v3300_v23, %s3112_s9  ;;  %v3041_v27 = vld [vmem:[#allocation3 + $0x1c] ss:$0 sps:$4 sm:$0xff]   ;;  %s3131_s9 = smov 29  }
  0x67   : > { %791 = vrot.lane.b32.xlu1 %v3290_v19, %s3113_s13  ;;  %789 = vrot.lane.b32.xlu0 %v3280_v17, %s3113_s13 }
  0x6b   : > { %795 = vrot.lane.b32.xlu1 %v3285_v18, %s3113_s13  ;;  %793 = vrot.lane.b32.xlu0 %v3278_v16, %s3113_s13 }
  0x6f   : > { %821 = vrot.lane.b32.xlu1 %v3298_v21, %s3113_s13  ;;  %797 = vrot.lane.b32.xlu0 %v783_v28, %s3113_s13 }
  0x73   : > { %825 = vrot.lane.b32.xlu1 %v3305_v24, %s3113_s13  ;;  %823 = vrot.lane.b32.xlu0 %v3292_v20, %s3113_s13 }
  0x77   : > { %829 = vrot.lane.b32.xlu1 %v3036_v29, %s3113_s13  ;;  %827 = vrot.lane.b32.xlu0 %v3300_v23, %s3113_s13  ;;  %s3132_s13 = smov 28  }
  0x7b   : > { %853 = vrot.lane.b32.xlu1 %v3290_v19, %s3114_s15  ;;  %851 = vrot.lane.b32.xlu0 %v3280_v17, %s3114_s15 }
  0x7f   : > { %857 = vrot.lane.b32.xlu1 %v3285_v18, %s3114_s15  ;;  %855 = vrot.lane.b32.xlu0 %v3278_v16, %s3114_s15 }
  0x83   : > { %883 = vrot.lane.b32.xlu1 %v3298_v21, %s3114_s15  ;;  %859 = vrot.lane.b32.xlu0 %v845_v30, %s3114_s15 }
  0x87   : > { %887 = vrot.lane.b32.xlu1 %v3305_v24, %s3114_s15  ;;  %885 = vrot.lane.b32.xlu0 %v3292_v20, %s3114_s15 }
  0x8b   : > { %891 = vrot.lane.b32.xlu1 %v3037_v31, %s3114_s15  ;;  %889 = vrot.lane.b32.xlu0 %v3300_v23, %s3114_s15  ;;  %s3133_s15 = smov 27  }
  0x8f   : > { %915 = vrot.lane.b32.xlu1 %v3290_v19, %s3115_s16  ;;  %913 = vrot.lane.b32.xlu0 %v3280_v17, %s3115_s16 }
  0x93   : > { %919 = vrot.lane.b32.xlu1 %v3285_v18, %s3115_s16  ;;  %917 = vrot.lane.b32.xlu0 %v3278_v16, %s3115_s16 }
  0x97   : > { %945 = vrot.lane.b32.xlu1 %v3298_v21, %s3115_s16  ;;  %921 = vrot.lane.b32.xlu0 %v907_v32, %s3115_s16 }
  0x9b   : > { %949 = vrot.lane.b32.xlu1 %v3305_v24, %s3115_s16  ;;  %947 = vrot.lane.b32.xlu0 %v3292_v20, %s3115_s16 }
  0x9f   : > { %953 = vrot.lane.b32.xlu1 %v3038_v33, %s3115_s16  ;;  %951 = vrot.lane.b32.xlu0 %v3300_v23, %s3115_s16  ;;  %s3134_s16 = smov 19  }
  0xa3   : > { %977 = vrot.lane.b32.xlu1 %v3290_v19, %s3116_s18  ;;  %975 = vrot.lane.b32.xlu0 %v3280_v17, %s3116_s18 }
  0xa7   : > { %981 = vrot.lane.b32.xlu1 %v3285_v18, %s3116_s18  ;;  %979 = vrot.lane.b32.xlu0 %v3278_v16, %s3116_s18 }
  0xab   : > { %1007 = vrot.lane.b32.xlu1 %v3298_v21, %s3116_s18  ;;  %983 = vrot.lane.b32.xlu0 %v969_v34, %s3116_s18 }
  0xaf   : > { %1011 = vrot.lane.b32.xlu1 %v3305_v24, %s3116_s18  ;;  %1009 = vrot.lane.b32.xlu0 %v3292_v20, %s3116_s18 }
  0xb1   : > { %v670_v36 = vpop.permute.xlu1 %669  ;;  %v666_v37 = vpop.permute.xlu0 %665 }
  0xb3   : > { %1015 = vrot.lane.b32.xlu1 %v3039_v35, %s3116_s18  ;;  %1013 = vrot.lane.b32.xlu0 %v3300_v23, %s3116_s18  ;;  %s3135_s18 = smov 18  }
  0xb5   : > { %v672_v38 = vpop.permute.xlu1 %671  ;;  %v668_v39 = vpop.permute.xlu0 %667 }
  0xb6   : > { %v678_v40 = vsel %vm675_vm1, %v670_v36, %v672_v38  ;;  %v676_v41 = vsel %vm675_vm1, %v666_v37, %v668_v39  ;;  %v677_v42 = vsel %vm675_vm1, %v668_v39, %v670_v36 }
  0xb7   : > { %686 = vst [vmem:[#allocation4 + $0x10] sm:$0xf] %v678_v40  ;;  %684 = vst [vmem:[#allocation4] sm:$0xf] %v676_v41  ;;  %1039 = vrot.lane.b32.xlu1 %v3290_v19, %s3117_s21  ;;  %1037 = vrot.lane.b32.xlu0 %v3280_v17, %s3117_s21 }
  0xb8   : > { %685 = vst [vmem:[#allocation4 + $0x8] sm:$0xf] %v677_v42 }
  0xb9   : > { %v698_v43 = vpop.permute.xlu1 %697  ;;  %v674_v44 = vpop.permute.xlu0 %673 }
  0xba   : > { %v679_v45 = vsel %vm675_vm1, %v672_v38, %v674_v44 }
  0xbb   : > { %687 = vst [vmem:[#allocation4 + $0x18] sm:$0xf] %v679_v45  ;;  %1043 = vrot.lane.b32.xlu1 %v3285_v18, %s3117_s21  ;;  %1041 = vrot.lane.b32.xlu0 %v3278_v16, %s3117_s21 }
  0xbd   : > { %v702_v47 = vpop.permute.xlu1 %701  ;;  %v700_v48 = vpop.permute.xlu0 %699 }
  0xbe   : > { %v707_v49 = vsel %vm675_vm1, %v698_v43, %v700_v48  ;;  %v708_v50 = vsel %vm675_vm1, %v700_v48, %v702_v47 }
  0xbf   : > { %715 = vst [vmem:[#allocation4] sm:$0xf0] %v707_v49  ;;  %716 = vst [vmem:[#allocation4 + $0x8] sm:$0xf0] %v708_v50  ;;  %1071 = vrot.lane.b32.xlu1 %v3292_v20, %s3117_s21  ;;  %1045 = vrot.lane.b32.xlu0 %v1031_v46, %s3117_s21 }
  0xc1   : > { %v706_v52 = vpop.permute.xlu1 %705  ;;  %v704_v53 = vpop.permute.xlu0 %703 }
  0xc2   : > { %v709_v55 = vsel %vm675_vm1, %v702_v47, %v704_v53  ;;  %v710_v56 = vsel %vm675_vm1, %v704_v53, %v706_v52  ;;  %vm1691_vm1 = vcmask 957440  }
  0xc3   : > { %717 = vst [vmem:[#allocation4 + $0x10] sm:$0xf0] %v709_v55  ;;  %718 = vst [vmem:[#allocation4 + $0x18] sm:$0xf0] %v710_v56  ;;  %1101 = vrot.lane.b32.xlu1 %v3290_v19, %s3118_s26  ;;  %1073 = vrot.lane.b32.xlu0 %v3305_v24, %s3117_s21 }
  0xc5   : > { %v730_v60 = vpop.permute.xlu1 %729  ;;  %v728_v61 = vpop.permute.xlu0 %727 }
  0xc6   : > { %v738_v63 = vsel %vm737_vm2, %v728_v61, %v730_v60  ;;  %v2295_v30 = vld [vmem:[#allocation4 + $0x8] sm:$0xff]  ;;  %v2294_v33 = vld [vmem:[#allocation4] sm:$0xff] }
  0xc7   : > { %746 = vst [vmem:[#allocation4 + $0x20] sm:$0xf] %v738_v63  ;;  %1133 = vrot.lane.b32.xlu1 %v3292_v20, %s3118_s26  ;;  %1103 = vrot.lane.b32.xlu0 %v3278_v16, %s3118_s26 }
  0xc9   : > { %v734_v2 = vpop.permute.xlu1 %733  ;;  %v732_v3 = vpop.permute.xlu0 %731 }
  0xca   : > { %v739_v4 = vsel %vm737_vm2, %v730_v60, %v732_v3  ;;  %v740_v5 = vsel %vm737_vm2, %v732_v3, %v734_v2  ;;  %v2297_v39 = vld [vmem:[#allocation4 + $0x18] sm:$0xff]  ;;  %v2296_v43 = vld [vmem:[#allocation4 + $0x10] sm:$0xff] }
  0xcb   : > { %747 = vst [vmem:[#allocation4 + $0x28] sm:$0xf] %v739_v4  ;;  %748 = vst [vmem:[#allocation4 + $0x30] sm:$0xf] %v740_v5  ;;  %1069 = vrot.lane.b32.xlu1 %v3298_v21, %s3117_s21  ;;  %1135 = vrot.lane.b32.xlu0 %v3305_v24, %s3118_s26 }
  0xcd   : > { %v760_v6 = vpop.permute.xlu1 %759  ;;  %v736_v7 = vpop.permute.xlu0 %735 }
  0xce   : > { %v741_v8 = vsel %vm737_vm2, %v734_v2, %v736_v7 }
  0xcf   : > { %749 = vst [vmem:[#allocation4 + $0x38] sm:$0xf] %v741_v8  ;;  %1131 = vrot.lane.b32.xlu1 %v3298_v21, %s3118_s26  ;;  %1099 = vrot.lane.b32.xlu0 %v3280_v17, %s3118_s26 }
  0xd1   : > { %v764_v10 = vpop.permute.xlu1 %763  ;;  %v762_v11 = vpop.permute.xlu0 %761 }
  0xd2   : > { %v769_v12 = vsel %vm737_vm2, %v760_v6, %v762_v11  ;;  %v770_v13 = vsel %vm737_vm2, %v762_v11, %v764_v10 }
  0xd3   : > { %777 = vst [vmem:[#allocation4 + $0x20] sm:$0xf0] %v769_v12  ;;  %778 = vst [vmem:[#allocation4 + $0x28] sm:$0xf0] %v770_v13  ;;  %1077 = vrot.lane.b32.xlu1 %v3040_v9, %s3117_s21  ;;  %1075 = vrot.lane.b32.xlu0 %v3300_v23, %s3117_s21  ;;  %v1155_v9 = vld [vmem:[#allocation2 + $0x1c] sm:$0xf] }
  0xd4   : > { %v3042_v13 = vld [vmem:[#allocation3 + $0x1c] ss:$0 sps:$4 sm:$0xff]   ;;  %s3136_s21 = smov 17  }
  0xd5   : > { %v768_v15 = vpop.permute.xlu1 %767  ;;  %v766_v22 = vpop.permute.xlu0 %765 }
  0xd6   : > { %v771_v25 = vsel %vm737_vm2, %v764_v10, %v766_v22  ;;  %v772_v26 = vsel %vm737_vm2, %v766_v22, %v768_v15  ;;  %vm1753_vm2 = vcmask 318464  }
  0xd7   : > { %779 = vst [vmem:[#allocation4 + $0x30] sm:$0xf0] %v771_v25  ;;  %780 = vst [vmem:[#allocation4 + $0x38] sm:$0xf0] %v772_v26  ;;  %1107 = vrot.lane.b32.xlu1 %v1093_v14, %s3118_s26  ;;  %1105 = vrot.lane.b32.xlu0 %v3285_v18, %s3118_s26  ;;  %v1217_v26 = vld [vmem:[#allocation2 + $0x1c] sm:$0xf] }
  0xd9   : > { %v792_v28 = vpop.permute.xlu1 %791  ;;  %v790_v29 = vpop.permute.xlu0 %789 }
  0xda   : > { %v800_v31 = vsel %vm799_vm3, %v790_v29, %v792_v28  ;;  %v2299_v32 = vld [vmem:[#allocation4 + $0x28] sm:$0xff]  ;;  %v2298_v34 = vld [vmem:[#allocation4 + $0x20] sm:$0xff] }
  0xdb   : > { %808 = vst [vmem:[#allocation4 + $0x40] sm:$0xf] %v800_v31  ;;  %1139 = vrot.lane.b32.xlu1 %v3041_v27, %s3118_s26  ;;  %1137 = vrot.lane.b32.xlu0 %v3300_v23, %s3118_s26  ;;  %v2858_v35 = vpack.c.bf16 %v2299_v32, %v2295_v30  ;;  %v2860_v36 = vpack.c.bf16 %v2298_v34, %v2294_v33  ;;  %v3043_v31 = vld [vmem:[#allocation3 + $0x1c] ss:$0 sps:$4 sm:$0xff]  }
  0xdd   : > { %v796_v37 = vpop.permute.xlu1 %795  ;;  %2859 = vmatprep.subr.bf16.mxu0 %v2858_v35  ;;  %v794_v38 = vpop.permute.xlu0 %793 }
  0xde   : > { %v801_v40 = vsel %vm799_vm3, %v792_v28, %v794_v38  ;;  %v802_v41 = vsel %vm799_vm3, %v794_v38, %v796_v37  ;;  %2861 = vmatpush1.bf16.msra.mxu0 %v2860_v36  ;;  %v2301_v42 = vld [vmem:[#allocation4 + $0x38] sm:$0xff]  ;;  %v2300_v44 = vld [vmem:[#allocation4 + $0x30] sm:$0xff] }
  0xdf   : > { %809 = vst [vmem:[#allocation4 + $0x48] sm:$0xf] %v801_v40  ;;  %810 = vst [vmem:[#allocation4 + $0x50] sm:$0xf] %v802_v41  ;;  %1165 = vrot.lane.b32.xlu1 %v3278_v16, %s3119_s29  ;;  %1163 = vrot.lane.b32.xlu0 %v3290_v19, %s3119_s29  ;;  %v2910_v45 = vpack.c.bf16 %v2301_v42, %v2297_v39  ;;  %v2912_v46 = vpack.c.bf16 %v2300_v44, %v2296_v43 }
  0xe1   : > { %v822_v47 = vpop.permute.xlu1 %821  ;;  %2911 = vmatprep.subr.bf16.mxu1 %v2910_v45  ;;  %v798_v48 = vpop.permute.xlu0 %797 }
  0xe2   : > { %v803_v49 = vsel %vm799_vm3, %v796_v37, %v798_v48  ;;  %2913 = vmatpush1.bf16.msra.mxu1 %v2912_v46 }
  0xe3   : > { %811 = vst [vmem:[#allocation4 + $0x58] sm:$0xf] %v803_v49  ;;  %1197 = vrot.lane.b32.xlu1 %v3305_v24, %s3119_s29  ;;  %1195 = vrot.lane.b32.xlu0 %v3292_v20, %s3119_s29 }
  0xe5   : > { %v826_v50 = vpop.permute.xlu1 %825  ;;  %v824_v52 = vpop.permute.xlu0 %823 }
  0xe6   : > { %v831_v53 = vsel %vm799_vm3, %v822_v47, %v824_v52  ;;  %v832_v55 = vsel %vm799_vm3, %v824_v52, %v826_v50 }
  0xe7   : > { %839 = vst [vmem:[#allocation4 + $0x40] sm:$0xf0] %v831_v53  ;;  %840 = vst [vmem:[#allocation4 + $0x48] sm:$0xf0] %v832_v55  ;;  %1227 = vrot.lane.b32.xlu1 %v3278_v16, %s3120_s30  ;;  %1225 = vrot.lane.b32.xlu0 %v3290_v19, %s3120_s30 }
  0xe9   : > { %v830_v56 = vpop.permute.xlu1 %829  ;;  %v828_v60 = vpop.permute.xlu0 %827 }
  0xea   : > { %v833_v61 = vsel %vm799_vm3, %v826_v50, %v828_v60  ;;  %v834_v63 = vsel %vm799_vm3, %v828_v60, %v830_v56  ;;  %vm1815_vm3 = vcmask 310272  }
  0xeb   : > { %841 = vst [vmem:[#allocation4 + $0x50] sm:$0xf0] %v833_v61  ;;  %842 = vst [vmem:[#allocation4 + $0x58] sm:$0xf0] %v834_v63  ;;  %1259 = vrot.lane.b32.xlu1 %v3305_v24, %s3120_s30  ;;  %1257 = vrot.lane.b32.xlu0 %v3292_v20, %s3120_s30 }
  0xed   : > { %v854_v2 = vpop.permute.xlu1 %853  ;;  %v852_v3 = vpop.permute.xlu0 %851 }
  0xee   : > { %v862_v4 = vsel %vm861_vm4, %v852_v3, %v854_v2  ;;  %v2303_v34 = vld [vmem:[#allocation4 + $0x48] sm:$0xff]  ;;  %v2302_v37 = vld [vmem:[#allocation4 + $0x40] sm:$0xff] }
  0xef   : > { %870 = vst [vmem:[#allocation4 + $0x60] sm:$0xf] %v862_v4  ;;  %1193 = vrot.lane.b32.xlu1 %v3298_v21, %s3119_s29  ;;  %1161 = vrot.lane.b32.xlu0 %v3280_v17, %s3119_s29 }
  0xf1   : > { %v858_v5 = vpop.permute.xlu1 %857  ;;  %v856_v6 = vpop.permute.xlu0 %855 }
  0xf2   : > { %v863_v7 = vsel %vm861_vm4, %v854_v2, %v856_v6  ;;  %v864_v8 = vsel %vm861_vm4, %v856_v6, %v858_v5  ;;  %v2305_v43 = vld [vmem:[#allocation4 + $0x58] sm:$0xff]  ;;  %v2304_v47 = vld [vmem:[#allocation4 + $0x50] sm:$0xff] }
  0xf3   : > { %871 = vst [vmem:[#allocation4 + $0x68] sm:$0xf] %v863_v7  ;;  %872 = vst [vmem:[#allocation4 + $0x70] sm:$0xf] %v864_v8  ;;  %1255 = vrot.lane.b32.xlu1 %v3298_v21, %s3120_s30  ;;  %1223 = vrot.lane.b32.xlu0 %v3280_v17, %s3120_s30 }
  0xf5   : > { %v884_v10 = vpop.permute.xlu1 %883  ;;  %v860_v11 = vpop.permute.xlu0 %859 }
  0xf6   : > { %v865_v12 = vsel %vm861_vm4, %v858_v5, %v860_v11 }
  0xf7   : > { %873 = vst [vmem:[#allocation4 + $0x78] sm:$0xf] %v865_v12  ;;  %1169 = vrot.lane.b32.xlu1 %v1155_v9, %s3119_s29  ;;  %1167 = vrot.lane.b32.xlu0 %v3285_v18, %s3119_s29 }
  0xf9   : > { %v888_v14 = vpop.permute.xlu1 %887  ;;  %v886_v15 = vpop.permute.xlu0 %885 }
  0xfa   : > { %v893_v22 = vsel %vm861_vm4, %v884_v10, %v886_v15  ;;  %v894_v25 = vsel %vm861_vm4, %v886_v15, %v888_v14 }
  0xfb   : > { %901 = vst [vmem:[#allocation4 + $0x60] sm:$0xf0] %v893_v22  ;;  %902 = vst [vmem:[#allocation4 + $0x68] sm:$0xf0] %v894_v25  ;;  %1201 = vrot.lane.b32.xlu1 %v3042_v13, %s3119_s29  ;;  %1199 = vrot.lane.b32.xlu0 %v3300_v23, %s3119_s29  ;;  %v1279_v13 = vld [vmem:[#allocation2 + $0x1c] sm:$0xf] }
  0xfc   : > { %v3044_v25 = vld [vmem:[#allocation3 + $0x1c] ss:$0 sps:$4 sm:$0xff]  }
  0xfd   : > { %v892_v27 = vpop.permute.xlu1 %891  ;;  %v890_v28 = vpop.permute.xlu0 %889 }
  0xfe   : > { %v895_v29 = vsel %vm861_vm4, %v888_v14, %v890_v28  ;;  %v896_v30 = vsel %vm861_vm4, %v890_v28, %v892_v27  ;;  %vm1877_vm4 = vcmask 302080  }
  0xff   : > { %903 = vst [vmem:[#allocation4 + $0x70] sm:$0xf0] %v895_v29  ;;  %904 = vst [vmem:[#allocation4 + $0x78] sm:$0xf0] %v896_v30  ;;  %1231 = vrot.lane.b32.xlu1 %v1217_v26, %s3120_s30  ;;  %1229 = vrot.lane.b32.xlu0 %v3285_v18, %s3120_s30  ;;  %v1341_v30 = vld [vmem:[#allocation2 + $0x1c] sm:$0xf] }
 0x101   : > { %v916_v32 = vpop.permute.xlu1 %915  ;;  %v914_v33 = vpop.permute.xlu0 %913 }
 0x102   : > { %v924_v35 = vsel %vm923_vm5, %v914_v33, %v916_v32  ;;  %v2307_v36 = vld [vmem:[#allocation4 + $0x68] sm:$0xff]  ;;  %v2306_v38 = vld [vmem:[#allocation4 + $0x60] sm:$0xff] }
 0x103   : > { %932 = vst [vmem:[#allocation4 + $0x80] sm:$0xf] %v924_v35  ;;  %1263 = vrot.lane.b32.xlu1 %v3043_v31, %s3120_s30  ;;  %1261 = vrot.lane.b32.xlu0 %v3300_v23, %s3120_s30  ;;  %v2862_v39 = vpack.c.bf16 %v2307_v36, %v2303_v34  ;;  %v2864_v40 = vpack.c.bf16 %v2306_v38, %v2302_v37  ;;  %v3045_v35 = vld [vmem:[#allocation3 + $0x1c] ss:$0 sps:$4 sm:$0xff]  }
 0x105   : > { %v920_v41 = vpop.permute.xlu1 %919  ;;  %2863 = vmatprep.subr.bf16.mxu0 %v2862_v39  ;;  %v918_v42 = vpop.permute.xlu0 %917 }
 0x106   : > { %v925_v44 = vsel %vm923_vm5, %v916_v32, %v918_v42  ;;  %v926_v45 = vsel %vm923_vm5, %v918_v42, %v920_v41  ;;  %2865 = vmatpush1.bf16.msra.mxu0 %v2864_v40  ;;  %v2309_v46 = vld [vmem:[#allocation4 + $0x78] sm:$0xff]  ;;  %v2308_v48 = vld [vmem:[#allocation4 + $0x70] sm:$0xff] }
 0x107   : > { %933 = vst [vmem:[#allocation4 + $0x88] sm:$0xf] %v925_v44  ;;  %934 = vst [vmem:[#allocation4 + $0x90] sm:$0xf] %v926_v45  ;;  %1289 = vrot.lane.b32.xlu1 %v3278_v16, %s3121_s24  ;;  %1287 = vrot.lane.b32.xlu0 %v3290_v19, %s3121_s24  ;;  %v2914_v49 = vpack.c.bf16 %v2309_v46, %v2305_v43  ;;  %v2916_v50 = vpack.c.bf16 %v2308_v48, %v2304_v47 }
 0x109   : > { %v946_v52 = vpop.permute.xlu1 %945  ;;  %2915 = vmatprep.subr.bf16.mxu1 %v2914_v49  ;;  %v922_v53 = vpop.permute.xlu0 %921 }
 0x10a   : > { %v927_v55 = vsel %vm923_vm5, %v920_v41, %v922_v53  ;;  %2917 = vmatpush1.bf16.msra.mxu1 %v2916_v50 }
 0x10b   : > { %935 = vst [vmem:[#allocation4 + $0x98] sm:$0xf] %v927_v55  ;;  %1321 = vrot.lane.b32.xlu1 %v3305_v24, %s3121_s24  ;;  %1319 = vrot.lane.b32.xlu0 %v3292_v20, %s3121_s24 }
 0x10d   : > { %v950_v56 = vpop.permute.xlu1 %949  ;;  %v948_v60 = vpop.permute.xlu0 %947 }
 0x10e   : > { %v955_v61 = vsel %vm923_vm5, %v946_v52, %v948_v60  ;;  %v956_v63 = vsel %vm923_vm5, %v948_v60, %v950_v56 }
 0x10f   : > { %963 = vst [vmem:[#allocation4 + $0x80] sm:$0xf0] %v955_v61  ;;  %964 = vst [vmem:[#allocation4 + $0x88] sm:$0xf0] %v956_v63  ;;  %1351 = vrot.lane.b32.xlu1 %v3278_v16, %s3122_s27  ;;  %1349 = vrot.lane.b32.xlu0 %v3290_v19, %s3122_s27 }
 0x111   : > { %v954_v2 = vpop.permute.xlu1 %953  ;;  %v952_v3 = vpop.permute.xlu0 %951 }
 0x112   : > { %v957_v4 = vsel %vm923_vm5, %v950_v56, %v952_v3  ;;  %v958_v5 = vsel %vm923_vm5, %v952_v3, %v954_v2  ;;  %vm1939_vm5 = vcmask 236544  }
 0x113   : > { %965 = vst [vmem:[#allocation4 + $0x90] sm:$0xf0] %v957_v4  ;;  %966 = vst [vmem:[#allocation4 + $0x98] sm:$0xf0] %v958_v5  ;;  %1383 = vrot.lane.b32.xlu1 %v3305_v24, %s3122_s27  ;;  %1381 = vrot.lane.b32.xlu0 %v3292_v20, %s3122_s27 }
 0x115   : > { %v978_v6 = vpop.permute.xlu1 %977  ;;  %v976_v7 = vpop.permute.xlu0 %975 }
 0x116   : > { %v986_v8 = vsel %vm985_vm6, %v976_v7, %v978_v6  ;;  %v2311_v38 = vld [vmem:[#allocation4 + $0x88] sm:$0xff]  ;;  %v2310_v41 = vld [vmem:[#allocation4 + $0x80] sm:$0xff] }
 0x117   : > { %994 = vst [vmem:[#allocation4 + $0xa0] sm:$0xf] %v986_v8  ;;  %1317 = vrot.lane.b32.xlu1 %v3298_v21, %s3121_s24  ;;  %1285 = vrot.lane.b32.xlu0 %v3280_v17, %s3121_s24 }
 0x119   : > { %v982_v9 = vpop.permute.xlu1 %981  ;;  %v980_v10 = vpop.permute.xlu0 %979 }
 0x11a   : > { %v987_v11 = vsel %vm985_vm6, %v978_v6, %v980_v10  ;;  %v988_v12 = vsel %vm985_vm6, %v980_v10, %v982_v9  ;;  %v2313_v47 = vld [vmem:[#allocation4 + $0x98] sm:$0xff]  ;;  %v2312_v52 = vld [vmem:[#allocation4 + $0x90] sm:$0xff] }
 0x11b   : > { %995 = vst [vmem:[#allocation4 + $0xa8] sm:$0xf] %v987_v11  ;;  %996 = vst [vmem:[#allocation4 + $0xb0] sm:$0xf] %v988_v12  ;;  %1379 = vrot.lane.b32.xlu1 %v3298_v21, %s3122_s27  ;;  %1347 = vrot.lane.b32.xlu0 %v3280_v17, %s3122_s27 }
 0x11d   : > { %v1008_v14 = vpop.permute.xlu1 %1007  ;;  %v984_v15 = vpop.permute.xlu0 %983 }
 0x11e   : > { %v989_v22 = vsel %vm985_vm6, %v982_v9, %v984_v15 }
 0x11f   : > { %997 = vst [vmem:[#allocation4 + $0xb8] sm:$0xf] %v989_v22  ;;  %1293 = vrot.lane.b32.xlu1 %v1279_v13, %s3121_s24  ;;  %1291 = vrot.lane.b32.xlu0 %v3285_v18, %s3121_s24 }
 0x121   : > { %v1012_v26 = vpop.permute.xlu1 %1011  ;;  %v1010_v27 = vpop.permute.xlu0 %1009 }
 0x122   : > { %v1017_v28 = vsel %vm985_vm6, %v1008_v14, %v1010_v27  ;;  %v1018_v29 = vsel %vm985_vm6, %v1010_v27, %v1012_v26 }
 0x123   : > { %1025 = vst [vmem:[#allocation4 + $0xa0] sm:$0xf0] %v1017_v28  ;;  %1026 = vst [vmem:[#allocation4 + $0xa8] sm:$0xf0] %v1018_v29  ;;  %1325 = vrot.lane.b32.xlu1 %v3044_v25, %s3121_s24  ;;  %1323 = vrot.lane.b32.xlu0 %v3300_v23, %s3121_s24 }
 0x125   : > { %v1016_v31 = vpop.permute.xlu1 %1015  ;;  %v1014_v32 = vpop.permute.xlu0 %1013 }
 0x126   : > { %v1019_v33 = vsel %vm985_vm6, %v1012_v26, %v1014_v32  ;;  %v1020_v34 = vsel %vm985_vm6, %v1014_v32, %v1016_v31  ;;  %vm2404_vm6 = vcmask 719872  }
 0x127   : > { %1027 = vst [vmem:[#allocation4 + $0xb0] sm:$0xf0] %v1019_v33  ;;  %1028 = vst [vmem:[#allocation4 + $0xb8] sm:$0xf0] %v1020_v34  ;;  %1355 = vrot.lane.b32.xlu1 %v1341_v30, %s3122_s27  ;;  %1353 = vrot.lane.b32.xlu0 %v3285_v18, %s3122_s27 }
 0x129   : > { %v1040_v36 = vpop.permute.xlu1 %1039  ;;  %v1038_v37 = vpop.permute.xlu0 %1037 }
 0x12a   : > { %v1048_v39 = vsel %vm1047_vm7, %v1038_v37, %v1040_v36  ;;  %v2315_v40 = vld [vmem:[#allocation4 + $0xa8] sm:$0xff]  ;;  %v2314_v42 = vld [vmem:[#allocation4 + $0xa0] sm:$0xff] }
 0x12b   : > { %1056 = vst [vmem:[#allocation4 + $0xc0] sm:$0xf] %v1048_v39  ;;  %1387 = vrot.lane.b32.xlu1 %v3045_v35, %s3122_s27  ;;  %1385 = vrot.lane.b32.xlu0 %v3300_v23, %s3122_s27  ;;  %v2866_v43 = vpack.c.bf16 %v2315_v40, %v2311_v38  ;;  %v2868_v44 = vpack.c.bf16 %v2314_v42, %v2310_v41 }
 0x12d   : > { %v1044_v45 = vpop.permute.xlu1 %1043  ;;  %2867 = vmatprep.subr.bf16.mxu0 %v2866_v43  ;;  %v1042_v46 = vpop.permute.xlu0 %1041 }
 0x12e   : > { %v1049_v48 = vsel %vm1047_vm7, %v1040_v36, %v1042_v46  ;;  %v1050_v49 = vsel %vm1047_vm7, %v1042_v46, %v1044_v45  ;;  %2869 = vmatpush1.bf16.msra.mxu0 %v2868_v44  ;;  %v2317_v50 = vld [vmem:[#allocation4 + $0xb8] sm:$0xff]  ;;  %v2316_v53 = vld [vmem:[#allocation4 + $0xb0] sm:$0xff] }
 0x12f   : > { %1057 = vst [vmem:[#allocation4 + $0xc8] sm:$0xf] %v1049_v48  ;;  %1058 = vst [vmem:[#allocation4 + $0xd0] sm:$0xf] %v1050_v49  ;;  %1413 = vrot.lane.b32.xlu1 %v3278_v16, %s3123_s22  ;;  %1411 = vrot.lane.b32.xlu0 %v3290_v19, %s3123_s22  ;;  %v2918_v55 = vpack.c.bf16 %v2317_v50, %v2313_v47  ;;  %v2920_v56 = vpack.c.bf16 %v2316_v53, %v2312_v52  ;;  %v1403_v19 = vld [vmem:[#allocation2 + $0x1c] sm:$0xf] }
 0x130   : > { %v1489_v48 = vld [vmem:[#allocation2 + $0x20] sm:$0xf]  ;;  %v3051_v53 = vld [vmem:[#allocation3 + $0x20] ss:$0 sps:$4 sm:$0xff]  }
 0x131   : > { %v1072_v60 = vpop.permute.xlu1 %1071  ;;  %2919 = vmatprep.subr.bf16.mxu1 %v2918_v55  ;;  %v1046_v61 = vpop.permute.xlu0 %1045 }
 0x132   : > { %v1051_v63 = vsel %vm1047_vm7, %v1044_v45, %v1046_v61  ;;  %2921 = vmatpush1.bf16.msra.mxu1 %v2920_v56  ;;  %v1551_v61 = vld [vmem:[#allocation2 + $0x20] sm:$0xf] }
 0x133   : > { %1059 = vst [vmem:[#allocation4 + $0xd8] sm:$0xf] %v1051_v63  ;;  %1445 = vrot.lane.b32.xlu1 %v3305_v24, %s3123_s22  ;;  %1443 = vrot.lane.b32.xlu0 %v3292_v20, %s3123_s22  ;;  %v3046_v20 = vld [vmem:[#allocation3 + $0x1c] ss:$0 sps:$4 sm:$0xff]  }
 0x135   : > { %v1102_v2 = vpop.permute.xlu1 %1101  ;;  %v1074_v16 = vpop.permute.xlu0 %1073 }
 0x136   : > { %v1080_v3 = vsel %vm1047_vm7, %v1072_v60, %v1074_v16 }
 0x137   : > { %1088 = vst [vmem:[#allocation4 + $0xc8] sm:$0xf0] %v1080_v3  ;;  %1441 = vrot.lane.b32.xlu1 %v3298_v21, %s3123_s22  ;;  %1409 = vrot.lane.b32.xlu0 %v3280_v17, %s3123_s22 }
 0x139   : > { %v1134_v4 = vpop.permute.xlu1 %1133  ;;  %v1104_v5 = vpop.permute.xlu0 %1103 }
 0x13a   : > { %v1111_v24 = vsel %vm1109_vm8, %v1102_v2, %v1104_v5 }
 0x13b   : > { %1119 = vst [vmem:[#allocation4 + $0xe8] sm:$0xf] %v1111_v24  ;;  %1417 = vrot.lane.b32.xlu1 %v1403_v19, %s3123_s22  ;;  %1415 = vrot.lane.b32.xlu0 %v3285_v18, %s3123_s22  ;;  %v3052_v19 = vld [vmem:[#allocation3 + $0x20] ss:$0 sps:$4 sm:$0xff]  }
 0x13d   : > { %v1070_v6 = vpop.permute.xlu1 %1069  ;;  %v1136_v7 = vpop.permute.xlu0 %1135 }
 0x13e   : > { %v1079_v21 = vsel %vm1047_vm7, %v1070_v6, %v1072_v60  ;;  %v1142_v8 = vsel %vm1109_vm8, %v1134_v4, %v1136_v7  ;;  %v2319_v14 = vld [vmem:[#allocation4 + $0xc8] sm:$0xff] }
 0x13f   : > { %1087 = vst [vmem:[#allocation4 + $0xc0] sm:$0xf0] %v1079_v21  ;;  %1150 = vst [vmem:[#allocation4 + $0xe8] sm:$0xf0] %v1142_v8  ;;  %1449 = vrot.lane.b32.xlu1 %v3046_v20, %s3123_s22  ;;  %1447 = vrot.lane.b32.xlu0 %v3300_v23, %s3123_s22 }
 0x141   : > { %v1132_v17 = vpop.permute.xlu1 %1131  ;;  %v1100_v9 = vpop.permute.xlu0 %1099 }
 0x142   : > { %v1141_v10 = vsel %vm1109_vm8, %v1132_v17, %v1134_v4  ;;  %v1110_v18 = vsel %vm1109_vm8, %v1100_v9, %v1102_v2 }
 0x143   : > { %1149 = vst [vmem:[#allocation4 + $0xe0] sm:$0xf0] %v1141_v10  ;;  %1118 = vst [vmem:[#allocation4 + $0xe0] sm:$0xf] %v1110_v18  ;;  %1499 = vrot.lane.b32.xlu1 %v3376_v57, %s3124_s14  ;;  %1497 = vrot.lane.b32.xlu0 %v3371_v54, %s3124_s14 }
 0x145   : > { %v1078_v11 = vpop.permute.xlu1 %1077  ;;  %v1076_v12 = vpop.permute.xlu0 %1075 }
 0x146   : > { %v1081_v13 = vsel %vm1047_vm7, %v1074_v16, %v1076_v12  ;;  %v1082_v23 = vsel %vm1047_vm7, %v1076_v12, %v1078_v11  ;;  %v2323_v15 = vld [vmem:[#allocation4 + $0xe8] sm:$0xff]  ;;  %v2318_v29 = vld [vmem:[#allocation4 + $0xc0] sm:$0xff]  ;;  %vm2001_vm7 = vcmask 228352  }
 0x147   : > { %1089 = vst [vmem:[#allocation4 + $0xd0] sm:$0xf0] %v1081_v13  ;;  %1090 = vst [vmem:[#allocation4 + $0xd8] sm:$0xf0] %v1082_v23  ;;  %1531 = vrot.lane.b32.xlu1 %v3392_v62, %s3124_s14  ;;  %1529 = vrot.lane.b32.xlu0 %v3397_v0, %s3124_s14  ;;  %v2870_v22 = vpack.c.bf16 %v2323_v15, %v2319_v14 }
 0x149   : > { %v1108_v25 = vpop.permute.xlu1 %1107  ;;  %2871 = vmatprep.subr.bf16.mxu0 %v2870_v22  ;;  %v1106_v26 = vpop.permute.xlu0 %1105 }
 0x14a   : > { %v1112_v27 = vsel %vm1109_vm8, %v1104_v5, %v1106_v26  ;;  %v1113_v28 = vsel %vm1109_vm8, %v1106_v26, %v1108_v25  ;;  %v2322_v30 = vld [vmem:[#allocation4 + $0xe0] sm:$0xff] }
 0x14b   : > { %1120 = vst [vmem:[#allocation4 + $0xf0] sm:$0xf] %v1112_v27  ;;  %1121 = vst [vmem:[#allocation4 + $0xf8] sm:$0xf] %v1113_v28  ;;  %1561 = vrot.lane.b32.xlu1 %v3376_v57, %s3125_s28  ;;  %1559 = vrot.lane.b32.xlu0 %v3371_v54, %s3125_s28  ;;  %v2872_v31 = vpack.c.bf16 %v2322_v30, %v2318_v29 }
 0x14d   : > { %v1140_v32 = vpop.permute.xlu1 %1139  ;;  %2873 = vmatpush1.bf16.msra.mxu0 %v2872_v31  ;;  %v1138_v33 = vpop.permute.xlu0 %1137 }
 0x14e   : > { %v1143_v34 = vsel %vm1109_vm8, %v1136_v7, %v1138_v33  ;;  %v1144_v35 = vsel %vm1109_vm8, %v1138_v33, %v1140_v32  ;;  %v2321_v41 = vld [vmem:[#allocation4 + $0xd8] sm:$0xff]  ;;  %v2320_v44 = vld [vmem:[#allocation4 + $0xd0] sm:$0xff]  ;;  %vm2063_vm8 = vcmask 220160  }
 0x14f   : > { %1151 = vst [vmem:[#allocation4 + $0xf0] sm:$0xf0] %v1143_v34  ;;  %1152 = vst [vmem:[#allocation4 + $0xf8] sm:$0xf0] %v1144_v35  ;;  %1593 = vrot.lane.b32.xlu1 %v3392_v62, %s3125_s28  ;;  %1591 = vrot.lane.b32.xlu0 %v3397_v0, %s3125_s28 }
 0x151   : > { %v1166_v36 = vpop.permute.xlu1 %1165  ;;  %v1164_v37 = vpop.permute.xlu0 %1163 }
 0x152   : > { %v1173_v38 = vsel %vm1171_vm9, %v1164_v37, %v1166_v36 }
 0x153   : > { %1181 = vst [vmem:[#allocation4 + $0x108] sm:$0xf] %v1173_v38  ;;  %1527 = vrot.lane.b32.xlu1 %v3405_v1, %s3124_s14  ;;  %1495 = vrot.lane.b32.xlu0 %v3367_v51, %s3124_s14 }
 0x155   : > { %v3593_v39 = vpop.permute.xlu1 %1197  ;;  %v1196_v40 = vpop.permute.xlu0 %1195 }
 0x156   : > { %v1204_v42 = vsel %vm1171_vm9, %v1196_v40, %v3593_v39  ;;  %v2325_v43 = vld [vmem:[#allocation4 + $0xf8] sm:$0xff]  ;;  %v2324_v45 = vld [vmem:[#allocation4 + $0xf0] sm:$0xff] }
 0x157   : > { %1212 = vst [vmem:[#allocation4 + $0x108] sm:$0xf0] %v1204_v42  ;;  %1589 = vrot.lane.b32.xlu1 %v3405_v1, %s3125_s28  ;;  %1557 = vrot.lane.b32.xlu0 %v3367_v51, %s3125_s28  ;;  %v2922_v46 = vpack.c.bf16 %v2325_v43, %v2321_v41  ;;  %v2924_v47 = vpack.c.bf16 %v2324_v45, %v2320_v44  ;;  %v1613_v44 = vld [vmem:[#allocation2 + $0x20] sm:$0xf] }
 0x159   : > { %v1228_v49 = vpop.permute.xlu1 %1227  ;;  %2923 = vmatprep.subr.bf16.mxu1 %v2922_v46  ;;  %v1226_v50 = vpop.permute.xlu0 %1225 }
 0x15a   : > { %v1235_v52 = vsel %vm1233_vm10, %v1226_v50, %v1228_v49  ;;  %2925 = vmatpush1.bf16.msra.mxu1 %v2924_v47 }
 0x15b   : > { %1243 = vst [vmem:[#allocation4 + $0x128] sm:$0xf] %v1235_v52  ;;  %1503 = vrot.lane.b32.xlu1 %v1489_v48, %s3124_s14  ;;  %1501 = vrot.lane.b32.xlu0 %v3384_v58, %s3124_s14  ;;  %v3053_v48 = vld [vmem:[#allocation3 + $0x20] ss:$0 sps:$4 sm:$0xff]  }
 0x15d   : > { %v1260_v55 = vpop.permute.xlu1 %1259  ;;  %v1258_v56 = vpop.permute.xlu0 %1257 }
 0x15e   : > { %v1266_v60 = vsel %vm1233_vm10, %v1258_v56, %v1260_v55  ;;  %v2327_v6 = vld [vmem:[#allocation4 + $0x108] sm:$0xff] }
 0x15f   : > { %1274 = vst [vmem:[#allocation4 + $0x128] sm:$0xf0] %v1266_v60  ;;  %1535 = vrot.lane.b32.xlu1 %v3051_v53, %s3124_s14  ;;  %1533 = vrot.lane.b32.xlu0 %v3388_v59, %s3124_s14  ;;  %v1675_v53 = vld [vmem:[#allocation2 + $0x20] sm:$0xf] }
 0x161   : > { %v1194_v63 = vpop.permute.xlu1 %1193  ;;  %v1162_v2 = vpop.permute.xlu0 %1161 }
 0x162   : > { %v1203_v16 = vsel %vm1171_vm9, %v1194_v63, %v1196_v40  ;;  %v1172_v3 = vsel %vm1171_vm9, %v1162_v2, %v1164_v37  ;;  %v3054_v63 = vld [vmem:[#allocation3 + $0x20] ss:$0 sps:$4 sm:$0xff]  }
 0x163   : > { %1211 = vst [vmem:[#allocation4 + $0x100] sm:$0xf0] %v1203_v16  ;;  %1180 = vst [vmem:[#allocation4 + $0x100] sm:$0xf] %v1172_v3  ;;  %1565 = vrot.lane.b32.xlu1 %v1551_v61, %s3125_s28  ;;  %1563 = vrot.lane.b32.xlu0 %v3384_v58, %s3125_s28 }
 0x165   : > { %v1256_v4 = vpop.permute.xlu1 %1255  ;;  %v1224_v5 = vpop.permute.xlu0 %1223 }
 0x166   : > { %v1265_v24 = vsel %vm1233_vm10, %v1256_v4, %v1258_v56  ;;  %v1234_v20 = vsel %vm1233_vm10, %v1224_v5, %v1226_v50  ;;  %v2331_v7 = vld [vmem:[#allocation4 + $0x128] sm:$0xff] }
 0x167   : > { %1273 = vst [vmem:[#allocation4 + $0x120] sm:$0xf0] %v1265_v24  ;;  %1242 = vst [vmem:[#allocation4 + $0x120] sm:$0xf] %v1234_v20  ;;  %1597 = vrot.lane.b32.xlu1 %v3052_v19, %s3125_s28  ;;  %1595 = vrot.lane.b32.xlu0 %v3388_v59, %s3125_s28  ;;  %v2874_v21 = vpack.c.bf16 %v2331_v7, %v2327_v6 }
 0x169   : > { %v1170_v8 = vpop.permute.xlu1 %1169  ;;  %2875 = vmatprep.subr.bf16.mxu0 %v2874_v21  ;;  %v1168_v17 = vpop.permute.xlu0 %1167 }
 0x16a   : > { %v1174_v9 = vsel %vm1171_vm9, %v1166_v36, %v1168_v17  ;;  %v1175_v10 = vsel %vm1171_vm9, %v1168_v17, %v1170_v8  ;;  %v2326_v23 = vld [vmem:[#allocation4 + $0x100] sm:$0xff] }
 0x16b   : > { %1182 = vst [vmem:[#allocation4 + $0x110] sm:$0xf] %v1174_v9  ;;  %1183 = vst [vmem:[#allocation4 + $0x118] sm:$0xf] %v1175_v10  ;;  %1623 = vrot.lane.b32.xlu1 %v3376_v57, %s3126_s23  ;;  %1621 = vrot.lane.b32.xlu0 %v3371_v54, %s3126_s23 }
 0x16d   : > { %v1202_v18 = vpop.permute.xlu1 %1201  ;;  %v1200_v11 = vpop.permute.xlu0 %1199 }
 0x16e   : > { %v1205_v12 = vsel %vm1171_vm9, %v3593_v39, %v1200_v11  ;;  %v1206_v13 = vsel %vm1171_vm9, %v1200_v11, %v1202_v18  ;;  %v2330_v14 = vld [vmem:[#allocation4 + $0x120] sm:$0xff]  ;;  %vm2125_vm9 = vcmask 154624  }
 0x16f   : > { %1213 = vst [vmem:[#allocation4 + $0x110] sm:$0xf0] %v1205_v12  ;;  %1214 = vst [vmem:[#allocation4 + $0x118] sm:$0xf0] %v1206_v13  ;;  %1655 = vrot.lane.b32.xlu1 %v3392_v62, %s3126_s23  ;;  %1653 = vrot.lane.b32.xlu0 %v3397_v0, %s3126_s23  ;;  %v2876_v15 = vpack.c.bf16 %v2330_v14, %v2326_v23 }
 0x171   : > { %v1232_v22 = vpop.permute.xlu1 %1231  ;;  %2877 = vmatpush1.bf16.msra.mxu0 %v2876_v15  ;;  %v1230_v25 = vpop.permute.xlu0 %1229 }
 0x172   : > { %v1236_v26 = vsel %vm1233_vm10, %v1228_v49, %v1230_v25  ;;  %v1237_v27 = vsel %vm1233_vm10, %v1230_v25, %v1232_v22 }
 0x173   : > { %1244 = vst [vmem:[#allocation4 + $0x130] sm:$0xf] %v1236_v26  ;;  %1245 = vst [vmem:[#allocation4 + $0x138] sm:$0xf] %v1237_v27  ;;  %1685 = vrot.lane.b32.xlu1 %v3376_v57, %s3127_s17  ;;  %1683 = vrot.lane.b32.xlu0 %v3371_v54, %s3127_s17 }
 0x175   : > { %v1264_v28 = vpop.permute.xlu1 %1263  ;;  %v1262_v29 = vpop.permute.xlu0 %1261 }
 0x176   : > { %v1267_v30 = vsel %vm1233_vm10, %v1260_v55, %v1262_v29  ;;  %v1268_v31 = vsel %vm1233_vm10, %v1262_v29, %v1264_v28  ;;  %v2329_v37 = vld [vmem:[#allocation4 + $0x118] sm:$0xff]  ;;  %v2328_v40 = vld [vmem:[#allocation4 + $0x110] sm:$0xff]  ;;  %vm2187_vm10 = vcmask 146432  }
 0x177   : > { %1275 = vst [vmem:[#allocation4 + $0x130] sm:$0xf0] %v1267_v30  ;;  %1276 = vst [vmem:[#allocation4 + $0x138] sm:$0xf0] %v1268_v31  ;;  %1717 = vrot.lane.b32.xlu1 %v3392_v62, %s3127_s17  ;;  %1715 = vrot.lane.b32.xlu0 %v3397_v0, %s3127_s17 }
 0x179   : > { %v1290_v32 = vpop.permute.xlu1 %1289  ;;  %v1288_v33 = vpop.permute.xlu0 %1287 }
 0x17a   : > { %v1297_v34 = vsel %vm1295_vm11, %v1288_v33, %v1290_v32 }
 0x17b   : > { %1305 = vst [vmem:[#allocation4 + $0x148] sm:$0xf] %v1297_v34  ;;  %1651 = vrot.lane.b32.xlu1 %v3405_v1, %s3126_s23  ;;  %1619 = vrot.lane.b32.xlu0 %v3367_v51, %s3126_s23 }
 0x17d   : > { %v3649_v35 = vpop.permute.xlu1 %1321  ;;  %v1320_v36 = vpop.permute.xlu0 %1319 }
 0x17e   : > { %v1328_v38 = vsel %vm1295_vm11, %v1320_v36, %v3649_v35  ;;  %v2333_v39 = vld [vmem:[#allocation4 + $0x138] sm:$0xff]  ;;  %v2332_v41 = vld [vmem:[#allocation4 + $0x130] sm:$0xff] }
 0x17f   : > { %1336 = vst [vmem:[#allocation4 + $0x148] sm:$0xf0] %v1328_v38  ;;  %1713 = vrot.lane.b32.xlu1 %v3405_v1, %s3127_s17  ;;  %1681 = vrot.lane.b32.xlu0 %v3367_v51, %s3127_s17  ;;  %v2926_v42 = vpack.c.bf16 %v2333_v39, %v2329_v37  ;;  %v2928_v43 = vpack.c.bf16 %v2332_v41, %v2328_v40  ;;  %v1737_v40 = vld [vmem:[#allocation2 + $0x20] sm:$0xf] }
 0x181   : > { %v1352_v45 = vpop.permute.xlu1 %1351  ;;  %2927 = vmatprep.subr.bf16.mxu1 %v2926_v42  ;;  %v1350_v46 = vpop.permute.xlu0 %1349 }
 0x182   : > { %v1359_v47 = vsel %vm1357_vm12, %v1350_v46, %v1352_v45  ;;  %2929 = vmatpush1.bf16.msra.mxu1 %v2928_v43 }
 0x183   : > { %1367 = vst [vmem:[#allocation4 + $0x168] sm:$0xf] %v1359_v47  ;;  %1627 = vrot.lane.b32.xlu1 %v1613_v44, %s3126_s23  ;;  %1625 = vrot.lane.b32.xlu0 %v3384_v58, %s3126_s23 }
 0x185   : > { %v1384_v49 = vpop.permute.xlu1 %1383  ;;  %v1382_v50 = vpop.permute.xlu0 %1381 }
 0x186   : > { %v1390_v52 = vsel %vm1357_vm12, %v1382_v50, %v1384_v49  ;;  %v2335_v4 = vld [vmem:[#allocation4 + $0x148] sm:$0xff] }
 0x187   : > { %1398 = vst [vmem:[#allocation4 + $0x168] sm:$0xf0] %v1390_v52  ;;  %1659 = vrot.lane.b32.xlu1 %v3053_v48, %s3126_s23  ;;  %1657 = vrot.lane.b32.xlu0 %v3388_v59, %s3126_s23 }
 0x189   : > { %v1318_v55 = vpop.permute.xlu1 %1317  ;;  %v1286_v56 = vpop.permute.xlu0 %1285 }
 0x18a   : > { %v1327_v60 = vsel %vm1295_vm11, %v1318_v55, %v1320_v36  ;;  %v1296_v61 = vsel %vm1295_vm11, %v1286_v56, %v1288_v33  ;;  %v1799_v55 = vld [vmem:[#allocation2 + $0x20] sm:$0xf] }
 0x18b   : > { %1335 = vst [vmem:[#allocation4 + $0x140] sm:$0xf0] %v1327_v60  ;;  %1304 = vst [vmem:[#allocation4 + $0x140] sm:$0xf] %v1296_v61  ;;  %1689 = vrot.lane.b32.xlu1 %v1675_v53, %s3127_s17  ;;  %1687 = vrot.lane.b32.xlu0 %v3384_v58, %s3127_s17  ;;  %v2346_v56 = vld [vmem:[#allocation4 + $0x1a0] sm:$0xff] }
 0x18d   : > { %v1380_v2 = vpop.permute.xlu1 %1379  ;;  %v1348_v16 = vpop.permute.xlu0 %1347 }
 0x18e   : > { %v1389_v3 = vsel %vm1357_vm12, %v1380_v2, %v1382_v50  ;;  %v1358_v19 = vsel %vm1357_vm12, %v1348_v16, %v1350_v46  ;;  %v2339_v5 = vld [vmem:[#allocation4 + $0x168] sm:$0xff] }
 0x18f   : > { %1397 = vst [vmem:[#allocation4 + $0x160] sm:$0xf0] %v1389_v3  ;;  %1366 = vst [vmem:[#allocation4 + $0x160] sm:$0xf] %v1358_v19  ;;  %1721 = vrot.lane.b32.xlu1 %v3054_v63, %s3127_s17  ;;  %1719 = vrot.lane.b32.xlu0 %v3388_v59, %s3127_s17  ;;  %v2878_v24 = vpack.c.bf16 %v2339_v5, %v2335_v4  ;;  %v2347_v46 = vld [vmem:[#allocation4 + $0x1a8] sm:$0xff] }
 0x190   : > { %v3056_v19 = vld [vmem:[#allocation3 + $0x20] ss:$0 sps:$4 sm:$0xff]  }
 0x191   : > { %v1294_v20 = vpop.permute.xlu1 %1293  ;;  %2879 = vmatprep.subr.bf16.mxu0 %v2878_v24  ;;  %v1292_v6 = vpop.permute.xlu0 %1291 }
 0x192   : > { %v1298_v7 = vsel %vm1295_vm11, %v1290_v32, %v1292_v6  ;;  %v1299_v21 = vsel %vm1295_vm11, %v1292_v6, %v1294_v20  ;;  %v2334_v18 = vld [vmem:[#allocation4 + $0x140] sm:$0xff]  ;;  %v2349_v20 = vld [vmem:[#allocation4 + $0x1b8] sm:$0xff]  ;;  %v2348_v6 = vld [vmem:[#allocation4 + $0x1b0] sm:$0xff] }
 0x193   : > { %1306 = vst [vmem:[#allocation4 + $0x150] sm:$0xf] %v1298_v7  ;;  %1307 = vst [vmem:[#allocation4 + $0x158] sm:$0xf] %v1299_v21  ;;  %1747 = vrot.lane.b32.xlu1 %v3376_v57, %s3128_s11  ;;  %1745 = vrot.lane.b32.xlu0 %v3371_v54, %s3128_s11 }
 0x195   : > { %v1326_v8 = vpop.permute.xlu1 %1325  ;;  %v1324_v17 = vpop.permute.xlu0 %1323 }
 0x196   : > { %v1329_v9 = vsel %vm1295_vm11, %v3649_v35, %v1324_v17  ;;  %v1330_v10 = vsel %vm1295_vm11, %v1324_v17, %v1326_v8  ;;  %v2338_v11 = vld [vmem:[#allocation4 + $0x160] sm:$0xff]  ;;  %vm2249_vm11 = vcmask 138240  }
 0x197   : > { %1337 = vst [vmem:[#allocation4 + $0x150] sm:$0xf0] %v1329_v9  ;;  %1338 = vst [vmem:[#allocation4 + $0x158] sm:$0xf0] %v1330_v10  ;;  %1779 = vrot.lane.b32.xlu1 %v3392_v62, %s3128_s11  ;;  %1777 = vrot.lane.b32.xlu0 %v3397_v0, %s3128_s11  ;;  %v2880_v12 = vpack.c.bf16 %v2338_v11, %v2334_v18 }
 0x199   : > { %v1356_v13 = vpop.permute.xlu1 %1355  ;;  %2881 = vmatpush1.bf16.msra.mxu0 %v2880_v12  ;;  %v1354_v23 = vpop.permute.xlu0 %1353 }
 0x19a   : > { %v1360_v14 = vsel %vm1357_vm12, %v1352_v45, %v1354_v23  ;;  %v1361_v15 = vsel %vm1357_vm12, %v1354_v23, %v1356_v13  ;;  %v3055_v45 = vld [vmem:[#allocation3 + $0x20] ss:$0 sps:$4 sm:$0xff]  }
 0x19b   : > { %1368 = vst [vmem:[#allocation4 + $0x170] sm:$0xf] %v1360_v14  ;;  %1369 = vst [vmem:[#allocation4 + $0x178] sm:$0xf] %v1361_v15  ;;  %1809 = vrot.lane.b32.xlu1 %v3376_v57, %s3129_s1  ;;  %1807 = vrot.lane.b32.xlu0 %v3371_v54, %s3129_s1 }
 0x19d   : > { %v1388_v22 = vpop.permute.xlu1 %1387  ;;  %v1386_v25 = vpop.permute.xlu0 %1385 }
 0x19e   : > { %v1391_v26 = vsel %vm1357_vm12, %v1384_v49, %v1386_v25  ;;  %v1392_v27 = vsel %vm1357_vm12, %v1386_v25, %v1388_v22  ;;  %v2337_v33 = vld [vmem:[#allocation4 + $0x158] sm:$0xff]  ;;  %v2336_v36 = vld [vmem:[#allocation4 + $0x150] sm:$0xff]  ;;  %vm2586_vm12 = vcmask 1043456  }
 0x19f   : > { %1399 = vst [vmem:[#allocation4 + $0x170] sm:$0xf0] %v1391_v26  ;;  %1400 = vst [vmem:[#allocation4 + $0x178] sm:$0xf0] %v1392_v27  ;;  %1841 = vrot.lane.b32.xlu1 %v3392_v62, %s3129_s1  ;;  %1839 = vrot.lane.b32.xlu0 %v3397_v0, %s3129_s1 }
 0x1a1   : > { %v1414_v28 = vpop.permute.xlu1 %1413  ;;  %v1412_v29 = vpop.permute.xlu0 %1411 }
 0x1a2   : > { %v1421_v30 = vsel %vm1419_vm13, %v1412_v29, %v1414_v28 }
 0x1a3   : > { %1429 = vst [vmem:[#allocation4 + $0x188] sm:$0xf] %v1421_v30  ;;  %1775 = vrot.lane.b32.xlu1 %v3405_v1, %s3128_s11  ;;  %1743 = vrot.lane.b32.xlu0 %v3367_v51, %s3128_s11 }
 0x1a5   : > { %v1446_v31 = vpop.permute.xlu1 %1445  ;;  %v1444_v32 = vpop.permute.xlu0 %1443 }
 0x1a6   : > { %v1452_v34 = vsel %vm1419_vm13, %v1444_v32, %v1446_v31  ;;  %v2341_v35 = vld [vmem:[#allocation4 + $0x178] sm:$0xff]  ;;  %v2340_v37 = vld [vmem:[#allocation4 + $0x170] sm:$0xff] }
 0x1a7   : > { %1460 = vst [vmem:[#allocation4 + $0x188] sm:$0xf0] %v1452_v34  ;;  %1837 = vrot.lane.b32.xlu1 %v3405_v1, %s3129_s1  ;;  %1805 = vrot.lane.b32.xlu0 %v3367_v51, %s3129_s1  ;;  %v2930_v38 = vpack.c.bf16 %v2341_v35, %v2337_v33  ;;  %v2932_v39 = vpack.c.bf16 %v2340_v37, %v2336_v36 }
 0x1a9   : > { %v1442_v41 = vpop.permute.xlu1 %1441  ;;  %2931 = vmatprep.subr.bf16.mxu1 %v2930_v38  ;;  %v1410_v42 = vpop.permute.xlu0 %1409 }
 0x1aa   : > { %v1451_v43 = vsel %vm1419_vm13, %v1442_v41, %v1444_v32  ;;  %v1420_v44 = vsel %vm1419_vm13, %v1410_v42, %v1412_v29  ;;  %2933 = vmatpush1.bf16.msra.mxu1 %v2932_v39  ;;  %v1861_v39 = vld [vmem:[#allocation2 + $0x20] sm:$0xf] }
 0x1ab   : > { %1459 = vst [vmem:[#allocation4 + $0x180] sm:$0xf0] %v1451_v43  ;;  %1428 = vst [vmem:[#allocation4 + $0x180] sm:$0xf] %v1420_v44  ;;  %1751 = vrot.lane.b32.xlu1 %v1737_v40, %s3128_s11  ;;  %1749 = vrot.lane.b32.xlu0 %v3384_v58, %s3128_s11 }
 0x1ad   : > { %v1418_v47 = vpop.permute.xlu1 %1417  ;;  %v1416_v48 = vpop.permute.xlu0 %1415 }
 0x1ae   : > { %v1422_v49 = vsel %vm1419_vm13, %v1414_v28, %v1416_v48  ;;  %v1423_v50 = vsel %vm1419_vm13, %v1416_v48, %v1418_v47  ;;  %v2343_v52 = vld [vmem:[#allocation4 + $0x188] sm:$0xff]  ;;  %v3057_v47 = vld [vmem:[#allocation3 + $0x20] ss:$0 sps:$4 sm:$0xff]  }
 0x1af   : > { %1430 = vst [vmem:[#allocation4 + $0x190] sm:$0xf] %v1422_v49  ;;  %1431 = vst [vmem:[#allocation4 + $0x198] sm:$0xf] %v1423_v50  ;;  %1783 = vrot.lane.b32.xlu1 %v3055_v45, %s3128_s11  ;;  %1781 = vrot.lane.b32.xlu0 %v3388_v59, %s3128_s11  ;;  %v2882_v53 = vpack.c.bf16 %v2347_v46, %v2343_v52 }
 0x1b1   : > { %v1450_v60 = vpop.permute.xlu1 %1449  ;;  %2883 = vmatprep.subr.bf16.mxu0 %v2882_v53  ;;  %v1448_v61 = vpop.permute.xlu0 %1447  ;;  %v1923_v53 = vld [vmem:[#allocation2 + $0x20] sm:$0xf] }
 0x1b2   : > { %v1453_v63 = vsel %vm1419_vm13, %v1446_v31, %v1448_v61  ;;  %v1454_v2 = vsel %vm1419_vm13, %v1448_v61, %v1450_v60  ;;  %v2342_v16 = vld [vmem:[#allocation4 + $0x180] sm:$0xff]  ;;  %vm2597_vm13 = vcmask 3072  }
 0x1b3   : > { %1461 = vst [vmem:[#allocation4 + $0x190] sm:$0xf0] %v1453_v63  ;;  %1462 = vst [vmem:[#allocation4 + $0x198] sm:$0xf0] %v1454_v2  ;;  %1813 = vrot.lane.b32.xlu1 %v1799_v55, %s3129_s1  ;;  %1811 = vrot.lane.b32.xlu0 %v3384_v58, %s3129_s1  ;;  %v2884_v3 = vpack.c.bf16 %v2346_v56, %v2342_v16  ;;  %v3058_v63 = vld [vmem:[#allocation3 + $0x20] ss:$0 sps:$4 sm:$0xff]  }
 0x1b5   : > { %v1500_v4 = vpop.permute.xlu1 %1499  ;;  %2885 = vmatpush1.bf16.msra.mxu0 %v2884_v3  ;;  %v1498_v5 = vpop.permute.xlu0 %1497 }
 0x1b6   : > { %v1507_v24 = vsel %vm1505_vm14, %v1498_v5, %v1500_v4 }
 0x1b7   : > { %1515 = vst [vmem:[#allocation4 + $0x1c8] sm:$0xf] %v1507_v24  ;;  %1845 = vrot.lane.b32.xlu1 %v3056_v19, %s3129_s1  ;;  %1843 = vrot.lane.b32.xlu0 %v3388_v59, %s3129_s1 }
 0x1b9   : > { %v1532_v7 = vpop.permute.xlu1 %1531  ;;  %v1530_v21 = vpop.permute.xlu0 %1529 }
 0x1ba   : > { %v1538_v8 = vsel %vm1505_vm14, %v1530_v21, %v1532_v7  ;;  %v2345_v17 = vld [vmem:[#allocation4 + $0x198] sm:$0xff]  ;;  %v2344_v9 = vld [vmem:[#allocation4 + $0x190] sm:$0xff] }
 0x1bb   : > { %1546 = vst [vmem:[#allocation4 + $0x1c8] sm:$0xf0] %v1538_v8  ;;  %1871 = vrot.lane.b32.xlu1 %v3376_v57, %s3130_s3  ;;  %1869 = vrot.lane.b32.xlu0 %v3371_v54, %s3130_s3  ;;  %v2934_v10 = vpack.c.bf16 %v2349_v20, %v2345_v17  ;;  %v2936_v18 = vpack.c.bf16 %v2348_v6, %v2344_v9 }
 0x1bd   : > { %v1562_v11 = vpop.permute.xlu1 %1561  ;;  %2935 = vmatprep.subr.bf16.mxu1 %v2934_v10  ;;  %v1560_v12 = vpop.permute.xlu0 %1559 }
 0x1be   : > { %v1569_v13 = vsel %vm1567_vm15, %v1560_v12, %v1562_v11  ;;  %2937 = vmatpush1.bf16.msra.mxu1 %v2936_v18 }
 0x1bf   : > { %1577 = vst [vmem:[#allocation4 + $0x1e8] sm:$0xf] %v1569_v13  ;;  %1903 = vrot.lane.b32.xlu1 %v3392_v62, %s3130_s3  ;;  %1901 = vrot.lane.b32.xlu0 %v3397_v0, %s3130_s3 }
 0x1c1   : > { %v1594_v23 = vpop.permute.xlu1 %1593  ;;  %v1592_v14 = vpop.permute.xlu0 %1591 }
 0x1c2   : > { %v1600_v15 = vsel %vm1567_vm15, %v1592_v14, %v1594_v23  ;;  %v2351_v32 = vld [vmem:[#allocation4 + $0x1c8] sm:$0xff] }
 0x1c3   : > { %1608 = vst [vmem:[#allocation4 + $0x1e8] sm:$0xf0] %v1600_v15  ;;  %1933 = vrot.lane.b32.xlu1 %v3376_v57, %s3131_s9  ;;  %1931 = vrot.lane.b32.xlu0 %v3371_v54, %s3131_s9 }
 0x1c5   : > { %v1528_v22 = vpop.permute.xlu1 %1527  ;;  %v1496_v25 = vpop.permute.xlu0 %1495 }
 0x1c6   : > { %v1537_v26 = vsel %vm1505_vm14, %v1528_v22, %v1530_v21  ;;  %v1506_v27 = vsel %vm1505_vm14, %v1496_v25, %v1498_v5 }
 0x1c7   : > { %1545 = vst [vmem:[#allocation4 + $0x1c0] sm:$0xf0] %v1537_v26  ;;  %1514 = vst [vmem:[#allocation4 + $0x1c0] sm:$0xf] %v1506_v27  ;;  %1965 = vrot.lane.b32.xlu1 %v3392_v62, %s3131_s9  ;;  %1963 = vrot.lane.b32.xlu0 %v3397_v0, %s3131_s9 }
 0x1c9   : > { %v1590_v28 = vpop.permute.xlu1 %1589  ;;  %v1558_v29 = vpop.permute.xlu0 %1557 }
 0x1ca   : > { %v1599_v30 = vsel %vm1567_vm15, %v1590_v28, %v1592_v14  ;;  %v1568_v31 = vsel %vm1567_vm15, %v1558_v29, %v1560_v12  ;;  %v2355_v33 = vld [vmem:[#allocation4 + $0x1e8] sm:$0xff] }
 0x1cb   : > { %1607 = vst [vmem:[#allocation4 + $0x1e0] sm:$0xf0] %v1599_v30  ;;  %1576 = vst [vmem:[#allocation4 + $0x1e0] sm:$0xf] %v1568_v31  ;;  %1899 = vrot.lane.b32.xlu1 %v3405_v1, %s3130_s3  ;;  %1867 = vrot.lane.b32.xlu0 %v3367_v51, %s3130_s3  ;;  %v2886_v34 = vpack.c.bf16 %v2355_v33, %v2351_v32  ;;  %v1985_v31 = vld [vmem:[#allocation2 + $0x20] sm:$0xf] }
 0x1cd   : > { %v1504_v35 = vpop.permute.xlu1 %1503  ;;  %2887 = vmatprep.subr.bf16.mxu0 %v2886_v34  ;;  %v1502_v36 = vpop.permute.xlu0 %1501 }
 0x1ce   : > { %v1508_v37 = vsel %vm1505_vm14, %v1500_v4, %v1502_v36  ;;  %v1509_v38 = vsel %vm1505_vm14, %v1502_v36, %v1504_v35  ;;  %v2350_v44 = vld [vmem:[#allocation4 + $0x1c0] sm:$0xff] }
 0x1cf   : > { %1516 = vst [vmem:[#allocation4 + $0x1d0] sm:$0xf] %v1508_v37  ;;  %1517 = vst [vmem:[#allocation4 + $0x1d8] sm:$0xf] %v1509_v38  ;;  %1961 = vrot.lane.b32.xlu1 %v3405_v1, %s3131_s9  ;;  %1929 = vrot.lane.b32.xlu0 %v3367_v51, %s3131_s9  ;;  %v3059_v38 = vld [vmem:[#allocation3 + $0x20] ss:$0 sps:$4 sm:$0xff]  }
 0x1d1   : > { %v1536_v40 = vpop.permute.xlu1 %1535  ;;  %v1534_v41 = vpop.permute.xlu0 %1533 }
 0x1d2   : > { %v1539_v42 = vsel %vm1505_vm14, %v1532_v7, %v1534_v41  ;;  %v1540_v43 = vsel %vm1505_vm14, %v1534_v41, %v1536_v40  ;;  %v2354_v45 = vld [vmem:[#allocation4 + $0x1e0] sm:$0xff] }
 0x1d3   : > { %1547 = vst [vmem:[#allocation4 + $0x1d0] sm:$0xf0] %v1539_v42  ;;  %1548 = vst [vmem:[#allocation4 + $0x1d8] sm:$0xf0] %v1540_v43  ;;  %1875 = vrot.lane.b32.xlu1 %v1861_v39, %s3130_s3  ;;  %1873 = vrot.lane.b32.xlu0 %v3384_v58, %s3130_s3  ;;  %v2888_v46 = vpack.c.bf16 %v2354_v45, %v2350_v44  ;;  %v2047_v42 = vld [vmem:[#allocation2 + $0x20] sm:$0xf] }
 0x1d5   : > { %v1566_v48 = vpop.permute.xlu1 %1565  ;;  %2889 = vmatpush1.bf16.msra.mxu0 %v2888_v46  ;;  %v1564_v49 = vpop.permute.xlu0 %1563 }
 0x1d6   : > { %v1570_v50 = vsel %vm1567_vm15, %v1562_v11, %v1564_v49  ;;  %v1571_v52 = vsel %vm1567_vm15, %v1564_v49, %v1566_v48  ;;  %v3829_v48 = vld [vmem:[#allocation2 + $0x10] sm:$0xff] }
 0x1d7   : > { %1578 = vst [vmem:[#allocation4 + $0x1f0] sm:$0xf] %v1570_v50  ;;  %1579 = vst [vmem:[#allocation4 + $0x1f8] sm:$0xf] %v1571_v52  ;;  %1907 = vrot.lane.b32.xlu1 %v3057_v47, %s3130_s3  ;;  %1905 = vrot.lane.b32.xlu0 %v3388_v59, %s3130_s3  ;;  %v3060_v47 = vld [vmem:[#allocation3 + $0x20] ss:$0 sps:$4 sm:$0xff]  }
 0x1d9   : > { %v1598_v55 = vpop.permute.xlu1 %1597  ;;  %v1596_v56 = vpop.permute.xlu0 %1595 }
 0x1da   : > { %v1601_v60 = vsel %vm1567_vm15, %v1594_v23, %v1596_v56  ;;  %v1602_v61 = vsel %vm1567_vm15, %v1596_v56, %v1598_v55  ;;  %v2353_v5 = vld [vmem:[#allocation4 + $0x1d8] sm:$0xff]  ;;  %v2352_v6 = vld [vmem:[#allocation4 + $0x1d0] sm:$0xff]  ;;  %v3844_v55 = vld [vmem:[#allocation3 + $0x18] sm:$0xff] }
 0x1db   : > { %1609 = vst [vmem:[#allocation4 + $0x1f0] sm:$0xf0] %v1601_v60  ;;  %1610 = vst [vmem:[#allocation4 + $0x1f8] sm:$0xf0] %v1602_v61  ;;  %1937 = vrot.lane.b32.xlu1 %v1923_v53, %s3131_s9  ;;  %1935 = vrot.lane.b32.xlu0 %v3384_v58, %s3131_s9  ;;  %v3840_v53 = vcombine.high %v3829_v48, %v3829_v48 }
 0x1dd   : > { %v1624_v2 = vpop.permute.xlu1 %1623  ;;  %v1622_v16 = vpop.permute.xlu0 %1621 }
 0x1de   : > { %v1631_v3 = vsel %vm1629_vm0, %v1622_v16, %v1624_v2 }
 0x1df   : > { %1639 = vst [vmem:[#allocation4 + $0x208] sm:$0xf] %v1631_v3  ;;  %1969 = vrot.lane.b32.xlu1 %v3058_v63, %s3131_s9  ;;  %1967 = vrot.lane.b32.xlu0 %v3388_v59, %s3131_s9 }
 0x1e1   : > { %v1656_v19 = vpop.permute.xlu1 %1655  ;;  %v1654_v4 = vpop.permute.xlu0 %1653 }
 0x1e2   : > { %v1662_v24 = vsel %vm1629_vm0, %v1654_v4, %v1656_v19  ;;  %v2357_v20 = vld [vmem:[#allocation4 + $0x1f8] sm:$0xff]  ;;  %v2356_v7 = vld [vmem:[#allocation4 + $0x1f0] sm:$0xff] }
 0x1e3   : > { %1670 = vst [vmem:[#allocation4 + $0x208] sm:$0xf0] %v1662_v24  ;;  %1995 = vrot.lane.b32.xlu1 %v3376_v57, %s3132_s13  ;;  %1993 = vrot.lane.b32.xlu0 %v3371_v54, %s3132_s13  ;;  %v2938_v21 = vpack.c.bf16 %v2357_v20, %v2353_v5  ;;  %v2940_v8 = vpack.c.bf16 %v2356_v7, %v2352_v6  ;;  %v3858_v5 = vld [vmem:[#allocation3 + $0x10] sm:$0xff] }
 0x1e5   : > { %v1686_v17 = vpop.permute.xlu1 %1685  ;;  %2939 = vmatprep.subr.bf16.mxu1 %v2938_v21  ;;  %v1684_v9 = vpop.permute.xlu0 %1683 }
 0x1e6   : > { %v1693_v10 = vsel %vm1691_vm1, %v1684_v9, %v1686_v17  ;;  %2941 = vmatpush1.bf16.msra.mxu1 %v2940_v8 }
 0x1e7   : > { %1701 = vst [vmem:[#allocation4 + $0x228] sm:$0xf] %v1693_v10  ;;  %2027 = vrot.lane.b32.xlu1 %v3392_v62, %s3132_s13  ;;  %2025 = vrot.lane.b32.xlu0 %v3397_v0, %s3132_s13 }
 0x1e9   : > { %v1718_v18 = vpop.permute.xlu1 %1717  ;;  %v1716_v11 = vpop.permute.xlu0 %1715 }
 0x1ea   : > { %v1724_v12 = vsel %vm1691_vm1, %v1716_v11, %v1718_v18  ;;  %v2359_v26 = vld [vmem:[#allocation4 + $0x208] sm:$0xff] }
 0x1eb   : > { %1732 = vst [vmem:[#allocation4 + $0x228] sm:$0xf0] %v1724_v12  ;;  %2057 = vrot.lane.b32.xlu1 %v3376_v57, %s3133_s15  ;;  %2055 = vrot.lane.b32.xlu0 %v3371_v54, %s3133_s15 }
 0x1ed   : > { %v1652_v13 = vpop.permute.xlu1 %1651  ;;  %v1620_v23 = vpop.permute.xlu0 %1619 }
 0x1ee   : > { %v1661_v14 = vsel %vm1629_vm0, %v1652_v13, %v1654_v4  ;;  %v1630_v15 = vsel %vm1629_vm0, %v1620_v23, %v1622_v16  ;;  %v3856_v4 = vcombine.low %v3844_v55, %v3844_v55 }
 0x1ef   : > { %1669 = vst [vmem:[#allocation4 + $0x200] sm:$0xf0] %v1661_v14  ;;  %1638 = vst [vmem:[#allocation4 + $0x200] sm:$0xf] %v1630_v15  ;;  %2089 = vrot.lane.b32.xlu1 %v3392_v62, %s3133_s15  ;;  %2087 = vrot.lane.b32.xlu0 %v3397_v0, %s3133_s15 }
 0x1f1   : > { %v1714_v22 = vpop.permute.xlu1 %1713  ;;  %v1682_v25 = vpop.permute.xlu0 %1681 }
 0x1f2   : > { %v1723_v57 = vsel %vm1691_vm1, %v1714_v22, %v1716_v11  ;;  %v1692_v54 = vsel %vm1691_vm1, %v1682_v25, %v1684_v9  ;;  %v2363_v27 = vld [vmem:[#allocation4 + $0x228] sm:$0xff]  ;;  %v3877_v11 = vcombine.low %v3858_v5, %v3858_v5 }
 0x1f3   : > { %1731 = vst [vmem:[#allocation4 + $0x220] sm:$0xf0] %v1723_v57  ;;  %1700 = vst [vmem:[#allocation4 + $0x220] sm:$0xf] %v1692_v54  ;;  %2023 = vrot.lane.b32.xlu1 %v3405_v1, %s3132_s13  ;;  %1991 = vrot.lane.b32.xlu0 %v3367_v51, %s3132_s13  ;;  %v2890_v62 = vpack.c.bf16 %v2363_v27, %v2359_v26 }
 0x1f5   : > { %v1628_v28 = vpop.permute.xlu1 %1627  ;;  %2891 = vmatprep.subr.bf16.mxu0 %v2890_v62  ;;  %v1626_v0 = vpop.permute.xlu0 %1625 }
 0x1f6   : > { %v1632_v29 = vsel %vm1629_vm0, %v1624_v2, %v1626_v0  ;;  %v1633_v30 = vsel %vm1629_vm0, %v1626_v0, %v1628_v28  ;;  %v2358_v36 = vld [vmem:[#allocation4 + $0x200] sm:$0xff] }
 0x1f7   : > { %1640 = vst [vmem:[#allocation4 + $0x210] sm:$0xf] %v1632_v29  ;;  %1641 = vst [vmem:[#allocation4 + $0x218] sm:$0xf] %v1633_v30  ;;  %2085 = vrot.lane.b32.xlu1 %v3405_v1, %s3133_s15  ;;  %2053 = vrot.lane.b32.xlu0 %v3367_v51, %s3133_s15  ;;  %v2109_v28 = vld [vmem:[#allocation2 + $0x20] sm:$0xf] }
 0x1f9   : > { %v1660_v32 = vpop.permute.xlu1 %1659  ;;  %v1658_v33 = vpop.permute.xlu0 %1657 }
 0x1fa   : > { %v1663_v34 = vsel %vm1629_vm0, %v1656_v19, %v1658_v33  ;;  %v1664_v35 = vsel %vm1629_vm0, %v1658_v33, %v1660_v32  ;;  %v2362_v37 = vld [vmem:[#allocation4 + $0x220] sm:$0xff] }
 0x1fb   : > { %1671 = vst [vmem:[#allocation4 + $0x210] sm:$0xf0] %v1663_v34  ;;  %1672 = vst [vmem:[#allocation4 + $0x218] sm:$0xf0] %v1664_v35  ;;  %1999 = vrot.lane.b32.xlu1 %v1985_v31, %s3132_s13  ;;  %1997 = vrot.lane.b32.xlu0 %v3384_v58, %s3132_s13  ;;  %v2892_v1 = vpack.c.bf16 %v2362_v37, %v2358_v36  ;;  %v3065_v35 = vld [vmem:[#allocation3 + $0x20] ss:$0 sps:$4 sm:$0xff]  }
 0x1fd   : > { %v1690_v39 = vpop.permute.xlu1 %1689  ;;  %2893 = vmatpush1.bf16.msra.mxu0 %v2892_v1  ;;  %v1688_v51 = vpop.permute.xlu0 %1687 }
 0x1fe   : > { %v1694_v40 = vsel %vm1691_vm1, %v1686_v17, %v1688_v51  ;;  %v1695_v41 = vsel %vm1691_vm1, %v1688_v51, %v1690_v39  ;;  %v2171_v39 = vld [vmem:[#allocation2 + $0x20] sm:$0xf] }
 0x1ff   : > { %1702 = vst [vmem:[#allocation4 + $0x230] sm:$0xf] %v1694_v40  ;;  %1703 = vst [vmem:[#allocation4 + $0x238] sm:$0xf] %v1695_v41  ;;  %2031 = vrot.lane.b32.xlu1 %v3059_v38, %s3132_s13  ;;  %2029 = vrot.lane.b32.xlu0 %v3388_v59, %s3132_s13 }
 0x201   : > { %v1722_v43 = vpop.permute.xlu1 %1721  ;;  %v1720_v44 = vpop.permute.xlu0 %1719 }
 0x202   : > { %v1725_v45 = vsel %vm1691_vm1, %v1718_v18, %v1720_v44  ;;  %v1726_v46 = vsel %vm1691_vm1, %v1720_v44, %v1722_v43  ;;  %v2361_v61 = vld [vmem:[#allocation4 + $0x218] sm:$0xff]  ;;  %v2360_v16 = vld [vmem:[#allocation4 + $0x210] sm:$0xff] }
 0x203   : > { %1733 = vst [vmem:[#allocation4 + $0x230] sm:$0xf0] %v1725_v45  ;;  %1734 = vst [vmem:[#allocation4 + $0x238] sm:$0xf0] %v1726_v46  ;;  %2061 = vrot.lane.b32.xlu1 %v2047_v42, %s3133_s15  ;;  %2059 = vrot.lane.b32.xlu0 %v3384_v58, %s3133_s15  ;;  %v3842_v58 = vld [vmem:[#allocation2 + $0x18] sm:$0xff] }
 0x204   : > { %v3894_v62 = vcombine.high %v3842_v58, %v3842_v58  ;;  %v3066_v43 = vld [vmem:[#allocation3 + $0x20] ss:$0 sps:$4 sm:$0xff]  }
 0x205   : > { %v3831_v49 = vpop.permute.xlu1 %1747  ;;  %v1746_v50 = vpop.permute.xlu0 %1745 }
 0x206   : > { %v1755_v52 = vsel %vm1753_vm2, %v1746_v50, %v3831_v49 }
 0x207   : > { %1763 = vst [vmem:[#allocation4 + $0x248] sm:$0xf] %v1755_v52  ;;  %2093 = vrot.lane.b32.xlu1 %v3060_v47, %s3133_s15  ;;  %2091 = vrot.lane.b32.xlu0 %v3388_v59, %s3133_s15 }
 0x209   : > { %v3846_v56 = vpop.permute.xlu1 %1779  ;;  %v1778_v60 = vpop.permute.xlu0 %1777 }
 0x20a   : > { %v1786_v63 = vsel %vm1753_vm2, %v1778_v60, %v3846_v56  ;;  %v2365_v2 = vld [vmem:[#allocation4 + $0x238] sm:$0xff]  ;;  %v2364_v3 = vld [vmem:[#allocation4 + $0x230] sm:$0xff] }
 0x20b   : > { %1794 = vst [vmem:[#allocation4 + $0x248] sm:$0xf0] %v1786_v63  ;;  %2119 = vrot.lane.b32.xlu1 %v3842_v58, %s3134_s16  ;;  %2117 = vrot.lane.b32.xlu0 %v3840_v53, %s3134_s16  ;;  %v2942_v59 = vpack.c.bf16 %v2365_v2, %v2361_v61  ;;  %v2944_v19 = vpack.c.bf16 %v2364_v3, %v2360_v16 }
 0x20d   : > { %v1810_v24 = vpop.permute.xlu1 %1809  ;;  %2943 = vmatprep.subr.bf16.mxu1 %v2942_v59  ;;  %v1808_v20 = vpop.permute.xlu0 %1807 }
 0x20e   : > { %v1817_v6 = vsel %vm1815_vm3, %v1808_v20, %v1810_v24  ;;  %2945 = vmatpush1.bf16.msra.mxu1 %v2944_v19 }
 0x20f   : > { %1825 = vst [vmem:[#allocation4 + $0x268] sm:$0xf] %v1817_v6  ;;  %2151 = vrot.lane.b32.xlu1 %v3856_v4, %s3134_s16  ;;  %2149 = vrot.lane.b32.xlu0 %v3858_v5, %s3134_s16 }
 0x211   : > { %v3865_v7 = vpop.permute.xlu1 %1841  ;;  %v1840_v21 = vpop.permute.xlu0 %1839 }
 0x212   : > { %v1848_v8 = vsel %vm1815_vm3, %v1840_v21, %v3865_v7  ;;  %v2367_v15 = vld [vmem:[#allocation4 + $0x248] sm:$0xff] }
 0x213   : > { %1856 = vst [vmem:[#allocation4 + $0x268] sm:$0xf0] %v1848_v8  ;;  %2181 = vrot.lane.b32.xlu1 %v3842_v58, %s3135_s18  ;;  %2179 = vrot.lane.b32.xlu0 %v3840_v53, %s3135_s18  ;;  %v3067_v8 = vld [vmem:[#allocation3 + $0x20] ss:$0 sps:$4 sm:$0xff]  }
 0x215   : > { %v1776_v17 = vpop.permute.xlu1 %1775  ;;  %v1744_v9 = vpop.permute.xlu0 %1743 }
 0x216   : > { %v1785_v10 = vsel %vm1753_vm2, %v1776_v17, %v1778_v60  ;;  %v1754_v18 = vsel %vm1753_vm2, %v1744_v9, %v1746_v50 }
 0x217   : > { %1793 = vst [vmem:[#allocation4 + $0x240] sm:$0xf0] %v1785_v10  ;;  %1762 = vst [vmem:[#allocation4 + $0x240] sm:$0xf] %v1754_v18  ;;  %2213 = vrot.lane.b32.xlu1 %v3856_v4, %s3135_s18  ;;  %2211 = vrot.lane.b32.xlu0 %v3858_v5, %s3135_s18 }
 0x219   : > { %v1838_v12 = vpop.permute.xlu1 %1837  ;;  %v1806_v13 = vpop.permute.xlu0 %1805 }
 0x21a   : > { %v1847_v23 = vsel %vm1815_vm3, %v1838_v12, %v1840_v21  ;;  %v1816_v14 = vsel %vm1815_vm3, %v1806_v13, %v1808_v20  ;;  %v2371_v22 = vld [vmem:[#allocation4 + $0x268] sm:$0xff] }
 0x21b   : > { %1855 = vst [vmem:[#allocation4 + $0x260] sm:$0xf0] %v1847_v23  ;;  %1824 = vst [vmem:[#allocation4 + $0x260] sm:$0xf] %v1816_v14  ;;  %2147 = vrot.lane.b32.xlu1 %v3877_v11, %s3134_s16  ;;  %2115 = vrot.lane.b32.xlu0 %v3829_v48, %s3134_s16  ;;  %v2894_v25 = vpack.c.bf16 %v2371_v22, %v2367_v15 }
 0x21d   : > { %v1752_v57 = vpop.permute.xlu1 %1751  ;;  %2895 = vmatprep.subr.bf16.mxu0 %v2894_v25  ;;  %v1750_v54 = vpop.permute.xlu0 %1749 }
 0x21e   : > { %v1756_v26 = vsel %vm1753_vm2, %v3831_v49, %v1750_v54  ;;  %v1757_v27 = vsel %vm1753_vm2, %v1750_v54, %v1752_v57  ;;  %v2366_v32 = vld [vmem:[#allocation4 + $0x240] sm:$0xff] }
 0x21f   : > { %1764 = vst [vmem:[#allocation4 + $0x250] sm:$0xf] %v1756_v26  ;;  %1765 = vst [vmem:[#allocation4 + $0x258] sm:$0xf] %v1757_v27  ;;  %2209 = vrot.lane.b32.xlu1 %v3877_v11, %s3135_s18  ;;  %2177 = vrot.lane.b32.xlu0 %v3829_v48, %s3135_s18 }
 0x221   : > { %v1784_v0 = vpop.permute.xlu1 %1783  ;;  %v1782_v29 = vpop.permute.xlu0 %1781 }
 0x222   : > { %v1787_v30 = vsel %vm1753_vm2, %v3846_v56, %v1782_v29  ;;  %v1788_v31 = vsel %vm1753_vm2, %v1782_v29, %v1784_v0  ;;  %v2370_v33 = vld [vmem:[#allocation4 + $0x260] sm:$0xff] }
 0x223   : > { %1795 = vst [vmem:[#allocation4 + $0x250] sm:$0xf0] %v1787_v30  ;;  %1796 = vst [vmem:[#allocation4 + $0x258] sm:$0xf0] %v1788_v31  ;;  %2123 = vrot.lane.b32.xlu1 %v2109_v28, %s3134_s16  ;;  %2121 = vrot.lane.b32.xlu0 %v3894_v62, %s3134_s16  ;;  %v2896_v34 = vpack.c.bf16 %v2370_v33, %v2366_v32 }
 0x225   : > { %v1814_v36 = vpop.permute.xlu1 %1813  ;;  %2897 = vmatpush1.bf16.msra.mxu0 %v2896_v34  ;;  %v1812_v37 = vpop.permute.xlu0 %1811 }
 0x226   : > { %v1818_v1 = vsel %vm1815_vm3, %v1810_v24, %v1812_v37  ;;  %v1819_v38 = vsel %vm1815_vm3, %v1812_v37, %v1814_v36 }
 0x227   : > { %1826 = vst [vmem:[#allocation4 + $0x270] sm:$0xf] %v1818_v1  ;;  %1827 = vst [vmem:[#allocation4 + $0x278] sm:$0xf] %v1819_v38  ;;  %2155 = vrot.lane.b32.xlu1 %v3065_v35, %s3134_s16  ;;  %2153 = vrot.lane.b32.xlu0 %v3844_v55, %s3134_s16 }
 0x229   : > { %v1846_v51 = vpop.permute.xlu1 %1845  ;;  %v1844_v40 = vpop.permute.xlu0 %1843 }
 0x22a   : > { %v1849_v41 = vsel %vm1815_vm3, %v3865_v7, %v1844_v40  ;;  %v1850_v42 = vsel %vm1815_vm3, %v1844_v40, %v1846_v51  ;;  %v2369_v50 = vld [vmem:[#allocation4 + $0x258] sm:$0xff]  ;;  %v2368_v60 = vld [vmem:[#allocation4 + $0x250] sm:$0xff] }
 0x22b   : > { %1857 = vst [vmem:[#allocation4 + $0x270] sm:$0xf0] %v1849_v41  ;;  %1858 = vst [vmem:[#allocation4 + $0x278] sm:$0xf0] %v1850_v42  ;;  %2185 = vrot.lane.b32.xlu1 %v2171_v39, %s3135_s18  ;;  %2183 = vrot.lane.b32.xlu0 %v3894_v62, %s3135_s18 }
 0x22d   : > { %v3917_v44 = vpop.permute.xlu1 %1871  ;;  %v1870_v45 = vpop.permute.xlu0 %1869 }
 0x22e   : > { %v1879_v46 = vsel %vm1877_vm4, %v1870_v45, %v3917_v44 }
 0x22f   : > { %1887 = vst [vmem:[#allocation4 + $0x288] sm:$0xf] %v1879_v46  ;;  %2217 = vrot.lane.b32.xlu1 %v3066_v43, %s3135_s18  ;;  %2215 = vrot.lane.b32.xlu0 %v3844_v55, %s3135_s18 }
 0x231   : > { %v3924_v47 = vpop.permute.xlu1 %1903  ;;  %v1902_v49 = vpop.permute.xlu0 %1901 }
 0x232   : > { %v1910_v52 = vsel %vm1877_vm4, %v1902_v49, %v3924_v47  ;;  %v2373_v56 = vld [vmem:[#allocation4 + $0x278] sm:$0xff]  ;;  %v2372_v61 = vld [vmem:[#allocation4 + $0x270] sm:$0xff] }
 0x233   : > { %1918 = vst [vmem:[#allocation4 + $0x288] sm:$0xf0] %v1910_v52  ;;  %2243 = vrot.lane.b32.xlu1 %v3842_v58, %s3136_s21  ;;  %2241 = vrot.lane.b32.xlu0 %v3840_v53, %s3136_s21  ;;  %v2946_v63 = vpack.c.bf16 %v2373_v56, %v2369_v50  ;;  %v2948_v2 = vpack.c.bf16 %v2372_v61, %v2368_v60  ;;  %v3940_v53 = vld [vmem:[%s4049_s4] sm:$0xff] }
 0x234   : > { %v2403_v58 = vcombine.high %v3940_v53, %v3940_v53 }
 0x235   : > { %v1934_v16 = vpop.permute.xlu1 %1933  ;;  %2947 = vmatprep.subr.bf16.mxu1 %v2946_v63  ;;  %v1932_v3 = vpop.permute.xlu0 %1931 }
 0x236   : > { %v1941_v59 = vsel %vm1939_vm5, %v1932_v3, %v1934_v16  ;;  %2949 = vmatpush1.bf16.msra.mxu1 %v2948_v2  ;;  %2852 = vmatprep.mubr.msk.f32.mxu0 %vm2404_vm6, %v2403_v58 }
 0x237   : > { %1949 = vst [vmem:[#allocation4 + $0x2a8] sm:$0xf] %v1941_v59  ;;  %2275 = vrot.lane.b32.xlu1 %v3856_v4, %s3136_s21  ;;  %2273 = vrot.lane.b32.xlu0 %v3858_v5, %s3136_s21  ;;  %v2233_v4 = vld [vmem:[#allocation2 + $0x20] sm:$0xf] }
 0x238   : > { %2853 = vmatprep.mubr.msk.f32.mxu1 %vm2404_vm6, %v2403_v58 }
 0x239   : > { %v1966_v19 = vpop.permute.xlu1 %1965  ;;  %v1964_v24 = vpop.permute.xlu0 %1963 }
 0x23a   : > { %v1972_v20 = vsel %vm1939_vm5, %v1964_v24, %v1966_v19  ;;  %v2375_v18 = vld [vmem:[#allocation4 + $0x288] sm:$0xff] }
 0x23b   : > { %1980 = vst [vmem:[#allocation4 + $0x2a8] sm:$0xf0] %v1972_v20  ;;  %2271 = vrot.lane.b32.xlu1 %v3877_v11, %s3136_s21  ;;  %2239 = vrot.lane.b32.xlu0 %v3829_v48, %s3136_s21 }
 0x23d   : > { %v1900_v5 = vpop.permute.xlu1 %1899  ;;  %v1868_v6 = vpop.permute.xlu0 %1867 }
 0x23e   : > { %v1909_v7 = vsel %vm1877_vm4, %v1900_v5, %v1902_v49  ;;  %v1878_v21 = vsel %vm1877_vm4, %v1868_v6, %v1870_v45 }
 0x23f   : > { %1917 = vst [vmem:[#allocation4 + $0x280] sm:$0xf0] %v1909_v7  ;;  %1886 = vst [vmem:[#allocation4 + $0x280] sm:$0xf] %v1878_v21  ;;  %2247 = vrot.lane.b32.xlu1 %v2233_v4, %s3136_s21  ;;  %2245 = vrot.lane.b32.xlu0 %v3894_v62, %s3136_s21 }
 0x241   : > { %v1962_v17 = vpop.permute.xlu1 %1961  ;;  %v1930_v9 = vpop.permute.xlu0 %1929 }
 0x242   : > { %v1971_v10 = vsel %vm1939_vm5, %v1962_v17, %v1964_v24  ;;  %v1940_v48 = vsel %vm1939_vm5, %v1930_v9, %v1932_v3  ;;  %v2379_v11 = vld [vmem:[#allocation4 + $0x2a8] sm:$0xff] }
 0x243   : > { %1979 = vst [vmem:[#allocation4 + $0x2a0] sm:$0xf0] %v1971_v10  ;;  %1948 = vst [vmem:[#allocation4 + $0x2a0] sm:$0xf] %v1940_v48  ;;  %2279 = vrot.lane.b32.xlu1 %v3067_v8, %s3136_s21  ;;  %2277 = vrot.lane.b32.xlu0 %v3844_v55, %s3136_s21  ;;  %v2898_v12 = vpack.c.bf16 %v2379_v11, %v2375_v18 }
 0x245   : > { %v1876_v13 = vpop.permute.xlu1 %1875  ;;  %2899 = vmatprep.subr.bf16.mxu0 %v2898_v12  ;;  %v1874_v23 = vpop.permute.xlu0 %1873 }
 0x246   : > { %v1880_v14 = vsel %vm1877_vm4, %v3917_v44, %v1874_v23  ;;  %v1881_v15 = vsel %vm1877_vm4, %v1874_v23, %v1876_v13  ;;  %v2374_v26 = vld [vmem:[#allocation4 + $0x280] sm:$0xff] }
 0x247   : > { %1888 = vst [vmem:[#allocation4 + $0x290] sm:$0xf] %v1880_v14  ;;  %1889 = vst [vmem:[#allocation4 + $0x298] sm:$0xf] %v1881_v15 }
 0x249   : > { %v1908_v22 = vpop.permute.xlu1 %1907  ;;  %v1906_v25 = vpop.permute.xlu0 %1905 }
 0x24a   : > { %v1911_v57 = vsel %vm1877_vm4, %v3924_v47, %v1906_v25  ;;  %v1912_v54 = vsel %vm1877_vm4, %v1906_v25, %v1908_v22  ;;  %v2378_v55 = vld [vmem:[#allocation4 + $0x2a0] sm:$0xff] }
 0x24b   : > { %1919 = vst [vmem:[#allocation4 + $0x290] sm:$0xf0] %v1911_v57  ;;  %1920 = vst [vmem:[#allocation4 + $0x298] sm:$0xf0] %v1912_v54  ;;  %v2900_v27 = vpack.c.bf16 %v2378_v55, %v2374_v26 }
 0x24d   : > { %v1938_v62 = vpop.permute.xlu1 %1937  ;;  %2901 = vmatpush1.bf16.msra.mxu0 %v2900_v27  ;;  %v1936_v28 = vpop.permute.xlu0 %1935 }
 0x24e   : > { %v1942_v0 = vsel %vm1939_vm5, %v1934_v16, %v1936_v28  ;;  %v1943_v29 = vsel %vm1939_vm5, %v1936_v28, %v1938_v62 }
 0x24f   : > { %1950 = vst [vmem:[#allocation4 + $0x2b0] sm:$0xf] %v1942_v0  ;;  %1951 = vst [vmem:[#allocation4 + $0x2b8] sm:$0xf] %v1943_v29 }
 0x251   : > { %v1970_v30 = vpop.permute.xlu1 %1969  ;;  %v1968_v31 = vpop.permute.xlu0 %1967 }
 0x252   : > { %v1973_v32 = vsel %vm1939_vm5, %v1966_v19, %v1968_v31  ;;  %v1974_v33 = vsel %vm1939_vm5, %v1968_v31, %v1970_v30  ;;  %v2377_v38 = vld [vmem:[#allocation4 + $0x298] sm:$0xff]  ;;  %v2376_v40 = vld [vmem:[#allocation4 + $0x290] sm:$0xff] }
 0x253   : > { %1981 = vst [vmem:[#allocation4 + $0x2b0] sm:$0xf0] %v1973_v32  ;;  %1982 = vst [vmem:[#allocation4 + $0x2b8] sm:$0xf0] %v1974_v33 }
 0x255   : > { %v1996_v34 = vpop.permute.xlu1 %1995  ;;  %v1994_v35 = vpop.permute.xlu0 %1993 }
 0x256   : > { %v2003_v36 = vsel %vm2001_vm7, %v1994_v35, %v1996_v34 }
 0x257   : > { %2011 = vst [vmem:[#allocation4 + $0x2c8] sm:$0xf] %v2003_v36 }
 0x259   : > { %v2028_v37 = vpop.permute.xlu1 %2027  ;;  %v2026_v1 = vpop.permute.xlu0 %2025 }
 0x25a   : > { %v2034_v39 = vsel %vm2001_vm7, %v2026_v1, %v2028_v37  ;;  %v2381_v51 = vld [vmem:[#allocation4 + $0x2b8] sm:$0xff]  ;;  %v2380_v41 = vld [vmem:[#allocation4 + $0x2b0] sm:$0xff] }
 0x25b   : > { %2042 = vst [vmem:[#allocation4 + $0x2c8] sm:$0xf0] %v2034_v39  ;;  %v2950_v42 = vpack.c.bf16 %v2381_v51, %v2377_v38  ;;  %v2952_v43 = vpack.c.bf16 %v2380_v41, %v2376_v40 }
 0x25d   : > { %v2058_v44 = vpop.permute.xlu1 %2057  ;;  %2951 = vmatprep.subr.bf16.mxu1 %v2950_v42  ;;  %v2056_v45 = vpop.permute.xlu0 %2055 }
 0x25e   : > { %v2065_v46 = vsel %vm2063_vm8, %v2056_v45, %v2058_v44  ;;  %2953 = vmatpush1.bf16.msra.mxu1 %v2952_v43 }
 0x25f   : > { %2073 = vst [vmem:[#allocation4 + $0x2e8] sm:$0xf] %v2065_v46 }
 0x261   : > { %v2090_v47 = vpop.permute.xlu1 %2089  ;;  %v2088_v49 = vpop.permute.xlu0 %2087 }
 0x262   : > { %v2096_v50 = vsel %vm2063_vm8, %v2088_v49, %v2090_v47  ;;  %v2383_v59 = vld [vmem:[#allocation4 + $0x2c8] sm:$0xff] }
 0x263   : > { %2104 = vst [vmem:[#allocation4 + $0x2e8] sm:$0xf0] %v2096_v50 }
 0x265   : > { %v2024_v52 = vpop.permute.xlu1 %2023  ;;  %v1992_v56 = vpop.permute.xlu0 %1991 }
 0x266   : > { %v2033_v60 = vsel %vm2001_vm7, %v2024_v52, %v2026_v1  ;;  %v2002_v61 = vsel %vm2001_vm7, %v1992_v56, %v1994_v35 }
 0x267   : > { %2041 = vst [vmem:[#allocation4 + $0x2c0] sm:$0xf0] %v2033_v60  ;;  %2010 = vst [vmem:[#allocation4 + $0x2c0] sm:$0xf] %v2002_v61 }
 0x269   : > { %v2086_v63 = vpop.permute.xlu1 %2085  ;;  %v2054_v2 = vpop.permute.xlu0 %2053 }
 0x26a   : > { %v2095_v16 = vsel %vm2063_vm8, %v2086_v63, %v2088_v49  ;;  %v2064_v3 = vsel %vm2063_vm8, %v2054_v2, %v2056_v45  ;;  %v2387_v58 = vld [vmem:[#allocation4 + $0x2e8] sm:$0xff] }
 0x26b   : > { %2103 = vst [vmem:[#allocation4 + $0x2e0] sm:$0xf0] %v2095_v16  ;;  %2072 = vst [vmem:[#allocation4 + $0x2e0] sm:$0xf] %v2064_v3  ;;  %v2902_v19 = vpack.c.bf16 %v2387_v58, %v2383_v59 }
 0x26d   : > { %v2000_v24 = vpop.permute.xlu1 %1999  ;;  %2903 = vmatprep.subr.bf16.mxu0 %v2902_v19  ;;  %v1998_v20 = vpop.permute.xlu0 %1997 }
 0x26e   : > { %v2004_v4 = vsel %vm2001_vm7, %v1996_v34, %v1998_v20  ;;  %v2005_v5 = vsel %vm2001_vm7, %v1998_v20, %v2000_v24  ;;  %v2382_v17 = vld [vmem:[#allocation4 + $0x2c0] sm:$0xff] }
 0x26f   : > { %2012 = vst [vmem:[#allocation4 + $0x2d0] sm:$0xf] %v2004_v4  ;;  %2013 = vst [vmem:[#allocation4 + $0x2d8] sm:$0xf] %v2005_v5 }
 0x271   : > { %v2032_v6 = vpop.permute.xlu1 %2031  ;;  %v2030_v7 = vpop.permute.xlu0 %2029 }
 0x272   : > { %v2035_v21 = vsel %vm2001_vm7, %v2028_v37, %v2030_v7  ;;  %v2036_v8 = vsel %vm2001_vm7, %v2030_v7, %v2032_v6  ;;  %v2386_v9 = vld [vmem:[#allocation4 + $0x2e0] sm:$0xff] }
 0x273   : > { %2043 = vst [vmem:[#allocation4 + $0x2d0] sm:$0xf0] %v2035_v21  ;;  %2044 = vst [vmem:[#allocation4 + $0x2d8] sm:$0xf0] %v2036_v8  ;;  %v2904_v10 = vpack.c.bf16 %v2386_v9, %v2382_v17 }
 0x275   : > { %v2062_v48 = vpop.permute.xlu1 %2061  ;;  %2905 = vmatpush1.bf16.msra.mxu0 %v2904_v10  ;;  %v2060_v18 = vpop.permute.xlu0 %2059 }
 0x276   : > { %v2066_v11 = vsel %vm2063_vm8, %v2058_v44, %v2060_v18  ;;  %v2067_v12 = vsel %vm2063_vm8, %v2060_v18, %v2062_v48 }
 0x277   : > { %2074 = vst [vmem:[#allocation4 + $0x2f0] sm:$0xf] %v2066_v11  ;;  %2075 = vst [vmem:[#allocation4 + $0x2f8] sm:$0xf] %v2067_v12 }
 0x279   : > { %v2094_v13 = vpop.permute.xlu1 %2093  ;;  %v2092_v23 = vpop.permute.xlu0 %2091 }
 0x27a   : > { %v2097_v14 = vsel %vm2063_vm8, %v2090_v47, %v2092_v23  ;;  %v2098_v15 = vsel %vm2063_vm8, %v2092_v23, %v2094_v13  ;;  %v2385_v55 = vld [vmem:[#allocation4 + $0x2d8] sm:$0xff]  ;;  %v2384_v28 = vld [vmem:[#allocation4 + $0x2d0] sm:$0xff] }
 0x27b   : > { %2105 = vst [vmem:[#allocation4 + $0x2f0] sm:$0xf0] %v2097_v14  ;;  %2106 = vst [vmem:[#allocation4 + $0x2f8] sm:$0xf0] %v2098_v15 }
 0x27d   : > { %v2120_v22 = vpop.permute.xlu1 %2119  ;;  %v2118_v25 = vpop.permute.xlu0 %2117 }
 0x27e   : > { %v2127_v57 = vsel %vm2125_vm9, %v2118_v25, %v2120_v22 }
 0x27f   : > { %2135 = vst [vmem:[#allocation4 + $0x308] sm:$0xf] %v2127_v57 }
 0x281   : > { %v2152_v54 = vpop.permute.xlu1 %2151  ;;  %v2150_v26 = vpop.permute.xlu0 %2149 }
 0x282   : > { %v2158_v27 = vsel %vm2125_vm9, %v2150_v26, %v2152_v54  ;;  %v2389_v62 = vld [vmem:[#allocation4 + $0x2f8] sm:$0xff]  ;;  %v2388_v0 = vld [vmem:[#allocation4 + $0x2f0] sm:$0xff] }
 0x283   : > { %2166 = vst [vmem:[#allocation4 + $0x308] sm:$0xf0] %v2158_v27  ;;  %v2954_v29 = vpack.c.bf16 %v2389_v62, %v2385_v55  ;;  %v2956_v30 = vpack.c.bf16 %v2388_v0, %v2384_v28 }
 0x285   : > { %v2182_v31 = vpop.permute.xlu1 %2181  ;;  %2955 = vmatprep.subr.bf16.mxu1 %v2954_v29  ;;  %v2180_v32 = vpop.permute.xlu0 %2179 }
 0x286   : > { %v2189_v33 = vsel %vm2187_vm10, %v2180_v32, %v2182_v31  ;;  %2957 = vmatpush1.bf16.msra.mxu1 %v2956_v30 }
 0x287   : > { %2197 = vst [vmem:[#allocation4 + $0x328] sm:$0xf] %v2189_v33 }
 0x289   : > { %v2214_v34 = vpop.permute.xlu1 %2213  ;;  %v2212_v35 = vpop.permute.xlu0 %2211 }
 0x28a   : > { %v2220_v36 = vsel %vm2187_vm10, %v2212_v35, %v2214_v34  ;;  %v2391_v43 = vld [vmem:[#allocation4 + $0x308] sm:$0xff] }
 0x28b   : > { %2228 = vst [vmem:[#allocation4 + $0x328] sm:$0xf0] %v2220_v36 }
 0x28d   : > { %v2148_v37 = vpop.permute.xlu1 %2147  ;;  %v2116_v1 = vpop.permute.xlu0 %2115 }
 0x28e   : > { %v2157_v38 = vsel %vm2125_vm9, %v2148_v37, %v2150_v26  ;;  %v2126_v39 = vsel %vm2125_vm9, %v2116_v1, %v2118_v25 }
 0x28f   : > { %2165 = vst [vmem:[#allocation4 + $0x300] sm:$0xf0] %v2157_v38  ;;  %2134 = vst [vmem:[#allocation4 + $0x300] sm:$0xf] %v2126_v39 }
 0x291   : > { %v2210_v51 = vpop.permute.xlu1 %2209  ;;  %v2178_v40 = vpop.permute.xlu0 %2177 }
 0x292   : > { %v2219_v41 = vsel %vm2187_vm10, %v2210_v51, %v2212_v35  ;;  %v2188_v42 = vsel %vm2187_vm10, %v2178_v40, %v2180_v32  ;;  %v2395_v44 = vld [vmem:[#allocation4 + $0x328] sm:$0xff]  ;;  %v2551_v32 = vlaneseq  ;;  %v2549_v35 = vld [vmem:[%s566_s7] sm:$0xf] }
 0x293   : > { %2227 = vst [vmem:[#allocation4 + $0x320] sm:$0xf0] %v2219_v41  ;;  %2196 = vst [vmem:[#allocation4 + $0x320] sm:$0xf] %v2188_v42  ;;  %v2906_v45 = vpack.c.bf16 %v2395_v44, %v2391_v43 }
 0x294   : > { %v2552_v33 = vshrl.u32 %v2551_v32, 7 }
 0x295   : > { %v2124_v46 = vpop.permute.xlu1 %2123  ;;  %2907 = vmatprep.subr.bf16.mxu0 %v2906_v45  ;;  %v2122_v47 = vpop.permute.xlu0 %2121 }
 0x296   : > { %v2128_v49 = vsel %vm2125_vm9, %v2120_v22, %v2122_v47  ;;  %v2129_v50 = vsel %vm2125_vm9, %v2122_v47, %v2124_v46  ;;  %v2390_v63 = vld [vmem:[#allocation4 + $0x300] sm:$0xff]  ;;  %v2557_v36 = vsub.s32 1, %v2552_v33  ;;  %v2561_v41 = vsub.s32 2, %v2552_v33 }
 0x297   : > { %2136 = vst [vmem:[#allocation4 + $0x310] sm:$0xf] %v2128_v49  ;;  %2137 = vst [vmem:[#allocation4 + $0x318] sm:$0xf] %v2129_v50  ;;  %v2565_v43 = vsub.s32 3, %v2552_v33 }
 0x298   : > { %v2558_v1 = vrot.slane %v2549_v35, %v2557_v36 }
 0x299   : > { %v2156_v52 = vpop.permute.xlu1 %2155  ;;  %v2154_v56 = vpop.permute.xlu0 %2153 }
 0x29a   : > { %v2159_v60 = vsel %vm2125_vm9, %v2152_v54, %v2154_v56  ;;  %v2160_v61 = vsel %vm2125_vm9, %v2154_v56, %v2156_v52  ;;  %v2394_v2 = vld [vmem:[#allocation4 + $0x320] sm:$0xff]  ;;  %v2562_v52 = vrot.slane %v2549_v35, %v2561_v41  ;;  %v2566_v56 = vrot.slane %v2549_v35, %v2565_v43 }
 0x29b   : > { %2167 = vst [vmem:[#allocation4 + $0x310] sm:$0xf0] %v2159_v60  ;;  %2168 = vst [vmem:[#allocation4 + $0x318] sm:$0xf0] %v2160_v61  ;;  %v2908_v16 = vpack.c.bf16 %v2394_v2, %v2390_v63 }
 0x29d   : > { %v2186_v3 = vpop.permute.xlu1 %2185  ;;  %2909 = vmatpush1.bf16.msra.mxu0 %v2908_v16  ;;  %v2184_v59 = vpop.permute.xlu0 %2183 }
 0x29e   : > { %v2190_v58 = vsel %vm2187_vm10, %v2182_v31, %v2184_v59  ;;  %v2191_v19 = vsel %vm2187_vm10, %v2184_v59, %v2186_v3 }
 0x29f   : > { %2198 = vst [vmem:[#allocation4 + $0x330] sm:$0xf] %v2190_v58  ;;  %2199 = vst [vmem:[#allocation4 + $0x338] sm:$0xf] %v2191_v19 }
 0x2a1   : > { %v2218_v24 = vpop.permute.xlu1 %2217  ;;  %v2216_v20 = vpop.permute.xlu0 %2215 }
 0x2a2   : > { %v2221_v4 = vsel %vm2187_vm10, %v2214_v34, %v2216_v20  ;;  %v2222_v5 = vsel %vm2187_vm10, %v2216_v20, %v2218_v24  ;;  %v2393_v9 = vld [vmem:[#allocation4 + $0x318] sm:$0xff]  ;;  %v2392_v18 = vld [vmem:[#allocation4 + $0x310] sm:$0xff]  ;;  %v2553_v34 = vsub.s32 0, %v2552_v33 }
 0x2a3   : > { %2229 = vst [vmem:[#allocation4 + $0x330] sm:$0xf0] %v2221_v4  ;;  %2230 = vst [vmem:[#allocation4 + $0x338] sm:$0xf0] %v2222_v5 }
 0x2a4   : > { %v2554_v37 = vrot.slane %v2549_v35, %v2553_v34 }
 0x2a5   : > { %v2244_v6 = vpop.permute.xlu1 %2243  ;;  %v2242_v7 = vpop.permute.xlu0 %2241 }
 0x2a6   : > { %v2251_v21 = vsel %vm2249_vm11, %v2242_v7, %v2244_v6 }
 0x2a7   : > { %2259 = vst [vmem:[#allocation4 + $0x348] sm:$0xf] %v2251_v21 }
 0x2a9   : > { %v2276_v8 = vpop.permute.xlu1 %2275  ;;  %v2274_v17 = vpop.permute.xlu0 %2273 }
 0x2aa   : > { %v2282_v10 = vsel %vm2249_vm11, %v2274_v17, %v2276_v8  ;;  %v2397_v48 = vld [vmem:[#allocation4 + $0x338] sm:$0xff]  ;;  %v2396_v11 = vld [vmem:[#allocation4 + $0x330] sm:$0xff] }
 0x2ab   : > { %2290 = vst [vmem:[#allocation4 + $0x348] sm:$0xf0] %v2282_v10  ;;  %v2958_v12 = vpack.c.bf16 %v2397_v48, %v2393_v9  ;;  %v2960_v13 = vpack.c.bf16 %v2396_v11, %v2392_v18  ;;  %v2599_v9 = vld [vmem:[%s3261_s12] sm:$0xf] }
 0x2ad   : > { %v2272_v23 = vpop.permute.xlu1 %2271  ;;  %2959 = vmatprep.subr.bf16.mxu1 %v2958_v12  ;;  %v2240_v14 = vpop.permute.xlu0 %2239 }
 0x2ae   : > { %v2281_v15 = vsel %vm2249_vm11, %v2272_v23, %v2274_v17  ;;  %v2250_v22 = vsel %vm2249_vm11, %v2240_v14, %v2242_v7  ;;  %2961 = vmatpush1.bf16.msra.mxu1 %v2960_v13 }
 0x2af   : > { %2289 = vst [vmem:[#allocation4 + $0x340] sm:$0xf0] %v2281_v15  ;;  %2258 = vst [vmem:[#allocation4 + $0x340] sm:$0xf] %v2250_v22 }
 0x2b1   : > { %v2248_v25 = vpop.permute.xlu1 %2247  ;;  %v2246_v57 = vpop.permute.xlu0 %2245 }
 0x2b2   : > { %v2252_v54 = vsel %vm2249_vm11, %v2244_v6, %v2246_v57  ;;  %v2253_v26 = vsel %vm2249_vm11, %v2246_v57, %v2248_v25  ;;  %v2399_v55 = vld [vmem:[#allocation4 + $0x348] sm:$0xff] }
 0x2b3   : > { %2260 = vst [vmem:[#allocation4 + $0x350] sm:$0xf] %v2252_v54  ;;  %2261 = vst [vmem:[#allocation4 + $0x358] sm:$0xf] %v2253_v26  ;;  %2459 = vmatprep.subr.mxu0 %v2399_v55 }
 0x2b5   : > { %v2280_v27 = vpop.permute.xlu1 %2279  ;;  %v2278_v62 = vpop.permute.xlu0 %2277 }
 0x2b6   : > { %v2283_v28 = vsel %vm2249_vm11, %v2276_v8, %v2278_v62  ;;  %v2284_v0 = vsel %vm2249_vm11, %v2278_v62, %v2280_v27  ;;  %v2398_v29 = vld [vmem:[#allocation4 + $0x340] sm:$0xff] }
 0x2b7   : > { %2291 = vst [vmem:[#allocation4 + $0x350] sm:$0xf0] %v2283_v28  ;;  %2292 = vst [vmem:[#allocation4 + $0x358] sm:$0xf0] %v2284_v0  ;;  %2460 = vmatpush1.msra.mxu0 %v2398_v29  ;;  %v2585_v8 = vld [vmem:[%s3241_s20] sm:$0xf] }
 0x2b8   : > { %2472 = vmatmul.mubr.f32.vlgmr.msra.gmra.mrb[0].mxu0 %v3940_v53 }
 0x2be   : > { %v2401_v30 = vld [vmem:[#allocation4 + $0x358] sm:$0xff]  ;;  %v2400_v31 = vld [vmem:[#allocation4 + $0x350] sm:$0xff] }
 0x2bf   : > { %2530 = vmatprep.subr.mxu1 %v2401_v30 }
 0x2c0   : > { %2531 = vmatpush1.msra.mxu1 %v2400_v31 }
 0x2c1   : > { %2543 = vmatmul.mubr.f32.vlgmr.msra.gmra.mrb[0].mxu1 %v3940_v53 }
 0x38b   : > { %v2473_v38 = vpop.f32.mrb[0].mxu0 }
 0x38c   : > { %v2571_v39 = vmul.f32 %v2554_v37, %v2473_v38  ;;  %v2475_v51 = vpop.f32.mrb[1].mxu0 }
 0x38d   : > { %v2572_v40 = vmul.f32 %v2558_v1, %v2475_v51 }
 0x38e   : > { %v2587_v53 = vsel %vm2586_vm12, %v2571_v39, 0.0  ;;  %v2600_v42 = vmul.f32 %v2571_v39, %v2571_v39 }
 0x38f   : > { %v2579_v44 = vcombine.low %v2571_v39, %v2572_v40  ;;  %v2588_v45 = vsel %vm2586_vm12, %v2572_v40, 0.0  ;;  %v2601_v46 = vmul.f32 %v2572_v40, %v2572_v40 }
 0x390   : > { %v2604_v47 = vsel %vm2586_vm12, %v2600_v42, 0.0  ;;  %v2589_v49 = vadd.f32 %v2588_v45, %v2587_v53 }
 0x391   : > { %2583 = vst [vmem:[%s3266_s25] sm:$0xff] %v2579_v44  ;;  %v2605_v50 = vsel %vm2586_vm12, %v2601_v46, 0.0 }
 0x392   : > { %v2606_v60 = vadd.f32 %v2605_v50, %v2604_v47 }
 0x394   : > { %v2544_v61 = vpop.f32.mrb[0].mxu1 }
 0x395   : > { %v2573_v63 = vmul.f32 %v2562_v52, %v2544_v61  ;;  %v2546_v2 = vpop.f32.mrb[1].mxu1 }
 0x396   : > { %v2574_v16 = vmul.f32 %v2566_v56, %v2546_v2 }
 0x397   : > { %v2590_v3 = vsel %vm2586_vm12, %v2573_v63, 0.0  ;;  %v2602_v59 = vmul.f32 %v2573_v63, %v2573_v63 }
 0x398   : > { %v2580_v58 = vcombine.low %v2573_v63, %v2574_v16  ;;  %v2603_v19 = vmul.f32 %v2574_v16, %v2574_v16  ;;  %v2591_v24 = vadd.f32 %v2590_v3, %v2589_v49  ;;  %v2592_v20 = vsel %vm2586_vm12, %v2574_v16, 0.0 }
 0x399   : > { %v2607_v4 = vsel %vm2586_vm12, %v2602_v59, 0.0 }
 0x39a   : > { %2584 = vst [vmem:[%s3266_s25 + $0x8] sm:$0xff] %v2580_v58  ;;  %v2593_v5 = vadd.f32 %v2592_v20, %v2591_v24  ;;  %v2608_v6 = vadd.f32 %v2607_v4, %v2606_v60  ;;  %v2609_v7 = vsel %vm2586_vm12, %v2603_v19, 0.0 }
 0x39c   : > { %2594 = vadd.xlane.f32.xlu0 %v2593_v5  ;;  %v2610_v21 = vadd.f32 %v2609_v7, %v2608_v6 }
 0x39e   : > { %2611 = vadd.xlane.f32.xlu1 %v2610_v21 }
 0x429   : > { %v2595_v17 = vpop.xlane.xlu0 %2594 }
 0x42a   : > { %v2596_v10 = vadd.f32 %v2595_v17, %v2585_v8 }
 0x42b   : > { %v2612_v48 = vpop.xlane.xlu1 %2611 }
 0x42c   : > { %2598 = vst.msk [vmem:[%s3241_s20] sm:$0xf] %vm2597_vm13, %v2596_v10  ;;  %v2613_v18 = vadd.f32 %v2612_v48, %v2599_v9 }
 0x42e   : > { %2614 = vst.msk [vmem:[%s3261_s12] sm:$0xf] %vm2597_vm13, %v2613_v18 }
 0x42f PF: > { %s21_s6 = sadd.s32 1, %s3107_s6   ;;  %s4068_s13 = sld [smem:[#allocation5_spill]] }
 0x430   : > { %p18_p13 = scmp.ge.s32.totalorder %s21_s6, 6   ;;  %s4069_s14 = sld [smem:[#allocation6_spill]] }
 0x431   : > { %s4070_s15 = sld [smem:[#allocation7_spill]]  ;;  %s4071_s16 = sld [smem:[#allocation8_spill]] }
 0x432   :  { %20 = sbr.rel (!%p18_p13) target bundleno = 4 (0x4), region = 137 }

</bundles_post_ra>
